<compile_context>
chip_gen: v7x
topology: tpu7x:2x2x1
jax: 0.10.0
libtpu: 0.0.40
codegen_flags: <defaults>
</compile_context>

<pallas_src>
import functools

import numpy as np
import jax
import jax.numpy as jnp
from jax import lax
from jax.experimental import pallas as pl
from jax.experimental.pallas import tpu as pltpu


def _conv_in_lrelu_kernel(x_ref, w_ref, m_ref, b_ref, g_ref, beta_ref, ds_ref,
                          o_ref, col_ref, *, D, H, W, Cp, Cout, eps, slope):
    """One grid step == one sample n.

    x_ref   : (1, Cp, D*H*W)   channel-padded input, spatial flattened (lane-dense)
    w_ref   : (Cout, 27*Cp)    conv weights, columns ordered ((kd*3+kh)*3+kw)*Cp + c
    m_ref   : (27, D*H*W)      per-tap halo masks (1 inside volume, 0 outside), shared
    b_ref   : (Cout, 1)        conv bias
    g_ref   : (Cout, 1)        instance-norm gamma
    beta_ref: (Cout, 1)        instance-norm beta
    ds_ref  : (1, Cout, 1)     Dropout3d per-(n, c) scale (1 in eval; 0 or 1/(1-p) in train)
    o_ref   : (1, Cout, D*H*W) lane-dense output
    col_ref : (27*Cp, D*H*W)   f32 VMEM scratch: im2col matrix
    """
    HW = H * W
    DHW = D * HW
    f32 = jnp.float32

    # ---- im2col: 27 shifted-and-masked copies of the flattened volume ----
    # For tap (kd, kh, kw) the needed value at flat position i is x[i + s] with
    # s = (kd-1)*HW + (kh-1)*W + (kw-1); wraparound / halo positions are zeroed by mask.
    t = 0
    for kd in range(3):
        for kh in range(3):
            for kw in range(3):
                s = (kd - 1) * HW + (kh - 1) * W + (kw - 1)
                xv = x_ref[0]                                   # (Cp, DHW)
                shifted = xv if s == 0 else jnp.roll(xv, -s, axis=1)
                mask = m_ref[t:t + 1, :]                        # (1, DHW), f32 0/1
                col_ref[t * Cp:(t + 1) * Cp, :] = shifted.astype(f32) * mask
                t += 1

    # ---- conv == one lane-dense GEMM: (Cout, 27*Cp) . (27*Cp, DHW) ----
    acc = lax.dot_general(w_ref[...].astype(f32), col_ref[...],
                          (((1,), (0,)), ((), ())),
                          preferred_element_type=f32)            # (Cout, DHW)
    # conv bias + Dropout3d channel scale (applied pre-norm, as in the PyTorch module).
    acc = (acc + b_ref[...].astype(f32)) * ds_ref[0].astype(f32)

    # ---- InstanceNorm3d (biased variance) + affine + LeakyReLU ----
    inv_n = 1.0 / float(DHW)
    mean = jnp.sum(acc, axis=1, keepdims=True) * inv_n
    var = jnp.sum(acc * acc, axis=1, keepdims=True) * inv_n - mean * mean
    scale = lax.rsqrt(var + eps) * g_ref[...].astype(f32)        # (Cout, 1)
    shift = beta_ref[...].astype(f32) - mean * scale
    y = acc * scale + shift
    y = jnp.where(y >= 0, y, y * slope)                          # LeakyReLU(0.01)
    o_ref[0] = y.astype(o_ref.dtype)


def conv_dropout_norm_nonlin(x, weight, bias, gamma, beta, *,
                             eps=1e-5, negative_slope=0.01, drop_scale=None):
    """Forward of ConvDropoutNormNonlin for NCDHW `x`.

    Conv3d(kernel=3, stride=1, padding=1, bias=True) -> Dropout3d (per-(n,c) scale,
    identity in eval) -> InstanceNorm3d(affine=True, eps) -> LeakyReLU(negative_slope).
    `drop_scale`: optional (N, Cout) per-(sample, channel) dropout multipliers.
    """
    # TODO(synk): train-mode Dropout3d channel RNG is generated outside the kernel
    # (could be folded in with pltpu.prng_seed / prng_random_bits).
    N, Cin, D, H, W = x.shape
    Cout = weight.shape[0]
    assert weight.shape == (Cout, Cin, 3, 3, 3), weight.shape
    HW, DHW = H * W, D * H * W
    Cp = ((Cin + 7) // 8) * 8            # pad input channels to the sublane tile (8)

    # Channel-pad and flatten spatial: each sample becomes a lane-dense (Cp, DHW) slab.
    xp = jnp.pad(x, ((0, 0), (0, Cp - Cin), (0, 0), (0, 0), (0, 0))).reshape(N, Cp, DHW)

    # Weights -> (Cout, 27*Cp); column order matches the im2col row order in the kernel.
    wp = jnp.pad(weight, ((0, 0), (0, Cp - Cin), (0, 0), (0, 0), (0, 0)))
    wmat = jnp.transpose(wp, (0, 2, 3, 4, 1)).reshape(Cout, 27 * Cp)

    # Per-tap halo masks (compile-time constants, shared across all samples).
    dz, hz, wz = np.meshgrid(np.arange(D), np.arange(H), np.arange(W), indexing='ij')
    masks = []
    for kd in range(3):
        for kh in range(3):
            for kw in range(3):
                v = ((dz + kd - 1 >= 0) & (dz + kd - 1 < D) &
                     (hz + kh - 1 >= 0) & (hz + kh - 1 < H) &
                     (wz + kw - 1 >= 0) & (wz + kw - 1 < W))
                masks.append(v.reshape(-1))
    mask = jnp.asarray(np.stack(masks).astype(np.float32))       # (27, DHW)

    b2 = bias.reshape(Cout, 1)
    g2 = gamma.reshape(Cout, 1)
    be2 = beta.reshape(Cout, 1)
    if drop_scale is None:
        drop_scale = jnp.ones((N, Cout), x.dtype)                # eval: Dropout3d == identity
    ds = drop_scale.reshape(N, Cout, 1).astype(x.dtype)

    kernel = functools.partial(_conv_in_lrelu_kernel, D=D, H=H, W=W, Cp=Cp,
                               Cout=Cout, eps=float(eps), slope=float(negative_slope))
    out = pl.pallas_call(
        kernel,
        out_shape=jax.ShapeDtypeStruct((N, Cout, DHW), x.dtype),
        grid=(N,),
        in_specs=[
            pl.BlockSpec((1, Cp, DHW), lambda n: (n, 0, 0)),
            pl.BlockSpec((Cout, 27 * Cp), lambda n: (0, 0)),
            pl.BlockSpec((27, DHW), lambda n: (0, 0)),
            pl.BlockSpec((Cout, 1), lambda n: (0, 0)),
            pl.BlockSpec((Cout, 1), lambda n: (0, 0)),
            pl.BlockSpec((Cout, 1), lambda n: (0, 0)),
            pl.BlockSpec((1, Cout, 1), lambda n: (n, 0, 0)),
        ],
        out_specs=pl.BlockSpec((1, Cout, DHW), lambda n: (n, 0, 0)),
        scratch_shapes=[pltpu.VMEM((27 * Cp, DHW), jnp.float32)],
        compiler_params=pltpu.CompilerParams(
            dimension_semantics=("parallel",)),
    )(xp, wmat, mask, b2, g2, be2, ds)
    return out.reshape(N, Cout, D, H, W)


if __name__ == "__main__":
    key = jax.random.PRNGKey(0)
    k1, k2, k3, k4, k5 = jax.random.split(key, 5)
    N, Cin, Cout, D, H, W = 2, 4, 8, 8, 16, 16
    x = jax.random.normal(k1, (N, Cin, D, H, W), dtype=jnp.float32)
    weight = jax.random.normal(k2, (Cout, Cin, 3, 3, 3), dtype=jnp.float32) * 0.1
    bias = jax.random.normal(k3, (Cout,), dtype=jnp.float32) * 0.1
    gamma = jax.random.normal(k4, (Cout,), dtype=jnp.float32)
    beta = jax.random.normal(k5, (Cout,), dtype=jnp.float32)

    # Eval-mode forward (Dropout3d is identity when not training); training-mode channel
    # dropout is supported via the drop_scale argument computed outside the kernel.
    out = conv_dropout_norm_nonlin(x, weight, bias, gamma, beta)
    out = jax.block_until_ready(out)
    assert out.shape == (N, Cout, D, H, W), out.shape
    assert out.dtype == x.dtype

    # float64 numpy reference: Conv3d(k=3, p=1) + InstanceNorm3d(affine) + LeakyReLU(0.01).
    xnp = np.asarray(x, np.float64)
    wnp = np.asarray(weight, np.float64)
    bnp = np.asarray(bias, np.float64)
    gnp = np.asarray(gamma, np.float64)
    btnp = np.asarray(beta, np.float64)
    xpad = np.pad(xnp, ((0, 0), (0, 0), (1, 1), (1, 1), (1, 1)))
    conv = np.zeros((N, Cout, D, H, W), np.float64)
    for kd in range(3):
        for kh in range(3):
            for kw in range(3):
                conv += np.einsum('oc,ncdhw->nodhw', wnp[:, :, kd, kh, kw],
                                  xpad[:, :, kd:kd + D, kh:kh + H, kw:kw + W])
    conv += bnp[None, :, None, None, None]
    mean = conv.mean(axis=(2, 3, 4), keepdims=True)
    var = conv.var(axis=(2, 3, 4), keepdims=True)
    ref = (conv - mean) / np.sqrt(var + 1e-5)
    ref = ref * gnp[None, :, None, None, None] + btnp[None, :, None, None, None]
    ref = np.where(ref >= 0, ref, 0.01 * ref)

    np.testing.assert_allclose(np.asarray(out, np.float64), ref, rtol=2e-2, atol=2e-2)
    print("KERNEL_OK")
</pallas_src>

<mosaic_0001>
module attributes {stable_mosaic.version = 11 : i64} {
  func.func @_conv_in_lrelu_kernel(%arg0: i32, %arg1: memref<1x8x2048xf32, #tpu.memory_space<vmem>>, %arg2: memref<8x216xf32, #tpu.memory_space<vmem>>, %arg3: memref<27x2048xf32, #tpu.memory_space<vmem>>, %arg4: memref<8x1xf32, #tpu.memory_space<vmem>>, %arg5: memref<8x1xf32, #tpu.memory_space<vmem>>, %arg6: memref<8x1xf32, #tpu.memory_space<vmem>>, %arg7: memref<1x8x1xf32, #tpu.memory_space<vmem>>, %arg8: memref<1x8x2048xf32, #tpu.memory_space<vmem>>, %arg9: memref<216x2048xf32, #tpu.memory_space<vmem>>) attributes {dimension_semantics = [#tpu.dimension_semantics<parallel>], iteration_bounds = array<i64: 2>, scalar_prefetch = 0 : i64, scratch_operands = 1 : i64, tpu.core_type = #tpu.core_type<tc>, window_params = [{transform_indices = @transform_0, window_bounds = array<i64: 1, 8, 2048>}, {pipeline_mode = #tpu.pipeline_mode<synchronous>, transform_indices = @transform_1, window_bounds = array<i64: 8, 216>}, {pipeline_mode = #tpu.pipeline_mode<synchronous>, transform_indices = @transform_2, window_bounds = array<i64: 27, 2048>}, {pipeline_mode = #tpu.pipeline_mode<synchronous>, transform_indices = @transform_3, window_bounds = array<i64: 8, 1>}, {pipeline_mode = #tpu.pipeline_mode<synchronous>, transform_indices = @transform_4, window_bounds = array<i64: 8, 1>}, {pipeline_mode = #tpu.pipeline_mode<synchronous>, transform_indices = @transform_5, window_bounds = array<i64: 8, 1>}, {transform_indices = @transform_6, window_bounds = array<i64: 1, 8, 1>}, {transform_indices = @transform_7, window_bounds = array<i64: 1, 8, 2048>}]} {
    %c0 = arith.constant 0 : index
    %c0_0 = arith.constant 0 : index
    %c0_1 = arith.constant 0 : index
    %0 = vector.load %arg1[%c0, %c0_0, %c0_1] : memref<1x8x2048xf32, #tpu.memory_space<vmem>>, vector<1x8x2048xf32>
    %1 = vector.shape_cast %0 : vector<1x8x2048xf32> to vector<8x2048xf32>
    %2 = vector.extract_strided_slice %1 {offsets = [0, 1775], sizes = [8, 273], strides = [1, 1]} : vector<8x2048xf32> to vector<8x273xf32>
    %3 = vector.extract_strided_slice %1 {offsets = [0, 0], sizes = [8, 1775], strides = [1, 1]} : vector<8x2048xf32> to vector<8x1775xf32>
    %4 = tpu.concatenate %2, %3 in 1 : vector<8x273xf32>, vector<8x1775xf32> -> vector<8x2048xf32>
    %c0_2 = arith.constant 0 : index
    %c0_3 = arith.constant 0 : index
    %5 = vector.load %arg3[%c0_2, %c0_3] : memref<27x2048xf32, #tpu.memory_space<vmem>>, vector<1x2048xf32>
    %6 = vector.broadcast %5 : vector<1x2048xf32> to vector<8x2048xf32>
    %7 = arith.mulf %4, %6 : vector<8x2048xf32>
    %c0_4 = arith.constant 0 : index
    %c0_5 = arith.constant 0 : index
    %8 = vector.load %arg9[%c0_4, %c0_5] : memref<216x2048xf32, #tpu.memory_space<vmem>>, vector<8x2048xf32>
    tpu.vector_store %arg9[%c0_4, %c0_5], %7 {strides = array<i32>} : memref<216x2048xf32, #tpu.memory_space<vmem>>, vector<8x2048xf32>,
    %c0_6 = arith.constant 0 : index
    %c0_7 = arith.constant 0 : index
    %c0_8 = arith.constant 0 : index
    %9 = vector.load %arg1[%c0_6, %c0_7, %c0_8] : memref<1x8x2048xf32, #tpu.memory_space<vmem>>, vector<1x8x2048xf32>
    %10 = vector.shape_cast %9 : vector<1x8x2048xf32> to vector<8x2048xf32>
    %11 = vector.extract_strided_slice %10 {offsets = [0, 1776], sizes = [8, 272], strides = [1, 1]} : vector<8x2048xf32> to vector<8x272xf32>
    %12 = vector.extract_strided_slice %10 {offsets = [0, 0], sizes = [8, 1776], strides = [1, 1]} : vector<8x2048xf32> to vector<8x1776xf32>
    %13 = tpu.concatenate %11, %12 in 1 : vector<8x272xf32>, vector<8x1776xf32> -> vector<8x2048xf32>
    %c1 = arith.constant 1 : index
    %c0_9 = arith.constant 0 : index
    %14 = vector.load %arg3[%c1, %c0_9] : memref<27x2048xf32, #tpu.memory_space<vmem>>, vector<1x2048xf32>
    %15 = vector.broadcast %14 : vector<1x2048xf32> to vector<8x2048xf32>
    %16 = arith.mulf %13, %15 : vector<8x2048xf32>
    %c8 = arith.constant 8 : index
    %c0_10 = arith.constant 0 : index
    %17 = vector.load %arg9[%c8, %c0_10] : memref<216x2048xf32, #tpu.memory_space<vmem>>, vector<8x2048xf32>
    tpu.vector_store %arg9[%c8, %c0_10], %16 {strides = array<i32>} : memref<216x2048xf32, #tpu.memory_space<vmem>>, vector<8x2048xf32>,
    %c0_11 = arith.constant 0 : index
    %c0_12 = arith.constant 0 : index
    %c0_13 = arith.constant 0 : index
    %18 = vector.load %arg1[%c0_11, %c0_12, %c0_13] : memref<1x8x2048xf32, #tpu.memory_space<vmem>>, vector<1x8x2048xf32>
    %19 = vector.shape_cast %18 : vector<1x8x2048xf32> to vector<8x2048xf32>
    %20 = vector.extract_strided_slice %19 {offsets = [0, 1777], sizes = [8, 271], strides = [1, 1]} : vector<8x2048xf32> to vector<8x271xf32>
    %21 = vector.extract_strided_slice %19 {offsets = [0, 0], sizes = [8, 1777], strides = [1, 1]} : vector<8x2048xf32> to vector<8x1777xf32>
    %22 = tpu.concatenate %20, %21 in 1 : vector<8x271xf32>, vector<8x1777xf32> -> vector<8x2048xf32>
    %c2 = arith.constant 2 : index
    %c0_14 = arith.constant 0 : index
    %23 = vector.load %arg3[%c2, %c0_14] : memref<27x2048xf32, #tpu.memory_space<vmem>>, vector<1x2048xf32>
    %24 = vector.broadcast %23 : vector<1x2048xf32> to vector<8x2048xf32>
    %25 = arith.mulf %22, %24 : vector<8x2048xf32>
    %c16 = arith.constant 16 : index
    %c0_15 = arith.constant 0 : index
    %26 = vector.load %arg9[%c16, %c0_15] : memref<216x2048xf32, #tpu.memory_space<vmem>>, vector<8x2048xf32>
    tpu.vector_store %arg9[%c16, %c0_15], %25 {strides = array<i32>} : memref<216x2048xf32, #tpu.memory_space<vmem>>, vector<8x2048xf32>,
    %c0_16 = arith.constant 0 : index
    %c0_17 = arith.constant 0 : index
    %c0_18 = arith.constant 0 : index
    %27 = vector.load %arg1[%c0_16, %c0_17, %c0_18] : memref<1x8x2048xf32, #tpu.memory_space<vmem>>, vector<1x8x2048xf32>
    %28 = vector.shape_cast %27 : vector<1x8x2048xf32> to vector<8x2048xf32>
    %29 = vector.extract_strided_slice %28 {offsets = [0, 1791], sizes = [8, 257], strides = [1, 1]} : vector<8x2048xf32> to vector<8x257xf32>
    %30 = vector.extract_strided_slice %28 {offsets = [0, 0], sizes = [8, 1791], strides = [1, 1]} : vector<8x2048xf32> to vector<8x1791xf32>
    %31 = tpu.concatenate %29, %30 in 1 : vector<8x257xf32>, vector<8x1791xf32> -> vector<8x2048xf32>
    %c3 = arith.constant 3 : index
    %c0_19 = arith.constant 0 : index
    %32 = vector.load %arg3[%c3, %c0_19] : memref<27x2048xf32, #tpu.memory_space<vmem>>, vector<1x2048xf32>
    %33 = vector.broadcast %32 : vector<1x2048xf32> to vector<8x2048xf32>
    %34 = arith.mulf %31, %33 : vector<8x2048xf32>
    %c24 = arith.constant 24 : index
    %c0_20 = arith.constant 0 : index
    %35 = vector.load %arg9[%c24, %c0_20] : memref<216x2048xf32, #tpu.memory_space<vmem>>, vector<8x2048xf32>
    tpu.vector_store %arg9[%c24, %c0_20], %34 {strides = array<i32>} : memref<216x2048xf32, #tpu.memory_space<vmem>>, vector<8x2048xf32>,
    %c0_21 = arith.constant 0 : index
    %c0_22 = arith.constant 0 : index
    %c0_23 = arith.constant 0 : index
    %36 = vector.load %arg1[%c0_21, %c0_22, %c0_23] : memref<1x8x2048xf32, #tpu.memory_space<vmem>>, vector<1x8x2048xf32>
    %37 = vector.shape_cast %36 : vector<1x8x2048xf32> to vector<8x2048xf32>
    %38 = vector.extract_strided_slice %37 {offsets = [0, 1792], sizes = [8, 256], strides = [1, 1]} : vector<8x2048xf32> to vector<8x256xf32>
    %39 = vector.extract_strided_slice %37 {offsets = [0, 0], sizes = [8, 1792], strides = [1, 1]} : vector<8x2048xf32> to vector<8x1792xf32>
    %40 = tpu.concatenate %38, %39 in 1 : vector<8x256xf32>, vector<8x1792xf32> -> vector<8x2048xf32>
    %c4 = arith.constant 4 : index
    %c0_24 = arith.constant 0 : index
    %41 = vector.load %arg3[%c4, %c0_24] : memref<27x2048xf32, #tpu.memory_space<vmem>>, vector<1x2048xf32>
    %42 = vector.broadcast %41 : vector<1x2048xf32> to vector<8x2048xf32>
    %43 = arith.mulf %40, %42 : vector<8x2048xf32>
    %c32 = arith.constant 32 : index
    %c0_25 = arith.constant 0 : index
    %44 = vector.load %arg9[%c32, %c0_25] : memref<216x2048xf32, #tpu.memory_space<vmem>>, vector<8x2048xf32>
    tpu.vector_store %arg9[%c32, %c0_25], %43 {strides = array<i32>} : memref<216x2048xf32, #tpu.memory_space<vmem>>, vector<8x2048xf32>,
    %c0_26 = arith.constant 0 : index
    %c0_27 = arith.constant 0 : index
    %c0_28 = arith.constant 0 : index
    %45 = vector.load %arg1[%c0_26, %c0_27, %c0_28] : memref<1x8x2048xf32, #tpu.memory_space<vmem>>, vector<1x8x2048xf32>
    %46 = vector.shape_cast %45 : vector<1x8x2048xf32> to vector<8x2048xf32>
    %47 = vector.extract_strided_slice %46 {offsets = [0, 1793], sizes = [8, 255], strides = [1, 1]} : vector<8x2048xf32> to vector<8x255xf32>
    %48 = vector.extract_strided_slice %46 {offsets = [0, 0], sizes = [8, 1793], strides = [1, 1]} : vector<8x2048xf32> to vector<8x1793xf32>
    %49 = tpu.concatenate %47, %48 in 1 : vector<8x255xf32>, vector<8x1793xf32> -> vector<8x2048xf32>
    %c5 = arith.constant 5 : index
    %c0_29 = arith.constant 0 : index
    %50 = vector.load %arg3[%c5, %c0_29] : memref<27x2048xf32, #tpu.memory_space<vmem>>, vector<1x2048xf32>
    %51 = vector.broadcast %50 : vector<1x2048xf32> to vector<8x2048xf32>
    %52 = arith.mulf %49, %51 : vector<8x2048xf32>
    %c40 = arith.constant 40 : index
    %c0_30 = arith.constant 0 : index
    %53 = vector.load %arg9[%c40, %c0_30] : memref<216x2048xf32, #tpu.memory_space<vmem>>, vector<8x2048xf32>
    tpu.vector_store %arg9[%c40, %c0_30], %52 {strides = array<i32>} : memref<216x2048xf32, #tpu.memory_space<vmem>>, vector<8x2048xf32>,
    %c0_31 = arith.constant 0 : index
    %c0_32 = arith.constant 0 : index
    %c0_33 = arith.constant 0 : index
    %54 = vector.load %arg1[%c0_31, %c0_32, %c0_33] : memref<1x8x2048xf32, #tpu.memory_space<vmem>>, vector<1x8x2048xf32>
    %55 = vector.shape_cast %54 : vector<1x8x2048xf32> to vector<8x2048xf32>
    %56 = vector.extract_strided_slice %55 {offsets = [0, 1807], sizes = [8, 241], strides = [1, 1]} : vector<8x2048xf32> to vector<8x241xf32>
    %57 = vector.extract_strided_slice %55 {offsets = [0, 0], sizes = [8, 1807], strides = [1, 1]} : vector<8x2048xf32> to vector<8x1807xf32>
    %58 = tpu.concatenate %56, %57 in 1 : vector<8x241xf32>, vector<8x1807xf32> -> vector<8x2048xf32>
    %c6 = arith.constant 6 : index
    %c0_34 = arith.constant 0 : index
    %59 = vector.load %arg3[%c6, %c0_34] : memref<27x2048xf32, #tpu.memory_space<vmem>>, vector<1x2048xf32>
    %60 = vector.broadcast %59 : vector<1x2048xf32> to vector<8x2048xf32>
    %61 = arith.mulf %58, %60 : vector<8x2048xf32>
    %c48 = arith.constant 48 : index
    %c0_35 = arith.constant 0 : index
    %62 = vector.load %arg9[%c48, %c0_35] : memref<216x2048xf32, #tpu.memory_space<vmem>>, vector<8x2048xf32>
    tpu.vector_store %arg9[%c48, %c0_35], %61 {strides = array<i32>} : memref<216x2048xf32, #tpu.memory_space<vmem>>, vector<8x2048xf32>,
    %c0_36 = arith.constant 0 : index
    %c0_37 = arith.constant 0 : index
    %c0_38 = arith.constant 0 : index
    %63 = vector.load %arg1[%c0_36, %c0_37, %c0_38] : memref<1x8x2048xf32, #tpu.memory_space<vmem>>, vector<1x8x2048xf32>
    %64 = vector.shape_cast %63 : vector<1x8x2048xf32> to vector<8x2048xf32>
    %65 = vector.extract_strided_slice %64 {offsets = [0, 1808], sizes = [8, 240], strides = [1, 1]} : vector<8x2048xf32> to vector<8x240xf32>
    %66 = vector.extract_strided_slice %64 {offsets = [0, 0], sizes = [8, 1808], strides = [1, 1]} : vector<8x2048xf32> to vector<8x1808xf32>
    %67 = tpu.concatenate %65, %66 in 1 : vector<8x240xf32>, vector<8x1808xf32> -> vector<8x2048xf32>
    %c7 = arith.constant 7 : index
    %c0_39 = arith.constant 0 : index
    %68 = vector.load %arg3[%c7, %c0_39] : memref<27x2048xf32, #tpu.memory_space<vmem>>, vector<1x2048xf32>
    %69 = vector.broadcast %68 : vector<1x2048xf32> to vector<8x2048xf32>
    %70 = arith.mulf %67, %69 : vector<8x2048xf32>
    %c56 = arith.constant 56 : index
    %c0_40 = arith.constant 0 : index
    %71 = vector.load %arg9[%c56, %c0_40] : memref<216x2048xf32, #tpu.memory_space<vmem>>, vector<8x2048xf32>
    tpu.vector_store %arg9[%c56, %c0_40], %70 {strides = array<i32>} : memref<216x2048xf32, #tpu.memory_space<vmem>>, vector<8x2048xf32>,
    %c0_41 = arith.constant 0 : index
    %c0_42 = arith.constant 0 : index
    %c0_43 = arith.constant 0 : index
    %72 = vector.load %arg1[%c0_41, %c0_42, %c0_43] : memref<1x8x2048xf32, #tpu.memory_space<vmem>>, vector<1x8x2048xf32>
    %73 = vector.shape_cast %72 : vector<1x8x2048xf32> to vector<8x2048xf32>
    %74 = vector.extract_strided_slice %73 {offsets = [0, 1809], sizes = [8, 239], strides = [1, 1]} : vector<8x2048xf32> to vector<8x239xf32>
    %75 = vector.extract_strided_slice %73 {offsets = [0, 0], sizes = [8, 1809], strides = [1, 1]} : vector<8x2048xf32> to vector<8x1809xf32>
    %76 = tpu.concatenate %74, %75 in 1 : vector<8x239xf32>, vector<8x1809xf32> -> vector<8x2048xf32>
    %c8_44 = arith.constant 8 : index
    %c0_45 = arith.constant 0 : index
    %77 = vector.load %arg3[%c8_44, %c0_45] : memref<27x2048xf32, #tpu.memory_space<vmem>>, vector<1x2048xf32>
    %78 = vector.broadcast %77 : vector<1x2048xf32> to vector<8x2048xf32>
    %79 = arith.mulf %76, %78 : vector<8x2048xf32>
    %c64 = arith.constant 64 : index
    %c0_46 = arith.constant 0 : index
    %80 = vector.load %arg9[%c64, %c0_46] : memref<216x2048xf32, #tpu.memory_space<vmem>>, vector<8x2048xf32>
    tpu.vector_store %arg9[%c64, %c0_46], %79 {strides = array<i32>} : memref<216x2048xf32, #tpu.memory_space<vmem>>, vector<8x2048xf32>,
    %c0_47 = arith.constant 0 : index
    %c0_48 = arith.constant 0 : index
    %c0_49 = arith.constant 0 : index
    %81 = vector.load %arg1[%c0_47, %c0_48, %c0_49] : memref<1x8x2048xf32, #tpu.memory_space<vmem>>, vector<1x8x2048xf32>
    %82 = vector.shape_cast %81 : vector<1x8x2048xf32> to vector<8x2048xf32>
    %83 = vector.extract_strided_slice %82 {offsets = [0, 2031], sizes = [8, 17], strides = [1, 1]} : vector<8x2048xf32> to vector<8x17xf32>
    %84 = vector.extract_strided_slice %82 {offsets = [0, 0], sizes = [8, 2031], strides = [1, 1]} : vector<8x2048xf32> to vector<8x2031xf32>
    %85 = tpu.concatenate %83, %84 in 1 : vector<8x17xf32>, vector<8x2031xf32> -> vector<8x2048xf32>
    %c9 = arith.constant 9 : index
    %c0_50 = arith.constant 0 : index
    %86 = vector.load %arg3[%c9, %c0_50] : memref<27x2048xf32, #tpu.memory_space<vmem>>, vector<1x2048xf32>
    %87 = vector.broadcast %86 : vector<1x2048xf32> to vector<8x2048xf32>
    %88 = arith.mulf %85, %87 : vector<8x2048xf32>
    %c72 = arith.constant 72 : index
    %c0_51 = arith.constant 0 : index
    %89 = vector.load %arg9[%c72, %c0_51] : memref<216x2048xf32, #tpu.memory_space<vmem>>, vector<8x2048xf32>
    tpu.vector_store %arg9[%c72, %c0_51], %88 {strides = array<i32>} : memref<216x2048xf32, #tpu.memory_space<vmem>>, vector<8x2048xf32>,
    %c0_52 = arith.constant 0 : index
    %c0_53 = arith.constant 0 : index
    %c0_54 = arith.constant 0 : index
    %90 = vector.load %arg1[%c0_52, %c0_53, %c0_54] : memref<1x8x2048xf32, #tpu.memory_space<vmem>>, vector<1x8x2048xf32>
    %91 = vector.shape_cast %90 : vector<1x8x2048xf32> to vector<8x2048xf32>
    %92 = vector.extract_strided_slice %91 {offsets = [0, 2032], sizes = [8, 16], strides = [1, 1]} : vector<8x2048xf32> to vector<8x16xf32>
    %93 = vector.extract_strided_slice %91 {offsets = [0, 0], sizes = [8, 2032], strides = [1, 1]} : vector<8x2048xf32> to vector<8x2032xf32>
    %94 = tpu.concatenate %92, %93 in 1 : vector<8x16xf32>, vector<8x2032xf32> -> vector<8x2048xf32>
    %c10 = arith.constant 10 : index
    %c0_55 = arith.constant 0 : index
    %95 = vector.load %arg3[%c10, %c0_55] : memref<27x2048xf32, #tpu.memory_space<vmem>>, vector<1x2048xf32>
    %96 = vector.broadcast %95 : vector<1x2048xf32> to vector<8x2048xf32>
    %97 = arith.mulf %94, %96 : vector<8x2048xf32>
    %c80 = arith.constant 80 : index
    %c0_56 = arith.constant 0 : index
    %98 = vector.load %arg9[%c80, %c0_56] : memref<216x2048xf32, #tpu.memory_space<vmem>>, vector<8x2048xf32>
    tpu.vector_store %arg9[%c80, %c0_56], %97 {strides = array<i32>} : memref<216x2048xf32, #tpu.memory_space<vmem>>, vector<8x2048xf32>,
    %c0_57 = arith.constant 0 : index
    %c0_58 = arith.constant 0 : index
    %c0_59 = arith.constant 0 : index
    %99 = vector.load %arg1[%c0_57, %c0_58, %c0_59] : memref<1x8x2048xf32, #tpu.memory_space<vmem>>, vector<1x8x2048xf32>
    %100 = vector.shape_cast %99 : vector<1x8x2048xf32> to vector<8x2048xf32>
    %101 = vector.extract_strided_slice %100 {offsets = [0, 2033], sizes = [8, 15], strides = [1, 1]} : vector<8x2048xf32> to vector<8x15xf32>
    %102 = vector.extract_strided_slice %100 {offsets = [0, 0], sizes = [8, 2033], strides = [1, 1]} : vector<8x2048xf32> to vector<8x2033xf32>
    %103 = tpu.concatenate %101, %102 in 1 : vector<8x15xf32>, vector<8x2033xf32> -> vector<8x2048xf32>
    %c11 = arith.constant 11 : index
    %c0_60 = arith.constant 0 : index
    %104 = vector.load %arg3[%c11, %c0_60] : memref<27x2048xf32, #tpu.memory_space<vmem>>, vector<1x2048xf32>
    %105 = vector.broadcast %104 : vector<1x2048xf32> to vector<8x2048xf32>
    %106 = arith.mulf %103, %105 : vector<8x2048xf32>
    %c88 = arith.constant 88 : index
    %c0_61 = arith.constant 0 : index
    %107 = vector.load %arg9[%c88, %c0_61] : memref<216x2048xf32, #tpu.memory_space<vmem>>, vector<8x2048xf32>
    tpu.vector_store %arg9[%c88, %c0_61], %106 {strides = array<i32>} : memref<216x2048xf32, #tpu.memory_space<vmem>>, vector<8x2048xf32>,
    %c0_62 = arith.constant 0 : index
    %c0_63 = arith.constant 0 : index
    %c0_64 = arith.constant 0 : index
    %108 = vector.load %arg1[%c0_62, %c0_63, %c0_64] : memref<1x8x2048xf32, #tpu.memory_space<vmem>>, vector<1x8x2048xf32>
    %109 = vector.shape_cast %108 : vector<1x8x2048xf32> to vector<8x2048xf32>
    %110 = vector.extract_strided_slice %109 {offsets = [0, 2047], sizes = [8, 1], strides = [1, 1]} : vector<8x2048xf32> to vector<8x1xf32>
    %111 = vector.extract_strided_slice %109 {offsets = [0, 0], sizes = [8, 2047], strides = [1, 1]} : vector<8x2048xf32> to vector<8x2047xf32>
    %112 = tpu.concatenate %110, %111 in 1 : vector<8x1xf32>, vector<8x2047xf32> -> vector<8x2048xf32>
    %c12 = arith.constant 12 : index
    %c0_65 = arith.constant 0 : index
    %113 = vector.load %arg3[%c12, %c0_65] : memref<27x2048xf32, #tpu.memory_space<vmem>>, vector<1x2048xf32>
    %114 = vector.broadcast %113 : vector<1x2048xf32> to vector<8x2048xf32>
    %115 = arith.mulf %112, %114 : vector<8x2048xf32>
    %c96 = arith.constant 96 : index
    %c0_66 = arith.constant 0 : index
    %116 = vector.load %arg9[%c96, %c0_66] : memref<216x2048xf32, #tpu.memory_space<vmem>>, vector<8x2048xf32>
    tpu.vector_store %arg9[%c96, %c0_66], %115 {strides = array<i32>} : memref<216x2048xf32, #tpu.memory_space<vmem>>, vector<8x2048xf32>,
    %c0_67 = arith.constant 0 : index
    %c0_68 = arith.constant 0 : index
    %c0_69 = arith.constant 0 : index
    %117 = vector.load %arg1[%c0_67, %c0_68, %c0_69] : memref<1x8x2048xf32, #tpu.memory_space<vmem>>, vector<1x8x2048xf32>
    %118 = vector.shape_cast %117 : vector<1x8x2048xf32> to vector<8x2048xf32>
    %c13 = arith.constant 13 : index
    %c0_70 = arith.constant 0 : index
    %119 = vector.load %arg3[%c13, %c0_70] : memref<27x2048xf32, #tpu.memory_space<vmem>>, vector<1x2048xf32>
    %120 = vector.broadcast %119 : vector<1x2048xf32> to vector<8x2048xf32>
    %121 = arith.mulf %118, %120 : vector<8x2048xf32>
    %c104 = arith.constant 104 : index
    %c0_71 = arith.constant 0 : index
    %122 = vector.load %arg9[%c104, %c0_71] : memref<216x2048xf32, #tpu.memory_space<vmem>>, vector<8x2048xf32>
    tpu.vector_store %arg9[%c104, %c0_71], %121 {strides = array<i32>} : memref<216x2048xf32, #tpu.memory_space<vmem>>, vector<8x2048xf32>,
    %c0_72 = arith.constant 0 : index
    %c0_73 = arith.constant 0 : index
    %c0_74 = arith.constant 0 : index
    %123 = vector.load %arg1[%c0_72, %c0_73, %c0_74] : memref<1x8x2048xf32, #tpu.memory_space<vmem>>, vector<1x8x2048xf32>
    %124 = vector.shape_cast %123 : vector<1x8x2048xf32> to vector<8x2048xf32>
    %125 = vector.extract_strided_slice %124 {offsets = [0, 1], sizes = [8, 2047], strides = [1, 1]} : vector<8x2048xf32> to vector<8x2047xf32>
    %126 = vector.extract_strided_slice %124 {offsets = [0, 0], sizes = [8, 1], strides = [1, 1]} : vector<8x2048xf32> to vector<8x1xf32>
    %127 = tpu.concatenate %125, %126 in 1 : vector<8x2047xf32>, vector<8x1xf32> -> vector<8x2048xf32>
    %c14 = arith.constant 14 : index
    %c0_75 = arith.constant 0 : index
    %128 = vector.load %arg3[%c14, %c0_75] : memref<27x2048xf32, #tpu.memory_space<vmem>>, vector<1x2048xf32>
    %129 = vector.broadcast %128 : vector<1x2048xf32> to vector<8x2048xf32>
    %130 = arith.mulf %127, %129 : vector<8x2048xf32>
    %c112 = arith.constant 112 : index
    %c0_76 = arith.constant 0 : index
    %131 = vector.load %arg9[%c112, %c0_76] : memref<216x2048xf32, #tpu.memory_space<vmem>>, vector<8x2048xf32>
    tpu.vector_store %arg9[%c112, %c0_76], %130 {strides = array<i32>} : memref<216x2048xf32, #tpu.memory_space<vmem>>, vector<8x2048xf32>,
    %c0_77 = arith.constant 0 : index
    %c0_78 = arith.constant 0 : index
    %c0_79 = arith.constant 0 : index
    %132 = vector.load %arg1[%c0_77, %c0_78, %c0_79] : memref<1x8x2048xf32, #tpu.memory_space<vmem>>, vector<1x8x2048xf32>
    %133 = vector.shape_cast %132 : vector<1x8x2048xf32> to vector<8x2048xf32>
    %134 = vector.extract_strided_slice %133 {offsets = [0, 15], sizes = [8, 2033], strides = [1, 1]} : vector<8x2048xf32> to vector<8x2033xf32>
    %135 = vector.extract_strided_slice %133 {offsets = [0, 0], sizes = [8, 15], strides = [1, 1]} : vector<8x2048xf32> to vector<8x15xf32>
    %136 = tpu.concatenate %134, %135 in 1 : vector<8x2033xf32>, vector<8x15xf32> -> vector<8x2048xf32>
    %c15 = arith.constant 15 : index
    %c0_80 = arith.constant 0 : index
    %137 = vector.load %arg3[%c15, %c0_80] : memref<27x2048xf32, #tpu.memory_space<vmem>>, vector<1x2048xf32>
    %138 = vector.broadcast %137 : vector<1x2048xf32> to vector<8x2048xf32>
    %139 = arith.mulf %136, %138 : vector<8x2048xf32>
    %c120 = arith.constant 120 : index
    %c0_81 = arith.constant 0 : index
    %140 = vector.load %arg9[%c120, %c0_81] : memref<216x2048xf32, #tpu.memory_space<vmem>>, vector<8x2048xf32>
    tpu.vector_store %arg9[%c120, %c0_81], %139 {strides = array<i32>} : memref<216x2048xf32, #tpu.memory_space<vmem>>, vector<8x2048xf32>,
    %c0_82 = arith.constant 0 : index
    %c0_83 = arith.constant 0 : index
    %c0_84 = arith.constant 0 : index
    %141 = vector.load %arg1[%c0_82, %c0_83, %c0_84] : memref<1x8x2048xf32, #tpu.memory_space<vmem>>, vector<1x8x2048xf32>
    %142 = vector.shape_cast %141 : vector<1x8x2048xf32> to vector<8x2048xf32>
    %143 = vector.extract_strided_slice %142 {offsets = [0, 16], sizes = [8, 2032], strides = [1, 1]} : vector<8x2048xf32> to vector<8x2032xf32>
    %144 = vector.extract_strided_slice %142 {offsets = [0, 0], sizes = [8, 16], strides = [1, 1]} : vector<8x2048xf32> to vector<8x16xf32>
    %145 = tpu.concatenate %143, %144 in 1 : vector<8x2032xf32>, vector<8x16xf32> -> vector<8x2048xf32>
    %c16_85 = arith.constant 16 : index
    %c0_86 = arith.constant 0 : index
    %146 = vector.load %arg3[%c16_85, %c0_86] : memref<27x2048xf32, #tpu.memory_space<vmem>>, vector<1x2048xf32>
    %147 = vector.broadcast %146 : vector<1x2048xf32> to vector<8x2048xf32>
    %148 = arith.mulf %145, %147 : vector<8x2048xf32>
    %c128 = arith.constant 128 : index
    %c0_87 = arith.constant 0 : index
    %149 = vector.load %arg9[%c128, %c0_87] : memref<216x2048xf32, #tpu.memory_space<vmem>>, vector<8x2048xf32>
    tpu.vector_store %arg9[%c128, %c0_87], %148 {strides = array<i32>} : memref<216x2048xf32, #tpu.memory_space<vmem>>, vector<8x2048xf32>,
    %c0_88 = arith.constant 0 : index
    %c0_89 = arith.constant 0 : index
    %c0_90 = arith.constant 0 : index
    %150 = vector.load %arg1[%c0_88, %c0_89, %c0_90] : memref<1x8x2048xf32, #tpu.memory_space<vmem>>, vector<1x8x2048xf32>
    %151 = vector.shape_cast %150 : vector<1x8x2048xf32> to vector<8x2048xf32>
    %152 = vector.extract_strided_slice %151 {offsets = [0, 17], sizes = [8, 2031], strides = [1, 1]} : vector<8x2048xf32> to vector<8x2031xf32>
    %153 = vector.extract_strided_slice %151 {offsets = [0, 0], sizes = [8, 17], strides = [1, 1]} : vector<8x2048xf32> to vector<8x17xf32>
    %154 = tpu.concatenate %152, %153 in 1 : vector<8x2031xf32>, vector<8x17xf32> -> vector<8x2048xf32>
    %c17 = arith.constant 17 : index
    %c0_91 = arith.constant 0 : index
    %155 = vector.load %arg3[%c17, %c0_91] : memref<27x2048xf32, #tpu.memory_space<vmem>>, vector<1x2048xf32>
    %156 = vector.broadcast %155 : vector<1x2048xf32> to vector<8x2048xf32>
    %157 = arith.mulf %154, %156 : vector<8x2048xf32>
    %c136 = arith.constant 136 : index
    %c0_92 = arith.constant 0 : index
    %158 = vector.load %arg9[%c136, %c0_92] : memref<216x2048xf32, #tpu.memory_space<vmem>>, vector<8x2048xf32>
    tpu.vector_store %arg9[%c136, %c0_92], %157 {strides = array<i32>} : memref<216x2048xf32, #tpu.memory_space<vmem>>, vector<8x2048xf32>,
    %c0_93 = arith.constant 0 : index
    %c0_94 = arith.constant 0 : index
    %c0_95 = arith.constant 0 : index
    %159 = vector.load %arg1[%c0_93, %c0_94, %c0_95] : memref<1x8x2048xf32, #tpu.memory_space<vmem>>, vector<1x8x2048xf32>
    %160 = vector.shape_cast %159 : vector<1x8x2048xf32> to vector<8x2048xf32>
    %161 = vector.extract_strided_slice %160 {offsets = [0, 239], sizes = [8, 1809], strides = [1, 1]} : vector<8x2048xf32> to vector<8x1809xf32>
    %162 = vector.extract_strided_slice %160 {offsets = [0, 0], sizes = [8, 239], strides = [1, 1]} : vector<8x2048xf32> to vector<8x239xf32>
    %163 = tpu.concatenate %161, %162 in 1 : vector<8x1809xf32>, vector<8x239xf32> -> vector<8x2048xf32>
    %c18 = arith.constant 18 : index
    %c0_96 = arith.constant 0 : index
    %164 = vector.load %arg3[%c18, %c0_96] : memref<27x2048xf32, #tpu.memory_space<vmem>>, vector<1x2048xf32>
    %165 = vector.broadcast %164 : vector<1x2048xf32> to vector<8x2048xf32>
    %166 = arith.mulf %163, %165 : vector<8x2048xf32>
    %c144 = arith.constant 144 : index
    %c0_97 = arith.constant 0 : index
    %167 = vector.load %arg9[%c144, %c0_97] : memref<216x2048xf32, #tpu.memory_space<vmem>>, vector<8x2048xf32>
    tpu.vector_store %arg9[%c144, %c0_97], %166 {strides = array<i32>} : memref<216x2048xf32, #tpu.memory_space<vmem>>, vector<8x2048xf32>,
    %c0_98 = arith.constant 0 : index
    %c0_99 = arith.constant 0 : index
    %c0_100 = arith.constant 0 : index
    %168 = vector.load %arg1[%c0_98, %c0_99, %c0_100] : memref<1x8x2048xf32, #tpu.memory_space<vmem>>, vector<1x8x2048xf32>
    %169 = vector.shape_cast %168 : vector<1x8x2048xf32> to vector<8x2048xf32>
    %170 = vector.extract_strided_slice %169 {offsets = [0, 240], sizes = [8, 1808], strides = [1, 1]} : vector<8x2048xf32> to vector<8x1808xf32>
    %171 = vector.extract_strided_slice %169 {offsets = [0, 0], sizes = [8, 240], strides = [1, 1]} : vector<8x2048xf32> to vector<8x240xf32>
    %172 = tpu.concatenate %170, %171 in 1 : vector<8x1808xf32>, vector<8x240xf32> -> vector<8x2048xf32>
    %c19 = arith.constant 19 : index
    %c0_101 = arith.constant 0 : index
    %173 = vector.load %arg3[%c19, %c0_101] : memref<27x2048xf32, #tpu.memory_space<vmem>>, vector<1x2048xf32>
    %174 = vector.broadcast %173 : vector<1x2048xf32> to vector<8x2048xf32>
    %175 = arith.mulf %172, %174 : vector<8x2048xf32>
    %c152 = arith.constant 152 : index
    %c0_102 = arith.constant 0 : index
    %176 = vector.load %arg9[%c152, %c0_102] : memref<216x2048xf32, #tpu.memory_space<vmem>>, vector<8x2048xf32>
    tpu.vector_store %arg9[%c152, %c0_102], %175 {strides = array<i32>} : memref<216x2048xf32, #tpu.memory_space<vmem>>, vector<8x2048xf32>,
    %c0_103 = arith.constant 0 : index
    %c0_104 = arith.constant 0 : index
    %c0_105 = arith.constant 0 : index
    %177 = vector.load %arg1[%c0_103, %c0_104, %c0_105] : memref<1x8x2048xf32, #tpu.memory_space<vmem>>, vector<1x8x2048xf32>
    %178 = vector.shape_cast %177 : vector<1x8x2048xf32> to vector<8x2048xf32>
    %179 = vector.extract_strided_slice %178 {offsets = [0, 241], sizes = [8, 1807], strides = [1, 1]} : vector<8x2048xf32> to vector<8x1807xf32>
    %180 = vector.extract_strided_slice %178 {offsets = [0, 0], sizes = [8, 241], strides = [1, 1]} : vector<8x2048xf32> to vector<8x241xf32>
    %181 = tpu.concatenate %179, %180 in 1 : vector<8x1807xf32>, vector<8x241xf32> -> vector<8x2048xf32>
    %c20 = arith.constant 20 : index
    %c0_106 = arith.constant 0 : index
    %182 = vector.load %arg3[%c20, %c0_106] : memref<27x2048xf32, #tpu.memory_space<vmem>>, vector<1x2048xf32>
    %183 = vector.broadcast %182 : vector<1x2048xf32> to vector<8x2048xf32>
    %184 = arith.mulf %181, %183 : vector<8x2048xf32>
    %c160 = arith.constant 160 : index
    %c0_107 = arith.constant 0 : index
    %185 = vector.load %arg9[%c160, %c0_107] : memref<216x2048xf32, #tpu.memory_space<vmem>>, vector<8x2048xf32>
    tpu.vector_store %arg9[%c160, %c0_107], %184 {strides = array<i32>} : memref<216x2048xf32, #tpu.memory_space<vmem>>, vector<8x2048xf32>,
    %c0_108 = arith.constant 0 : index
    %c0_109 = arith.constant 0 : index
    %c0_110 = arith.constant 0 : index
    %186 = vector.load %arg1[%c0_108, %c0_109, %c0_110] : memref<1x8x2048xf32, #tpu.memory_space<vmem>>, vector<1x8x2048xf32>
    %187 = vector.shape_cast %186 : vector<1x8x2048xf32> to vector<8x2048xf32>
    %188 = vector.extract_strided_slice %187 {offsets = [0, 255], sizes = [8, 1793], strides = [1, 1]} : vector<8x2048xf32> to vector<8x1793xf32>
    %189 = vector.extract_strided_slice %187 {offsets = [0, 0], sizes = [8, 255], strides = [1, 1]} : vector<8x2048xf32> to vector<8x255xf32>
    %190 = tpu.concatenate %188, %189 in 1 : vector<8x1793xf32>, vector<8x255xf32> -> vector<8x2048xf32>
    %c21 = arith.constant 21 : index
    %c0_111 = arith.constant 0 : index
    %191 = vector.load %arg3[%c21, %c0_111] : memref<27x2048xf32, #tpu.memory_space<vmem>>, vector<1x2048xf32>
    %192 = vector.broadcast %191 : vector<1x2048xf32> to vector<8x2048xf32>
    %193 = arith.mulf %190, %192 : vector<8x2048xf32>
    %c168 = arith.constant 168 : index
    %c0_112 = arith.constant 0 : index
    %194 = vector.load %arg9[%c168, %c0_112] : memref<216x2048xf32, #tpu.memory_space<vmem>>, vector<8x2048xf32>
    tpu.vector_store %arg9[%c168, %c0_112], %193 {strides = array<i32>} : memref<216x2048xf32, #tpu.memory_space<vmem>>, vector<8x2048xf32>,
    %c0_113 = arith.constant 0 : index
    %c0_114 = arith.constant 0 : index
    %c0_115 = arith.constant 0 : index
    %195 = vector.load %arg1[%c0_113, %c0_114, %c0_115] : memref<1x8x2048xf32, #tpu.memory_space<vmem>>, vector<1x8x2048xf32>
    %196 = vector.shape_cast %195 : vector<1x8x2048xf32> to vector<8x2048xf32>
    %197 = vector.extract_strided_slice %196 {offsets = [0, 256], sizes = [8, 1792], strides = [1, 1]} : vector<8x2048xf32> to vector<8x1792xf32>
    %198 = vector.extract_strided_slice %196 {offsets = [0, 0], sizes = [8, 256], strides = [1, 1]} : vector<8x2048xf32> to vector<8x256xf32>
    %199 = tpu.concatenate %197, %198 in 1 : vector<8x1792xf32>, vector<8x256xf32> -> vector<8x2048xf32>
    %c22 = arith.constant 22 : index
    %c0_116 = arith.constant 0 : index
    %200 = vector.load %arg3[%c22, %c0_116] : memref<27x2048xf32, #tpu.memory_space<vmem>>, vector<1x2048xf32>
    %201 = vector.broadcast %200 : vector<1x2048xf32> to vector<8x2048xf32>
    %202 = arith.mulf %199, %201 : vector<8x2048xf32>
    %c176 = arith.constant 176 : index
    %c0_117 = arith.constant 0 : index
    %203 = vector.load %arg9[%c176, %c0_117] : memref<216x2048xf32, #tpu.memory_space<vmem>>, vector<8x2048xf32>
    tpu.vector_store %arg9[%c176, %c0_117], %202 {strides = array<i32>} : memref<216x2048xf32, #tpu.memory_space<vmem>>, vector<8x2048xf32>,
    %c0_118 = arith.constant 0 : index
    %c0_119 = arith.constant 0 : index
    %c0_120 = arith.constant 0 : index
    %204 = vector.load %arg1[%c0_118, %c0_119, %c0_120] : memref<1x8x2048xf32, #tpu.memory_space<vmem>>, vector<1x8x2048xf32>
    %205 = vector.shape_cast %204 : vector<1x8x2048xf32> to vector<8x2048xf32>
    %206 = vector.extract_strided_slice %205 {offsets = [0, 257], sizes = [8, 1791], strides = [1, 1]} : vector<8x2048xf32> to vector<8x1791xf32>
    %207 = vector.extract_strided_slice %205 {offsets = [0, 0], sizes = [8, 257], strides = [1, 1]} : vector<8x2048xf32> to vector<8x257xf32>
    %208 = tpu.concatenate %206, %207 in 1 : vector<8x1791xf32>, vector<8x257xf32> -> vector<8x2048xf32>
    %c23 = arith.constant 23 : index
    %c0_121 = arith.constant 0 : index
    %209 = vector.load %arg3[%c23, %c0_121] : memref<27x2048xf32, #tpu.memory_space<vmem>>, vector<1x2048xf32>
    %210 = vector.broadcast %209 : vector<1x2048xf32> to vector<8x2048xf32>
    %211 = arith.mulf %208, %210 : vector<8x2048xf32>
    %c184 = arith.constant 184 : index
    %c0_122 = arith.constant 0 : index
    %212 = vector.load %arg9[%c184, %c0_122] : memref<216x2048xf32, #tpu.memory_space<vmem>>, vector<8x2048xf32>
    tpu.vector_store %arg9[%c184, %c0_122], %211 {strides = array<i32>} : memref<216x2048xf32, #tpu.memory_space<vmem>>, vector<8x2048xf32>,
    %c0_123 = arith.constant 0 : index
    %c0_124 = arith.constant 0 : index
    %c0_125 = arith.constant 0 : index
    %213 = vector.load %arg1[%c0_123, %c0_124, %c0_125] : memref<1x8x2048xf32, #tpu.memory_space<vmem>>, vector<1x8x2048xf32>
    %214 = vector.shape_cast %213 : vector<1x8x2048xf32> to vector<8x2048xf32>
    %215 = vector.extract_strided_slice %214 {offsets = [0, 271], sizes = [8, 1777], strides = [1, 1]} : vector<8x2048xf32> to vector<8x1777xf32>
    %216 = vector.extract_strided_slice %214 {offsets = [0, 0], sizes = [8, 271], strides = [1, 1]} : vector<8x2048xf32> to vector<8x271xf32>
    %217 = tpu.concatenate %215, %216 in 1 : vector<8x1777xf32>, vector<8x271xf32> -> vector<8x2048xf32>
    %c24_126 = arith.constant 24 : index
    %c0_127 = arith.constant 0 : index
    %218 = vector.load %arg3[%c24_126, %c0_127] : memref<27x2048xf32, #tpu.memory_space<vmem>>, vector<1x2048xf32>
    %219 = vector.broadcast %218 : vector<1x2048xf32> to vector<8x2048xf32>
    %220 = arith.mulf %217, %219 : vector<8x2048xf32>
    %c192 = arith.constant 192 : index
    %c0_128 = arith.constant 0 : index
    %221 = vector.load %arg9[%c192, %c0_128] : memref<216x2048xf32, #tpu.memory_space<vmem>>, vector<8x2048xf32>
    tpu.vector_store %arg9[%c192, %c0_128], %220 {strides = array<i32>} : memref<216x2048xf32, #tpu.memory_space<vmem>>, vector<8x2048xf32>,
    %c0_129 = arith.constant 0 : index
    %c0_130 = arith.constant 0 : index
    %c0_131 = arith.constant 0 : index
    %222 = vector.load %arg1[%c0_129, %c0_130, %c0_131] : memref<1x8x2048xf32, #tpu.memory_space<vmem>>, vector<1x8x2048xf32>
    %223 = vector.shape_cast %222 : vector<1x8x2048xf32> to vector<8x2048xf32>
    %224 = vector.extract_strided_slice %223 {offsets = [0, 272], sizes = [8, 1776], strides = [1, 1]} : vector<8x2048xf32> to vector<8x1776xf32>
    %225 = vector.extract_strided_slice %223 {offsets = [0, 0], sizes = [8, 272], strides = [1, 1]} : vector<8x2048xf32> to vector<8x272xf32>
    %226 = tpu.concatenate %224, %225 in 1 : vector<8x1776xf32>, vector<8x272xf32> -> vector<8x2048xf32>
    %c25 = arith.constant 25 : index
    %c0_132 = arith.constant 0 : index
    %227 = vector.load %arg3[%c25, %c0_132] : memref<27x2048xf32, #tpu.memory_space<vmem>>, vector<1x2048xf32>
    %228 = vector.broadcast %227 : vector<1x2048xf32> to vector<8x2048xf32>
    %229 = arith.mulf %226, %228 : vector<8x2048xf32>
    %c200 = arith.constant 200 : index
    %c0_133 = arith.constant 0 : index
    %230 = vector.load %arg9[%c200, %c0_133] : memref<216x2048xf32, #tpu.memory_space<vmem>>, vector<8x2048xf32>
    tpu.vector_store %arg9[%c200, %c0_133], %229 {strides = array<i32>} : memref<216x2048xf32, #tpu.memory_space<vmem>>, vector<8x2048xf32>,
    %c0_134 = arith.constant 0 : index
    %c0_135 = arith.constant 0 : index
    %c0_136 = arith.constant 0 : index
    %231 = vector.load %arg1[%c0_134, %c0_135, %c0_136] : memref<1x8x2048xf32, #tpu.memory_space<vmem>>, vector<1x8x2048xf32>
    %232 = vector.shape_cast %231 : vector<1x8x2048xf32> to vector<8x2048xf32>
    %233 = vector.extract_strided_slice %232 {offsets = [0, 273], sizes = [8, 1775], strides = [1, 1]} : vector<8x2048xf32> to vector<8x1775xf32>
    %234 = vector.extract_strided_slice %232 {offsets = [0, 0], sizes = [8, 273], strides = [1, 1]} : vector<8x2048xf32> to vector<8x273xf32>
    %235 = tpu.concatenate %233, %234 in 1 : vector<8x1775xf32>, vector<8x273xf32> -> vector<8x2048xf32>
    %c26 = arith.constant 26 : index
    %c0_137 = arith.constant 0 : index
    %236 = vector.load %arg3[%c26, %c0_137] : memref<27x2048xf32, #tpu.memory_space<vmem>>, vector<1x2048xf32>
    %237 = vector.broadcast %236 : vector<1x2048xf32> to vector<8x2048xf32>
    %238 = arith.mulf %235, %237 : vector<8x2048xf32>
    %c208 = arith.constant 208 : index
    %c0_138 = arith.constant 0 : index
    %239 = vector.load %arg9[%c208, %c0_138] : memref<216x2048xf32, #tpu.memory_space<vmem>>, vector<8x2048xf32>
    tpu.vector_store %arg9[%c208, %c0_138], %238 {strides = array<i32>} : memref<216x2048xf32, #tpu.memory_space<vmem>>, vector<8x2048xf32>,
    %c0_139 = arith.constant 0 : index
    %c0_140 = arith.constant 0 : index
    %240 = vector.load %arg2[%c0_139, %c0_140] : memref<8x216xf32, #tpu.memory_space<vmem>>, vector<8x216xf32>
    %c0_141 = arith.constant 0 : index
    %c0_142 = arith.constant 0 : index
    %241 = vector.load %arg9[%c0_141, %c0_142] : memref<216x2048xf32, #tpu.memory_space<vmem>>, vector<216x2048xf32>
    %cst = arith.constant dense<0.000000e+00> : vector<8x2048xf32>
    %242 = tpu.matmul %240, %241, %cst {dimension_numbers = #tpu.dot_dimension_numbers<[1], [0], [0], [1], [0, 0, 1, 1], [], []>} : vector<8x216xf32>, vector<216x2048xf32>, vector<8x2048xf32> -> vector<8x2048xf32>
    %c0_143 = arith.constant 0 : index
    %c0_144 = arith.constant 0 : index
    %243 = vector.load %arg4[%c0_143, %c0_144] : memref<8x1xf32, #tpu.memory_space<vmem>>, vector<8x1xf32>
    %244 = vector.broadcast %243 : vector<8x1xf32> to vector<8x2048xf32>
    %245 = arith.addf %242, %244 : vector<8x2048xf32>
    %c0_145 = arith.constant 0 : index
    %c0_146 = arith.constant 0 : index
    %c0_147 = arith.constant 0 : index
    %246 = vector.load %arg7[%c0_145, %c0_146, %c0_147] : memref<1x8x1xf32, #tpu.memory_space<vmem>>, vector<1x8x1xf32>
    %247 = vector.shape_cast %246 : vector<1x8x1xf32> to vector<8x1xf32>
    %248 = vector.broadcast %247 : vector<8x1xf32> to vector<8x2048xf32>
    %249 = arith.mulf %245, %248 : vector<8x2048xf32>
    %cst_148 = arith.constant dense<0.000000e+00> : vector<8xf32>
    %250 = vector.multi_reduction <add>, %249, %cst_148 [1] : vector<8x2048xf32> to vector<8xf32>
    %251 = vector.shape_cast %250 : vector<8xf32> to vector<8x1xf32>
    %cst_149 = arith.constant 4.8828125E-4 : f32
    %252 = vector.broadcast %cst_149 : f32 to vector<8x1xf32>
    %253 = arith.mulf %251, %252 : vector<8x1xf32>
    %254 = arith.mulf %249, %249 : vector<8x2048xf32>
    %cst_150 = arith.constant dense<0.000000e+00> : vector<8xf32>
    %255 = vector.multi_reduction <add>, %254, %cst_150 [1] : vector<8x2048xf32> to vector<8xf32>
    %256 = vector.shape_cast %255 : vector<8xf32> to vector<8x1xf32>
    %cst_151 = arith.constant 4.8828125E-4 : f32
    %257 = vector.broadcast %cst_151 : f32 to vector<8x1xf32>
    %258 = arith.mulf %256, %257 : vector<8x1xf32>
    %259 = arith.mulf %253, %253 : vector<8x1xf32>
    %260 = arith.subf %258, %259 : vector<8x1xf32>
    %cst_152 = arith.constant 9.99999974E-6 : f32
    %261 = vector.broadcast %cst_152 : f32 to vector<8x1xf32>
    %262 = arith.addf %260, %261 : vector<8x1xf32>
    %263 = math.rsqrt %262 : vector<8x1xf32>
    %c0_153 = arith.constant 0 : index
    %c0_154 = arith.constant 0 : index
    %264 = vector.load %arg5[%c0_153, %c0_154] : memref<8x1xf32, #tpu.memory_space<vmem>>, vector<8x1xf32>
    %265 = arith.mulf %263, %264 : vector<8x1xf32>
    %c0_155 = arith.constant 0 : index
    %c0_156 = arith.constant 0 : index
    %266 = vector.load %arg6[%c0_155, %c0_156] : memref<8x1xf32, #tpu.memory_space<vmem>>, vector<8x1xf32>
    %267 = arith.mulf %253, %265 : vector<8x1xf32>
    %268 = arith.subf %266, %267 : vector<8x1xf32>
    %269 = vector.broadcast %265 : vector<8x1xf32> to vector<8x2048xf32>
    %270 = arith.mulf %249, %269 : vector<8x2048xf32>
    %271 = vector.broadcast %268 : vector<8x1xf32> to vector<8x2048xf32>
    %272 = arith.addf %270, %271 : vector<8x2048xf32>
    %cst_157 = arith.constant 0.000000e+00 : f32
    %273 = vector.broadcast %cst_157 : f32 to vector<8x2048xf32>
    %274 = arith.cmpf oge, %272, %273 : vector<8x2048xf32>
    %cst_158 = arith.constant 0.00999999977 : f32
    %275 = vector.broadcast %cst_158 : f32 to vector<8x2048xf32>
    %276 = arith.mulf %272, %275 : vector<8x2048xf32>
    %277 = arith.select %274, %272, %276 : vector<8x2048xi1>, vector<8x2048xf32>
    %c0_159 = arith.constant 0 : index
    %c0_160 = arith.constant 0 : index
    %c0_161 = arith.constant 0 : index
    %278 = vector.load %arg8[%c0_159, %c0_160, %c0_161] : memref<1x8x2048xf32, #tpu.memory_space<vmem>>, vector<1x8x2048xf32>
    %279 = vector.shape_cast %278 : vector<1x8x2048xf32> to vector<8x2048xf32>
    %280 = vector.shape_cast %277 : vector<8x2048xf32> to vector<1x8x2048xf32>
    tpu.vector_store %arg8[%c0_159, %c0_160, %c0_161], %280 {strides = array<i32>} : memref<1x8x2048xf32, #tpu.memory_space<vmem>>, vector<1x8x2048xf32>,
    return
  }
  func.func @transform_0(%arg0: i32) -> (i32, i32, i32) {
    %c0_i32 = arith.constant 0 : i32
    %c0_i32_0 = arith.constant 0 : i32
    %c0_i32_1 = arith.constant 0 : i32
    return %arg0, %c0_i32, %c0_i32_0 : i32, i32, i32
  }
  func.func @transform_1(%arg0: i32) -> (i32, i32) {
    %c0_i32 = arith.constant 0 : i32
    %c0_i32_0 = arith.constant 0 : i32
    %c0_i32_1 = arith.constant 0 : i32
    return %c0_i32, %c0_i32_0 : i32, i32
  }
  func.func @transform_2(%arg0: i32) -> (i32, i32) {
    %c0_i32 = arith.constant 0 : i32
    %c0_i32_0 = arith.constant 0 : i32
    %c0_i32_1 = arith.constant 0 : i32
    return %c0_i32, %c0_i32_0 : i32, i32
  }
  func.func @transform_3(%arg0: i32) -> (i32, i32) {
    %c0_i32 = arith.constant 0 : i32
    %c0_i32_0 = arith.constant 0 : i32
    %c0_i32_1 = arith.constant 0 : i32
    return %c0_i32, %c0_i32_0 : i32, i32
  }
  func.func @transform_4(%arg0: i32) -> (i32, i32) {
    %c0_i32 = arith.constant 0 : i32
    %c0_i32_0 = arith.constant 0 : i32
    %c0_i32_1 = arith.constant 0 : i32
    return %c0_i32, %c0_i32_0 : i32, i32
  }
  func.func @transform_5(%arg0: i32) -> (i32, i32) {
    %c0_i32 = arith.constant 0 : i32
    %c0_i32_0 = arith.constant 0 : i32
    %c0_i32_1 = arith.constant 0 : i32
    return %c0_i32, %c0_i32_0 : i32, i32
  }
  func.func @transform_6(%arg0: i32) -> (i32, i32, i32) {
    %c0_i32 = arith.constant 0 : i32
    %c0_i32_0 = arith.constant 0 : i32
    %c0_i32_1 = arith.constant 0 : i32
    return %arg0, %c0_i32, %c0_i32_0 : i32, i32, i32
  }
  func.func @transform_7(%arg0: i32) -> (i32, i32, i32) {
    %c0_i32 = arith.constant 0 : i32
    %c0_i32_0 = arith.constant 0 : i32
    %c0_i32_1 = arith.constant 0 : i32
    return %arg0, %c0_i32, %c0_i32_0 : i32, i32, i32
  }
}

</mosaic_0001>

<bundles_post_ra>
// kernel: tpu_custom_call.1
= control target key start
LH: loop header
LB: loop body
LE: loop exit
PB: predicated region body
PF: predicated region fallthrough
CT: control target
= control target key end

     0   :  { %12 = vsyncpa [#allocation4], 0  ;;  %s11602_s0 = inlined_call_operand.hbm [shape: f32[2,8,2048], index: 0, kind: input, shape index: {}]   ;;  %s11603_s1 = inlined_call_operand.vmem [shape: f32[8,216], index: 1, kind: input, shape index: {}]   ;;  %s11604_s2 = inlined_call_operand.hbm [shape: f32[27,2048], index: 2, kind: input, shape index: {}]   ;;  %s11605_s3 = inlined_call_operand.vmem [shape: f32[8,1], index: 3, kind: input, shape index: {}]   ;;  %s11606_s4 = inlined_call_operand.vmem [shape: f32[8,1], index: 4, kind: input, shape index: {}]   ;;  %s11607_s5 = inlined_call_operand.vmem [shape: f32[8,1], index: 5, kind: input, shape index: {}]   ;;  %s11608_s6 = inlined_call_operand.vmem [shape: f32[2,8,1], index: 6, kind: input, shape index: {}]   ;;  %s11609_s7 = inlined_call_operand.hbm [shape: f32[2,8,2048], index: 7, kind: output, shape index: {}]  }
   0x1   :  { %14 = vsyncpa [#allocation4 + $0x1], 0 }
   0x2   :  { %15 = vsyncpa [#allocation7], 0 }
   0x3   :  { %16 = vsyncpa [#allocation5], 0 }
   0x4   :  { %18 = vsyncpa [#allocation5 + $0x1], 0  ;;  %s8021_s24 = smov 0   ;;  %s8023_s25 = smov 0  }
   0x5   :  { %s8025_s26 = smov 0   ;;  %s8027_s27 = smov 0  }
   0x6 LB: > { %s8042_s28 = sadd.s32 4294967295, %s7965_s27   ;;  %s7312_s29 = sadd.s32 4294967294, %s7965_s27   ;;  %s7965_s27 = sphi %s8027_s27, %s12089_s27   ;;  %s7961_s26 = sphi %s8025_s26, %s12088_s26   ;;  %s7957_s25 = sphi %s8023_s25, %s12087_s25   ;;  %s7953_s24 = sphi %s8021_s24, %s12086_s24  }
   0x7   : > { %p44_p0 = scmp.ne.s32.totalorder %s7957_s25, %s7953_s24  ;;  %p11610_p1 = scmp.eq.s32.totalorder %s8042_s28, 0 }
   0x8   : > { %p205_p3 = scmp.eq.s32.totalorder %s7312_s29, 1  ;;  %p7313_p5 = scmp.ge.s32.totalorder %s7965_s27, 1 }
   0x9   : > { %p8051_p4 = por %p11610_p1, %p44_p0  ;;  %p212_p7 = scmp.lt.s32.totalorder %s7965_s27, 3 }
   0xa   : > { %p8056_p6 = por %p205_p3, %p44_p0  ;;  %s7967_s10 = smov [#allocation6]  }
   0xb   : > { %s11766_s30 = scalar_select %p8051_p4, 1, 0 }
   0xc   : > { %s11767_s8 = scalar_select %p8056_p6, 1, 0 }
   0xd   : > { %p8061_p8 = pnand %p7313_p5, %p212_p7  ;;  %s227_s11 = sshll.u32 %s7967_s10, 4  ;;  %s8065_s11 = int_to_ptr.vmem [resolvable:$true] %s227_s11 }
   0xe   : > { %s8077_s13 = sadd.s32 1, %s7965_s27   ;;  %s31_s14 = sadd.s32 1, %s7961_s26 }
   0xf   : > { %s11768_s9 = scalar_select %p8061_p8, 1, 0 }
  0x10   : > { %p7763_p9 = pneg %p8061_p8  ;;  %s28_s15 = ssub.s32 %s7965_s27, %s8077_s13 }
  0x11   : > { %s7837_s18 = scalar_lea.hbm %s11604_s2, 8192 }
  0x12   : > { %p8072_p11 = pnand %p7763_p9, %p11610_p1  ;;  %p7838_p12 = scmp.ne.s32.totalorder %s11604_s2, %s7837_s18 }
  0x13   : > { %p7844_p5 = scmp.lt.u32.totalorder %s7837_s18, %s11604_s2 }
  0x14   : > { %p7839_p13 = pneg %p8072_p11 }
  0x16   : > { %p7840_p0 = pnand %p7839_p13, %p7838_p12 }
  0x18   : > { %p7841_p3 = pneg %p7840_p0 }
  0x1a   : > { %p7846_p7 = pnand %p7844_p5, %p7841_p3 }
  0x1c   : > { %7849 = shalt.err (!%p7846_p7)
}
  0x1d   : > { %s7850_s23 = scalar_lea.vmem %s8065_s11, 8192  ;;  %p7858_p2 = scmp.lt.s32.totalorder %s8065_s11, %s8065_s11 }
  0x1e   : > { %p7851_p9 = scmp.ne.s32.totalorder %s8065_s11, %s7850_s23  ;;  %p7859_p6 = scmp.lt.s32.totalorder %s7850_s23, %s7850_s23 }
  0x20   : > { %p7853_p10 = pnand %p7851_p9, %p7839_p13  ;;  %p7860_p4 = por %p7859_p6, %p7858_p2 }
  0x22   : > { %p7854_p1 = pneg %p7853_p10 }
  0x24   : > { %p7861_p8 = pnand %p7860_p4, %p7854_p1 }
  0x26   : > { %7864 = shalt.err (!%p7861_p8)
}
  0x27   : > { %s7968_s29 = smov 2048   ;;  %s7969_s10 = smov 128  }
  0x28   : > { %7766 = dma.hbm_to_vmem [thread:$0]  (!%p8072_p11), %s11604_s2, 8192, %s8065_s11, [#allocation7], %s7968_s29, %s7968_s29, %s7969_s10  }
  0x29   : > { %p29_p2 = scmp.eq.s32.totalorder %s28_s15, 0  ;;  %p38_p1 = scmp.ne.s32.totalorder %s7961_s26, %s7957_s25 }
  0x2a   : > { %p39_p4 = scmp.eq.s32.totalorder %s7965_s27, 0  ;;  %p7776_p6 = scmp.lt.s32.totalorder %s7965_s27, 2 }
  0x2b   : > { %s8108_s18 = scalar_select %p29_p2, %s7961_s26, %s31_s14  }
  0x2c   : > { %p40_p8 = por %p39_p4, %p38_p1  ;;  %p11770_p10 = scmp.eq.s32.totalorder %s8042_s28, 1 }
  0x2d   : > { %s250_s20 = sand.u32 1, %s7961_s26   ;;  %s7337_s21 = sshll.u32 %s7965_s27, 11 }
  0x2e   : > { %p8112_p12 = por %p11770_p10, %p38_p1  ;;  %s7316_s22 = sshll.u32 %s250_s20, 7 }
  0x2f   : > { %s8121_s16 = scalar_lea.hbm %s11602_s0, %s7337_s21  ;;  %s254_s11 = scalar_lea.vmem [#allocation3], %s7316_s22 }
  0x30   : > { %s262_s14 = sshll.u32 %s254_s11, 4  ;;  %p8123_p11 = pnand %p7776_p6, %p40_p8  ;;  %s8127_s14 = int_to_ptr.vmem [resolvable:$true] %s262_s14 }
  0x31   : > { %s251_s29 = scalar_lea.sflag [#allocation4], %s250_s20  ;;  %s7865_s10 = scalar_lea.hbm %s8121_s16, 2048 }
  0x32   : > { %p7866_p13 = scmp.ne.s32.totalorder %s8121_s16, %s7865_s10  ;;  %p7867_p0 = pneg %p8123_p11 }
  0x33   : > { %s7870_s22 = scalar_lea.hbm %s11602_s0, 4096  ;;  %p7871_p7 = scmp.lt.u32.totalorder %s8121_s16, %s11602_s0 }
  0x34   : > { %p7868_p3 = pnand %p7867_p0, %p7866_p13  ;;  %p7872_p9 = scmp.lt.u32.totalorder %s7870_s22, %s7865_s10 }
  0x35   : > { %p7874_p1 = scmp.lt.u32.totalorder %s7865_s10, %s8121_s16 }
  0x36   : > { %p7869_p5 = pneg %p7868_p3  ;;  %p7873_p2 = por %p7872_p9, %p7871_p7 }
  0x38   : > { %p7875_p4 = por %p7874_p1, %p7873_p2 }
  0x3a   : > { %p7876_p6 = pnand %p7875_p4, %p7869_p5 }
  0x3c   : > { %7879 = shalt.err (!%p7876_p6)
}
  0x3d   : > { %s7880_s20 = scalar_lea.vmem %s8127_s14, 2048  ;;  %s7970_s11 = smov [#allocation3]  }
  0x3e   : > { %p7881_p8 = scmp.ne.s32.totalorder %s8127_s14, %s7880_s20  ;;  %s7885_s17 = sshll.u32 %s7970_s11, 4  ;;  %s7886_s17 = int_to_ptr.vmem [resolvable:$false] %s7885_s17 }
  0x3f   : > { %s7887_s21 = scalar_lea.vmem %s7886_s17, 4096  ;;  %p7888_p3 = scmp.lt.s32.totalorder %s8127_s14, %s7886_s17 }
  0x40   : > { %p7883_p10 = pnand %p7881_p8, %p7867_p0  ;;  %p7889_p7 = scmp.lt.s32.totalorder %s7887_s21, %s7880_s20 }
  0x42   : > { %p7884_p13 = pneg %p7883_p10  ;;  %p7890_p9 = por %p7889_p7, %p7888_p3 }
  0x44   : > { %p7891_p2 = pnand %p7890_p9, %p7884_p13 }
  0x46   : > { %7894 = shalt.err (!%p7891_p2)
}
  0x47   : > { %7770 = dma.hbm_to_vmem [thread:$0]  (!%p8123_p11), %s8121_s16, 2048, %s8127_s14, %s251_s29  }
  0x48   : > { %p11773_p5 = scmp.ne.s32.totalorder %s11768_s9, 0 }
  0x4a   : > { %278 = sbr.rel (%p11773_p5) target bundleno = 1527 (0x5f7), region = 48 }
  0x51   : > { %s8157_s10 = sand.u32 1, %s7957_s25   ;;  %p11774_p0 = scmp.ne.s32.totalorder %s11766_s30, 0 }
  0x52   : > { %s7320_s22 = sshll.u32 %s8157_s10, 7  ;;  %s281_s12 = scalar_lea.sflag [#allocation4], %s8157_s10 }
  0x53   : > { %s8163_s23 = scalar_lea.vmem [#allocation3], %s7320_s22 }
  0x54   : > { %7940 = dma.done.wait (%p11774_p0), %s281_s12, 2048  }
  0x55   : > { %7942 = vsyncadd (%p11774_p0), %s281_s12, 4294965248  ;;  %p11775_p11 = scmp.eq.s32.totalorder %s8042_s28, 0 }
  0x57   : > { %7944 = dma.done.wait (%p11775_p11), [#allocation7], 8192   ;;  %p11776_p1 = pmov %p11775_p11 }
  0x58   : > { %v8174_v0 = vld [vmem:[%s8163_s23 + $0x78] sm:$0xff]  ;;  %v8177_v1 = vld [vmem:[%s8163_s23 + $0x68] sm:$0xff]  ;;  %s7971_s30 = smov 17   ;;  %v8184_v2 = vld [vmem:[%s8163_s23 + $0x70] sm:$0xff]  ;;  %s7972_s9 = smov 16   ;;  %v434_v28 = vlaneseq  ;;  %vm571_vm0 = vcmask 130048  }
  0x59   : > { %7946 = vsyncadd (%p11776_p1), [#allocation7], 4294959104  ;;  %350 = vrot.lane.b32.xlu1 %v8174_v0, %s7971_s30  ;;  %346 = vrot.lane.b32.xlu0 %v8177_v1, %s7971_s30  ;;  %v8187_v3 = vld [vmem:[%s8163_s23] sm:$0xff]  ;;  %v8194_v4 = vld [vmem:[%s8163_s23 + $0x8] sm:$0xff]  ;;  %s7973_s16 = smov 15   ;;  %s7974_s14 = smov 1  }
  0x5a   : > { %v8197_v5 = vld [vmem:[%s8163_s23 + $0x10] sm:$0xff]  ;;  %v8204_v6 = vld [vmem:[%s8163_s23 + $0x18] sm:$0xff]  ;;  %v8207_v7 = vld [vmem:[%s8163_s23 + $0x20] sm:$0xff]  ;;  %s7975_s15 = smov 127   ;;  %v435_v31 = vshrl.u32 %v434_v28, 7  ;;  %vm352_vm1 = vcmask 138240  }
  0x5b   : > { %v8214_v8 = vld [vmem:[%s8163_s23 + $0x28] sm:$0xff]  ;;  %v8217_v9 = vld [vmem:[%s8163_s23 + $0x30] sm:$0xff]  ;;  %v8224_v10 = vld [vmem:[%s8163_s23 + $0x38] sm:$0xff]  ;;  %s7976_s29 = smov 113   ;;  %s7977_s20 = smov 112   ;;  %vm1011_vm2 = vcmask 7168  }
  0x5c   : > { %v8227_v11 = vld [vmem:[%s8163_s23 + $0x40] sm:$0xff]  ;;  %v8234_v12 = vld [vmem:[%s8163_s23 + $0x48] sm:$0xff]  ;;  %v8237_v13 = vld [vmem:[%s8163_s23 + $0x50] sm:$0xff]  ;;  %v8395_v38 = vsub.s32 4, %v435_v31  ;;  %v8397_v39 = vsub.s32 5, %v435_v31  ;;  %v8399_v40 = vsub.s32 6, %v435_v31 }
  0x5d   : > { %348 = vrot.lane.b32.xlu0 %v8184_v2, %s7971_s30  ;;  %371 = vrot.lane.b32.xlu1 %v8187_v3, %s7971_s30  ;;  %v8244_v14 = vld [vmem:[%s8163_s23 + $0x58] sm:$0xff]  ;;  %v8247_v15 = vld [vmem:[%s8163_s23 + $0x60] sm:$0xff]  ;;  %v8405_v43 = vsub.s32 1, %v435_v31  ;;  %v8411_v44 = vsub.s32 0, %v435_v31  ;;  %v8413_v45 = vsub.s32 2, %v435_v31  ;;  %v8415_v46 = vsub.s32 3, %v435_v31 }
  0x5e   : > { %v645_v32 = vld [vmem:[#allocation6 + $0x1] ss:$8 sm:$0xf]  ;;  %v425_v34 = vld [vmem:[#allocation6] ss:$8 sm:$0xf] }
  0x5f   : > { %v646_v33 = vld [vmem:[#allocation6 + $0x1] ss:$8 sm:$0xf0]  ;;  %v426_v35 = vld [vmem:[#allocation6] ss:$8 sm:$0xf0] }
  0x60   : > { %11782 = vst [vmem:[#allocation17_spill] sm:$0xff] %v8395_v38  ;;  %11783 = vst [vmem:[#allocation18_spill] sm:$0xff] %v8397_v39  ;;  %v8401_v41 = vor.u32 %v646_v33, %v645_v32  ;;  %v8403_v42 = vor.u32 %v426_v35, %v425_v34  ;;  %s7978_s11 = smov 111   ;;  %vm791_vm3 = vcmask 121856   ;;  %vm1366_vm4 = vcmask 1039360   ;;  %p323_p4 = scmp.lt.s32.totalorder %s8042_s28, 1 }
  0x61   : > { %373 = vrot.lane.b32.xlu0 %v8194_v4, %s7971_s30  ;;  %375 = vrot.lane.b32.xlu1 %v8197_v5, %s7971_s30  ;;  %11784 = vst [vmem:[#allocation19_spill] sm:$0xff] %v8399_v40  ;;  %vm1586_vm5 = vcmask 924672   ;;  %vm1806_vm6 = vcmask 916480   ;;  %vm2026_vm7 = vcmask 908288   ;;  %vm6444_vm8 = vcmask 719872   ;;  %s7980_s17 = smov [#allocation8]  }
  0x62   : > { %v453_v49 = vrot.slane %v8403_v42, %v8395_v38  ;;  %v457_v50 = vrot.slane %v8403_v42, %v8397_v39  ;;  %v461_v51 = vrot.slane %v8403_v42, %v8399_v40  ;;  %v657_v52 = vrot.slane %v8401_v41, %v8411_v44  ;;  %s7899_s21 = sshll.u32 %s7980_s17, 4  ;;  %s7900_s21 = int_to_ptr.vmem [resolvable:$false] %s7899_s21 }
  0x63   : > { %v441_v54 = vrot.slane %v8403_v42, %v8405_v43  ;;  %v661_v55 = vrot.slane %v8401_v41, %v8405_v43  ;;  %v437_v57 = vrot.slane %v8403_v42, %v8411_v44  ;;  %v449_v58 = vrot.slane %v8403_v42, %v8415_v46 }
  0x64   : > { %v445_v59 = vrot.slane %v8403_v42, %v8413_v45  ;;  %v673_v63 = vrot.slane %v8401_v41, %v8395_v38  ;;  %v677_v33 = vrot.slane %v8401_v41, %v8397_v39 }
  0x65   : > { %377 = vrot.lane.b32.xlu0 %v8204_v6, %s7971_s30  ;;  %379 = vrot.lane.b32.xlu1 %v8207_v7, %s7971_s30 }
  0x69   : > { %381 = vrot.lane.b32.xlu0 %v8214_v8, %s7971_s30  ;;  %383 = vrot.lane.b32.xlu1 %v8217_v9, %s7971_s30 }
  0x6d   : > { %385 = vrot.lane.b32.xlu0 %v8224_v10, %s7971_s30  ;;  %387 = vrot.lane.b32.xlu1 %v8227_v11, %s7971_s30 }
  0x71   : > { %389 = vrot.lane.b32.xlu0 %v8234_v12, %s7971_s30  ;;  %391 = vrot.lane.b32.xlu1 %v8237_v13, %s7971_s30 }
  0x75   : > { %393 = vrot.lane.b32.xlu0 %v8244_v14, %s7971_s30  ;;  %395 = vrot.lane.b32.xlu1 %v8247_v15, %s7971_s30 }
  0x79   : > { %565 = vrot.lane.b32.xlu0 %v8177_v1, %s7972_s9  ;;  %567 = vrot.lane.b32.xlu1 %v8184_v2, %s7972_s9 }
  0x7d   : > { %569 = vrot.lane.b32.xlu0 %v8174_v0, %s7972_s9  ;;  %590 = vrot.lane.b32.xlu1 %v8187_v3, %s7972_s9 }
  0x81   : > { %592 = vrot.lane.b32.xlu0 %v8194_v4, %s7972_s9  ;;  %594 = vrot.lane.b32.xlu1 %v8197_v5, %s7972_s9 }
  0x85   : > { %596 = vrot.lane.b32.xlu0 %v8204_v6, %s7972_s9  ;;  %598 = vrot.lane.b32.xlu1 %v8207_v7, %s7972_s9 }
  0x89   : > { %600 = vrot.lane.b32.xlu0 %v8214_v8, %s7972_s9  ;;  %602 = vrot.lane.b32.xlu1 %v8217_v9, %s7972_s9 }
  0x8d   : > { %604 = vrot.lane.b32.xlu0 %v8224_v10, %s7972_s9  ;;  %606 = vrot.lane.b32.xlu1 %v8227_v11, %s7972_s9 }
  0x91   : > { %608 = vrot.lane.b32.xlu0 %v8234_v12, %s7972_s9  ;;  %610 = vrot.lane.b32.xlu1 %v8237_v13, %s7972_s9 }
  0x95   : > { %612 = vrot.lane.b32.xlu0 %v8244_v14, %s7972_s9  ;;  %614 = vrot.lane.b32.xlu1 %v8247_v15, %s7972_s9 }
  0x99   : > { %785 = vrot.lane.b32.xlu0 %v8177_v1, %s7973_s16  ;;  %787 = vrot.lane.b32.xlu1 %v8184_v2, %s7973_s16 }
  0x9d   : > { %789 = vrot.lane.b32.xlu0 %v8174_v0, %s7973_s16  ;;  %810 = vrot.lane.b32.xlu1 %v8187_v3, %s7973_s16 }
  0xa1   : > { %812 = vrot.lane.b32.xlu0 %v8194_v4, %s7973_s16  ;;  %814 = vrot.lane.b32.xlu1 %v8197_v5, %s7973_s16 }
  0xa5   : > { %816 = vrot.lane.b32.xlu0 %v8204_v6, %s7973_s16  ;;  %818 = vrot.lane.b32.xlu1 %v8207_v7, %s7973_s16 }
  0xa9   : > { %820 = vrot.lane.b32.xlu0 %v8214_v8, %s7973_s16  ;;  %822 = vrot.lane.b32.xlu1 %v8217_v9, %s7973_s16 }
  0xad   : > { %824 = vrot.lane.b32.xlu0 %v8224_v10, %s7973_s16  ;;  %826 = vrot.lane.b32.xlu1 %v8227_v11, %s7973_s16 }
  0xb1   : > { %828 = vrot.lane.b32.xlu0 %v8234_v12, %s7973_s16  ;;  %830 = vrot.lane.b32.xlu1 %v8237_v13, %s7973_s16 }
  0xb5   : > { %832 = vrot.lane.b32.xlu0 %v8244_v14, %s7973_s16  ;;  %834 = vrot.lane.b32.xlu1 %v8247_v15, %s7973_s16 }
  0xb9   : > { %1005 = vrot.lane.b32.xlu0 %v8177_v1, %s7974_s14  ;;  %1007 = vrot.lane.b32.xlu1 %v8184_v2, %s7974_s14 }
  0xbd   : > { %1009 = vrot.lane.b32.xlu0 %v8174_v0, %s7974_s14  ;;  %1030 = vrot.lane.b32.xlu1 %v8187_v3, %s7974_s14 }
  0xc1   : > { %1032 = vrot.lane.b32.xlu0 %v8194_v4, %s7974_s14  ;;  %1034 = vrot.lane.b32.xlu1 %v8197_v5, %s7974_s14 }
  0xc5   : > { %1036 = vrot.lane.b32.xlu0 %v8204_v6, %s7974_s14  ;;  %1038 = vrot.lane.b32.xlu1 %v8207_v7, %s7974_s14 }
  0xc9   : > { %1040 = vrot.lane.b32.xlu0 %v8214_v8, %s7974_s14  ;;  %1042 = vrot.lane.b32.xlu1 %v8217_v9, %s7974_s14 }
  0xcb   : > { %v8337_v16 = vpop.permute.xlu1 %350  ;;  %v8339_v17 = vpop.permute.xlu0 %346 }
  0xcd   : > { %1044 = vrot.lane.b32.xlu0 %v8224_v10, %s7974_s14  ;;  %1046 = vrot.lane.b32.xlu1 %v8227_v11, %s7974_s14 }
  0xcf   : > { %v349_v18 = vpop.permute.xlu0 %348  ;;  %v8345_v19 = vpop.permute.xlu1 %371 }
  0xd0   : > { %v354_v56 = vsel %vm352_vm1, %v349_v18, %v8337_v16  ;;  %v353_v60 = vsel %vm352_vm1, %v8339_v17, %v349_v18  ;;  %v8460_v18 = vsub.s32 7, %v435_v31  ;;  %v424_v34 = vsel %vm352_vm1, %v8337_v16, %v8345_v19 }
  0xd1   : > { %1048 = vrot.lane.b32.xlu0 %v8234_v12, %s7974_s14  ;;  %1050 = vrot.lane.b32.xlu1 %v8237_v13, %s7974_s14  ;;  %v515_v28 = vmul.f32 %v441_v54, %v354_v56  ;;  %v681_v31 = vrot.slane %v8401_v41, %v8399_v40 }
  0xd3   : > { %v8351_v20 = vpop.permute.xlu0 %373  ;;  %v8353_v21 = vpop.permute.xlu1 %375 }
  0xd5   : > { %1052 = vrot.lane.b32.xlu0 %v8244_v14, %s7974_s14  ;;  %1054 = vrot.lane.b32.xlu1 %v8247_v15, %s7974_s14 }
  0xd7   : > { %v8359_v22 = vpop.permute.xlu0 %377  ;;  %v8361_v23 = vpop.permute.xlu1 %379 }
  0xd8   : > { %v400_v16 = vsel %vm352_vm1, %v8359_v22, %v8361_v23 }
  0xd9   : > { %1362 = vrot.lane.b32.xlu0 %v8184_v2, %s7975_s15  ;;  %1364 = vrot.lane.b32.xlu1 %v8174_v0, %s7975_s15 }
  0xdb   : > { %v8367_v24 = vpop.permute.xlu0 %381  ;;  %v8369_v25 = vpop.permute.xlu1 %383 }
  0xdc   : > { %11777 = vst [vmem:[#allocation12_spill] sm:$0xff] %v8367_v24  ;;  %11778 = vst [vmem:[#allocation13_spill] sm:$0xff] %v8369_v25 }
  0xdd   : > { %1384 = vrot.lane.b32.xlu0 %v8187_v3, %s7975_s15  ;;  %1386 = vrot.lane.b32.xlu1 %v8194_v4, %s7975_s15 }
  0xdf   : > { %v8375_v26 = vpop.permute.xlu0 %385  ;;  %v8377_v27 = vpop.permute.xlu1 %387 }
  0xe0   : > { %11779 = vst [vmem:[#allocation14_spill] sm:$0xff] %v8375_v26  ;;  %11780 = vst [vmem:[#allocation15_spill] sm:$0xff] %v8377_v27 }
  0xe1   : > { %1388 = vrot.lane.b32.xlu0 %v8197_v5, %s7975_s15  ;;  %1390 = vrot.lane.b32.xlu1 %v8204_v6, %s7975_s15 }
  0xe3   : > { %v8383_v29 = vpop.permute.xlu0 %389  ;;  %v8385_v30 = vpop.permute.xlu1 %391 }
  0xe4   : > { %11781 = vst [vmem:[#allocation16_spill] sm:$0xff] %v8383_v29 }
  0xe5   : > { %1392 = vrot.lane.b32.xlu0 %v8207_v7, %s7975_s15  ;;  %1394 = vrot.lane.b32.xlu1 %v8214_v8, %s7975_s15  ;;  %v669_v7 = vrot.slane %v8401_v41, %v8415_v46  ;;  %v665_v8 = vrot.slane %v8401_v41, %v8413_v45 }
  0xe7   : > { %v8391_v36 = vpop.permute.xlu0 %393  ;;  %v8393_v37 = vpop.permute.xlu1 %395 }
  0xe9   : > { %1396 = vrot.lane.b32.xlu0 %v8217_v9, %s7975_s15  ;;  %1398 = vrot.lane.b32.xlu1 %v8224_v10, %s7975_s15  ;;  %v398_v9 = vsel %vm352_vm1, %v8351_v20, %v8353_v21 }
  0xeb   : > { %v8417_v47 = vpop.permute.xlu0 %565  ;;  %v568_v48 = vpop.permute.xlu1 %567 }
  0xec   : > { %v572_v53 = vsel %vm571_vm0, %v8417_v47, %v568_v48 }
  0xed   : > { %1400 = vrot.lane.b32.xlu0 %v8227_v11, %s7975_s15  ;;  %1402 = vrot.lane.b32.xlu1 %v8234_v12, %s7975_s15  ;;  %v734_v11 = vmul.f32 %v657_v52, %v572_v53  ;;  %v397_v12 = vsel %vm352_vm1, %v8345_v19, %v8351_v20  ;;  %v514_v20 = vmul.f32 %v437_v57, %v353_v60 }
  0xee   : > { %v517_v54 = vmul.f32 %v449_v58, %v397_v12  ;;  %v465_v58 = vrot.slane %v8403_v42, %v8460_v18 }
  0xef   : > { %v570_v61 = vpop.permute.xlu0 %569  ;;  %v591_v62 = vpop.permute.xlu1 %590 }
  0xf0   : > { %v573_v10 = vsel %vm571_vm0, %v568_v48, %v570_v61  ;;  %v643_v35 = vsel %vm571_vm0, %v570_v61, %v591_v62  ;;  %v8474_v48 = vmul.f32 %v453_v49, %v398_v9 }
  0xf1   : > { %1404 = vrot.lane.b32.xlu0 %v8237_v13, %s7975_s15  ;;  %1406 = vrot.lane.b32.xlu1 %v8244_v14, %s7975_s15  ;;  %v735_v32 = vmul.f32 %v661_v55, %v573_v10  ;;  %v399_v13 = vsel %vm352_vm1, %v8353_v21, %v8359_v22  ;;  %v7341_v55 = vpack.c.bf16 %v734_v11, %v514_v20 }
  0xf2   : > { %v736_v49 = vmul.f32 %v665_v8, %v643_v35  ;;  %v8496_v9 = vmul.f32 %v457_v50, %v399_v13  ;;  %v401_v50 = vsel %vm352_vm1, %v8361_v23, %v8367_v24  ;;  %v650_v35 = vld [vmem:[#allocation6 + $0x41] ss:$8 sm:$0xf0] }
  0xf3   : > { %v593_v14 = vpop.permute.xlu0 %592  ;;  %v595_v52 = vpop.permute.xlu1 %594  ;;  %v7339_v53 = vpack.c.bf16 %v735_v32, %v515_v28  ;;  %v8523_v23 = vmul.f32 %v465_v58, %v401_v50 }
  0xf4   : > { %v617_v19 = vsel %vm571_vm0, %v593_v14, %v595_v52  ;;  %v616_v56 = vsel %vm571_vm0, %v591_v62, %v593_v14 }
  0xf5   : > { %v8484_v57 = vmul.f32 %v673_v63, %v617_v19  ;;  %1408 = vrot.lane.b32.xlu0 %v8247_v15, %s7975_s15  ;;  %1410 = vrot.lane.b32.xlu1 %v8177_v1, %s7975_s15  ;;  %v737_v21 = vmul.f32 %v669_v7, %v616_v56  ;;  %v516_v63 = vmul.f32 %v445_v59, %v424_v34  ;;  %v430_v59 = vld [vmem:[#allocation6 + $0x40] ss:$8 sm:$0xf0]  ;;  %v649_v34 = vld [vmem:[#allocation6 + $0x41] ss:$8 sm:$0xf] }
  0xf6   : > { %7340 = vmatprep.subr.bf16.mxu0 %v7339_v53  ;;  %v685_v15 = vrot.slane %v8401_v41, %v8460_v18  ;;  %v8498_v1 = vmul.f32 %v461_v51, %v400_v16  ;;  %v429_v51 = vld [vmem:[#allocation6 + $0x40] ss:$8 sm:$0xf]  ;;  %v8533_v13 = vor.u32 %v650_v35, %v649_v34  ;;  %v406_v19 = vsel %vm352_vm1, %v8383_v29, %v8385_v30 }
  0xf7   : > { %7342 = vmatpush1.bf16.msra.mxu0 %v7341_v55  ;;  %v597_v60 = vpop.permute.xlu0 %596  ;;  %v599_v61 = vpop.permute.xlu1 %598  ;;  %v7391_v62 = vpack.c.bf16 %v737_v21, %v517_v54  ;;  %v7393_v41 = vpack.c.bf16 %v736_v49, %v516_v63  ;;  %v408_v63 = vsel %vm352_vm1, %v8391_v36, %v8393_v37 }
  0xf8   : > { %v618_v7 = vsel %vm571_vm0, %v595_v52, %v597_v60  ;;  %v619_v42 = vsel %vm571_vm0, %v597_v60, %v599_v61  ;;  %11788 = vst [vmem:[#allocation23_spill] sm:$0xff] %v8533_v13  ;;  %v705_v16 = vrot.slane %v8533_v13, %v8395_v38  ;;  %v709_v60 = vrot.slane %v8533_v13, %v8397_v39 }
  0xf9   : > { %v8502_v8 = vmul.f32 %v677_v33, %v618_v7  ;;  %v8504_v10 = vmul.f32 %v681_v31, %v619_v42  ;;  %1582 = vrot.lane.b32.xlu0 %v8184_v2, %s7976_s29  ;;  %1584 = vrot.lane.b32.xlu1 %v8174_v0, %s7976_s29  ;;  %v8531_v31 = vor.u32 %v430_v59, %v429_v51  ;;  %v1086_v51 = vld [vmem:[#allocation6 + $0x3] ss:$8 sm:$0xf0] }
  0xfa   : > { %7392 = vmatprep.subr.bf16.mxu1 %v7391_v62  ;;  %v407_v62 = vsel %vm352_vm1, %v8385_v30, %v8391_v36  ;;  %v717_v7 = vrot.slane %v8533_v13, %v8460_v18 }
  0xfb   : > { %7394 = vmatpush1.bf16.msra.mxu1 %v7393_v41  ;;  %v8515_v12 = vpop.permute.xlu0 %600  ;;  %v8517_v28 = vpop.permute.xlu1 %602  ;;  %11787 = vst [vmem:[#allocation22_spill] sm:$0xff] %v8531_v31  ;;  %v485_v54 = vrot.slane %v8531_v31, %v8395_v38  ;;  %v489_v55 = vrot.slane %v8531_v31, %v8397_v39  ;;  %v493_v56 = vrot.slane %v8531_v31, %v8399_v40 }
  0xfc   : > { %11785 = vst [vmem:[#allocation20_spill] sm:$0xff] %v8515_v12  ;;  %11786 = vst [vmem:[#allocation21_spill] sm:$0xff] %v8517_v28  ;;  %v620_v33 = vsel %vm571_vm0, %v599_v61, %v8515_v12  ;;  %v497_v21 = vrot.slane %v8531_v31, %v8460_v18  ;;  %v713_v61 = vrot.slane %v8533_v13, %v8399_v40 }
  0xfd   : > { %v8525_v20 = vmul.f32 %v685_v15, %v620_v33  ;;  %1604 = vrot.lane.b32.xlu0 %v8187_v3, %s7976_s29  ;;  %1804 = vrot.lane.b32.xlu1 %v8174_v0, %s7977_s20  ;;  %v8574_v42 = vmul.f32 %v485_v54, %v406_v19  ;;  %v409_v41 = vsel %vm352_vm1, %v8393_v37, %v8339_v17 }
  0xfe   : > { %v8585_v30 = vmul.f32 %v489_v55, %v407_v62  ;;  %v8587_v36 = vmul.f32 %v493_v56, %v408_v63  ;;  %v8591_v34 = vmul.f32 %v497_v21, %v409_v41  ;;  %v866_v55 = vld [vmem:[#allocation6 + $0x2] ss:$8 sm:$0xf0] }
  0xff   : > { %v8535_v14 = vpop.permute.xlu0 %604  ;;  %v8537_v52 = vpop.permute.xlu1 %606  ;;  %11792 = vst [vmem:[#allocation27_spill] sm:$0xff] %v8574_v42 }
 0x100   : > { %11789 = vst [vmem:[#allocation24_spill] sm:$0xff] %v8535_v14  ;;  %11790 = vst [vmem:[#allocation25_spill] sm:$0xff] %v8537_v52 }
 0x101   : > { %1824 = vrot.lane.b32.xlu0 %v8187_v3, %s7977_s20  ;;  %1802 = vrot.lane.b32.xlu1 %v8184_v2, %s7977_s20  ;;  %11794 = vst [vmem:[#allocation29_spill] sm:$0xff] %v8585_v30  ;;  %11795 = vst [vmem:[#allocation30_spill] sm:$0xff] %v8587_v36 }
 0x102   : > { %11796 = vst [vmem:[#allocation31_spill] sm:$0xff] %v8591_v34 }
 0x103   : > { %v8558_v49 = vpop.permute.xlu0 %608  ;;  %v611_v58 = vpop.permute.xlu1 %610 }
 0x104   : > { %11791 = vst [vmem:[#allocation26_spill] sm:$0xff] %v8558_v49  ;;  %v625_v15 = vsel %vm571_vm0, %v8558_v49, %v611_v58 }
 0x105   : > { %v8579_v50 = vmul.f32 %v705_v16, %v625_v15  ;;  %1606 = vrot.lane.b32.xlu0 %v8194_v4, %s7976_s29  ;;  %1608 = vrot.lane.b32.xlu1 %v8197_v5, %s7976_s29 }
 0x107   : > { %11793 = vst [vmem:[#allocation28_spill] sm:$0xff] %v8579_v50  ;;  %v613_v59 = vpop.permute.xlu0 %612  ;;  %v615_v33 = vpop.permute.xlu1 %614 }
 0x108   : > { %v626_v17 = vsel %vm571_vm0, %v611_v58, %v613_v59  ;;  %v627_v37 = vsel %vm571_vm0, %v613_v59, %v615_v33  ;;  %v628_v35 = vsel %vm571_vm0, %v615_v33, %v8417_v47  ;;  %v1085_v58 = vld [vmem:[#allocation6 + $0x3] ss:$8 sm:$0xf] }
 0x109   : > { %v8597_v54 = vmul.f32 %v709_v60, %v626_v17  ;;  %v8599_v16 = vmul.f32 %v713_v61, %v627_v37  ;;  %v8601_v19 = vmul.f32 %v717_v7, %v628_v35  ;;  %1826 = vrot.lane.b32.xlu0 %v8194_v4, %s7977_s20  ;;  %1828 = vrot.lane.b32.xlu1 %v8197_v5, %s7977_s20  ;;  %v865_v35 = vld [vmem:[#allocation6 + $0x2] ss:$8 sm:$0xf] }
 0x10a   : > { %v8669_v53 = vor.u32 %v866_v55, %v865_v35  ;;  %v8671_v22 = vor.u32 %v1086_v51, %v1085_v58 }
 0x10b   : > { %11797 = vst [vmem:[#allocation32_spill] sm:$0xff] %v8597_v54  ;;  %11798 = vst [vmem:[#allocation33_spill] sm:$0xff] %v8599_v16  ;;  %v8609_v56 = vpop.permute.xlu0 %785  ;;  %v788_v21 = vpop.permute.xlu1 %787 }
 0x10c   : > { %11799 = vst [vmem:[#allocation34_spill] sm:$0xff] %v8601_v19  ;;  %v877_v16 = vrot.slane %v8669_v53, %v8411_v44  ;;  %v881_v55 = vrot.slane %v8669_v53, %v8405_v43  ;;  %v885_v51 = vrot.slane %v8669_v53, %v8413_v45  ;;  %v1097_v58 = vrot.slane %v8671_v22, %v8411_v44 }
 0x10d   : > { %2024 = vrot.lane.b32.xlu0 %v8174_v0, %s7978_s11  ;;  %2044 = vrot.lane.b32.xlu1 %v8187_v3, %s7978_s11  ;;  %v889_v35 = vrot.slane %v8669_v53, %v8415_v46  ;;  %v1101_v19 = vrot.slane %v8671_v22, %v8405_v43  ;;  %v893_v50 = vrot.slane %v8669_v53, %v8395_v38 }
 0x10e   : > { %v897_v30 = vrot.slane %v8669_v53, %v8397_v39  ;;  %v901_v54 = vrot.slane %v8669_v53, %v8399_v40  ;;  %v1109_v52 = vrot.slane %v8671_v22, %v8415_v46  ;;  %v1113_v14 = vrot.slane %v8671_v22, %v8395_v38 }
 0x10f   : > { %v8619_v60 = vpop.permute.xlu0 %789  ;;  %v8621_v61 = vpop.permute.xlu1 %810  ;;  %v1117_v24 = vrot.slane %v8671_v22, %v8397_v39 }
 0x110   : > { %v793_v42 = vsel %vm791_vm3, %v788_v21, %v8619_v60  ;;  %v863_v13 = vsel %vm791_vm3, %v8619_v60, %v8621_v61 }
 0x111   : > { %2259 = vrot.lane.b32.xlu0 %v8187_v3, %s7971_s30  ;;  %2261 = vrot.lane.b32.xlu1 %v8194_v4, %s7971_s30  ;;  %v955_v27 = vmul.f32 %v881_v55, %v793_v42  ;;  %v1121_v42 = vrot.slane %v8671_v22, %v8399_v40 }
 0x113   : > { %v813_v62 = vpop.permute.xlu0 %812  ;;  %v8627_v63 = vpop.permute.xlu1 %814 }
 0x114   : > { %v836_v12 = vsel %vm791_vm3, %v8621_v61, %v813_v62  ;;  %v837_v28 = vsel %vm791_vm3, %v813_v62, %v8627_v63 }
 0x115   : > { %2022 = vrot.lane.b32.xlu0 %v8184_v2, %s7978_s11  ;;  %2241 = vrot.lane.b32.xlu1 %v8174_v0, %s7971_s30 }
 0x117   : > { %v8633_v15 = vpop.permute.xlu0 %816  ;;  %v8635_v7 = vpop.permute.xlu1 %818 }
 0x119   : > { %2046 = vrot.lane.b32.xlu0 %v8194_v4, %s7978_s11  ;;  %2048 = vrot.lane.b32.xlu1 %v8197_v5, %s7978_s11 }
 0x11b   : > { %v8641_v41 = vpop.permute.xlu0 %820  ;;  %v8643_v59 = vpop.permute.xlu1 %822 }
 0x11c   : > { %11800 = vst [vmem:[#allocation35_spill] sm:$0xff] %v8641_v41  ;;  %11801 = vst [vmem:[#allocation36_spill] sm:$0xff] %v8643_v59  ;;  %v1105_v59 = vrot.slane %v8671_v22, %v8413_v45 }
 0x11d   : > { %2263 = vrot.lane.b32.xlu0 %v8197_v5, %s7971_s30  ;;  %2265 = vrot.lane.b32.xlu1 %v8204_v6, %s7971_s30 }
 0x11f   : > { %v8649_v2 = vpop.permute.xlu0 %824  ;;  %v8651_v33 = vpop.permute.xlu1 %826 }
 0x120   : > { %11802 = vst [vmem:[#allocation37_spill] sm:$0xff] %v8649_v2  ;;  %11803 = vst [vmem:[#allocation38_spill] sm:$0xff] %v8651_v33  ;;  %v792_v33 = vsel %vm791_vm3, %v8609_v56, %v788_v21 }
 0x121   : > { %2478 = vrot.lane.b32.xlu0 %v8187_v3, %s7972_s9  ;;  %2480 = vrot.lane.b32.xlu1 %v8194_v4, %s7972_s9  ;;  %v954_v25 = vmul.f32 %v877_v16, %v792_v33  ;;  %v839_v16 = vsel %vm791_vm3, %v8633_v15, %v8635_v7 }
 0x123   : > { %v8657_v17 = vpop.permute.xlu0 %828  ;;  %v8659_v37 = vpop.permute.xlu1 %830 }
 0x124   : > { %11804 = vst [vmem:[#allocation39_spill] sm:$0xff] %v8657_v17 }
 0x125   : > { %2697 = vrot.lane.b32.xlu0 %v8187_v3, %s7973_s16  ;;  %2699 = vrot.lane.b32.xlu1 %v8194_v4, %s7973_s16 }
 0x127   : > { %v8665_v47 = vpop.permute.xlu0 %832  ;;  %v8667_v11 = vpop.permute.xlu1 %834 }
 0x129   : > { %2460 = vrot.lane.b32.xlu0 %v8174_v0, %s7972_s9  ;;  %2679 = vrot.lane.b32.xlu1 %v8174_v0, %s7973_s16 }
 0x12b   : > { %v8677_v32 = vpop.permute.xlu0 %1005  ;;  %v1008_v36 = vpop.permute.xlu1 %1007 }
 0x12c   : > { %v1012_v34 = vsel %vm1011_vm2, %v8677_v32, %v1008_v36 }
 0x12d   : > { %2482 = vrot.lane.b32.xlu0 %v8197_v5, %s7972_s9  ;;  %2484 = vrot.lane.b32.xlu1 %v8204_v6, %s7972_s9  ;;  %v1174_v29 = vmul.f32 %v1097_v58, %v1012_v34 }
 0x12f   : > { %v1010_v2 = vpop.permute.xlu0 %1009  ;;  %v1031_v49 = vpop.permute.xlu1 %1030 }
 0x130   : > { %v1013_v21 = vsel %vm1011_vm2, %v1008_v36, %v1010_v2  ;;  %v1083_v34 = vsel %vm1011_vm2, %v1010_v2, %v1031_v49  ;;  %v957_v36 = vmul.f32 %v889_v35, %v836_v12  ;;  %v7345_v2 = vpack.c.bf16 %v1174_v29, %v954_v25 }
 0x131   : > { %v1175_v26 = vmul.f32 %v1101_v19, %v1013_v21  ;;  %2701 = vrot.lane.b32.xlu0 %v8197_v5, %s7973_s16  ;;  %2703 = vrot.lane.b32.xlu1 %v8204_v6, %s7973_s16  ;;  %v8730_v19 = vmul.f32 %v893_v50, %v837_v28  ;;  %v838_v6 = vsel %vm791_vm3, %v8627_v63, %v8633_v15  ;;  %v1089_v21 = vld [vmem:[#allocation6 + $0x43] ss:$8 sm:$0xf] }
 0x132   : > { %v1176_v33 = vmul.f32 %v1105_v59, %v1083_v34  ;;  %v870_v59 = vld [vmem:[#allocation6 + $0x42] ss:$8 sm:$0xf0]  ;;  %v1090_v34 = vld [vmem:[#allocation6 + $0x43] ss:$8 sm:$0xf0] }
 0x133   : > { %v1033_v62 = vpop.permute.xlu0 %1032  ;;  %v1035_v55 = vpop.permute.xlu1 %1034  ;;  %v7343_v58 = vpack.c.bf16 %v1175_v26, %v955_v27  ;;  %v905_v26 = vrot.slane %v8669_v53, %v8460_v18  ;;  %v956_v27 = vmul.f32 %v885_v51, %v863_v13 }
 0x134   : > { %v1056_v60 = vsel %vm1011_vm2, %v1031_v49, %v1033_v62  ;;  %v1057_v61 = vsel %vm1011_vm2, %v1033_v62, %v1035_v55 }
 0x135   : > { %v1177_v12 = vmul.f32 %v1109_v52, %v1056_v60  ;;  %v8740_v28 = vmul.f32 %v1113_v14, %v1057_v61  ;;  %2916 = vrot.lane.b32.xlu0 %v8187_v3, %s7974_s14  ;;  %2918 = vrot.lane.b32.xlu1 %v8194_v4, %s7974_s14  ;;  %v1125_v3 = vrot.slane %v8671_v22, %v8460_v18 }
 0x136   : > { %7344 = vmatprep.subr.bf16.mxu0 %v7343_v58  ;;  %v8752_v52 = vmul.f32 %v897_v30, %v838_v6  ;;  %v8754_v4 = vmul.f32 %v901_v54, %v839_v16  ;;  %v7397_v15 = vpack.c.bf16 %v1176_v33, %v956_v27  ;;  %v840_v22 = vsel %vm791_vm3, %v8635_v7, %v8641_v41  ;;  %v8770_v30 = vld [vmem:[%s8163_s23 + $0x18] sm:$0xff]  ;;  %v8773_v54 = vld [vmem:[%s8163_s23 + $0x8] sm:$0xff]  ;;  %v8794_v6 = vld [vmem:[%s8163_s23 + $0x10] sm:$0xff] }
 0x137   : > { %7346 = vmatpush1.bf16.msra.mxu0 %v7345_v2  ;;  %v1037_v25 = vpop.permute.xlu0 %1036  ;;  %v1039_v29 = vpop.permute.xlu1 %1038  ;;  %v7395_v14 = vpack.c.bf16 %v1177_v12, %v957_v36  ;;  %v845_v33 = vsel %vm791_vm3, %v8657_v17, %v8659_v37  ;;  %v848_v60 = vsel %vm791_vm3, %v8667_v11, %v8609_v56 }
 0x138   : > { %v1058_v53 = vsel %vm1011_vm2, %v1035_v55, %v1037_v25  ;;  %v1059_v13 = vsel %vm1011_vm2, %v1037_v25, %v1039_v29  ;;  %v8798_v55 = vor.u32 %v1090_v34, %v1089_v21  ;;  %v1223_v21 = vld [vmem:[#allocation6 + $0x4] ss:$8 sm:$0xf] }
 0x139   : > { %v8758_v50 = vmul.f32 %v1117_v24, %v1058_v53  ;;  %v8760_v63 = vmul.f32 %v1121_v42, %v1059_v13  ;;  %2898 = vrot.lane.b32.xlu0 %v8174_v0, %s7974_s14  ;;  %2920 = vrot.lane.b32.xlu1 %v8197_v5, %s7974_s14  ;;  %v869_v24 = vld [vmem:[#allocation6 + $0x42] ss:$8 sm:$0xf]  ;;  %v8785_v42 = vmul.f32 %v905_v26, %v840_v22  ;;  %v1443_v13 = vld [vmem:[#allocation6 + $0x5] ss:$8 sm:$0xf] }
 0x13a   : > { %7396 = vmatprep.subr.bf16.mxu1 %v7395_v14  ;;  %v8796_v62 = vor.u32 %v870_v59, %v869_v24  ;;  %11808 = vst [vmem:[#allocation43_spill] sm:$0xff] %v8798_v55  ;;  %v1145_v2 = vrot.slane %v8798_v55, %v8395_v38  ;;  %v8820_v26 = vld [vmem:[%s8163_s23] sm:$0xff]  ;;  %v1153_v53 = vrot.slane %v8798_v55, %v8399_v40 }
 0x13b   : > { %7398 = vmatpush1.bf16.msra.mxu1 %v7397_v15  ;;  %v8777_v0 = vpop.permute.xlu0 %1040  ;;  %v8779_v5 = vpop.permute.xlu1 %1042  ;;  %v1444_v15 = vld [vmem:[#allocation6 + $0x5] ss:$8 sm:$0xf0]  ;;  %v846_v22 = vsel %vm791_vm3, %v8659_v37, %v8665_v47  ;;  %v847_v24 = vsel %vm791_vm3, %v8665_v47, %v8667_v11  ;;  %v1224_v34 = vld [vmem:[#allocation6 + $0x4] ss:$8 sm:$0xf0] }
 0x13c   : > { %11805 = vst [vmem:[#allocation40_spill] sm:$0xff] %v8777_v0  ;;  %11806 = vst [vmem:[#allocation41_spill] sm:$0xff] %v8779_v5  ;;  %v1060_v7 = vsel %vm1011_vm2, %v1039_v29, %v8777_v0  ;;  %v925_v61 = vrot.slane %v8796_v62, %v8395_v38  ;;  %v929_v12 = vrot.slane %v8796_v62, %v8397_v39 }
 0x13d   : > { %v8787_v36 = vmul.f32 %v1125_v3, %v1060_v7  ;;  %2922 = vrot.lane.b32.xlu0 %v8770_v30, %s7974_s14  ;;  %3272 = vrot.lane.b32.xlu1 %v8773_v54, %s7975_s15  ;;  %11807 = vst [vmem:[#allocation42_spill] sm:$0xff] %v8796_v62  ;;  %v933_v27 = vrot.slane %v8796_v62, %v8399_v40 }
 0x13e   : > { %v937_v25 = vrot.slane %v8796_v62, %v8460_v18  ;;  %v1149_v3 = vrot.slane %v8798_v55, %v8397_v39  ;;  %v1157_v7 = vrot.slane %v8798_v55, %v8460_v18  ;;  %v8842_v51 = vmul.f32 %v925_v61, %v845_v33 }
 0x13f   : > { %v8800_v58 = vpop.permute.xlu0 %1044  ;;  %v8802_v16 = vpop.permute.xlu1 %1046  ;;  %v8853_v47 = vor.u32 %v1444_v15, %v1443_v13  ;;  %v8855_v37 = vmul.f32 %v929_v12, %v846_v22  ;;  %v8857_v35 = vmul.f32 %v933_v27, %v847_v24  ;;  %v8861_v56 = vor.u32 %v1224_v34, %v1223_v21  ;;  %v1221_v24 = vld [vmem:[%s8163_s23 + $0x78] sm:$0xff] }
 0x140   : > { %11809 = vst [vmem:[#allocation44_spill] sm:$0xff] %v8800_v58  ;;  %11810 = vst [vmem:[#allocation45_spill] sm:$0xff] %v8802_v16 }
 0x141   : > { %3274 = vrot.lane.b32.xlu0 %v8794_v6, %s7975_s15  ;;  %3491 = vrot.lane.b32.xlu1 %v8773_v54, %s7976_s29  ;;  %11812 = vst [vmem:[#allocation47_spill] sm:$0xff] %v8842_v51  ;;  %11814 = vst [vmem:[#allocation49_spill] sm:$0xff] %v8855_v37  ;;  %v1455_v22 = vrot.slane %v8853_v47, %v8411_v44  ;;  %v1459_v34 = vrot.slane %v8853_v47, %v8405_v43 }
 0x142   : > { %11815 = vst [vmem:[#allocation50_spill] sm:$0xff] %v8857_v35  ;;  %v1247_v61 = vrot.slane %v8861_v56, %v8415_v46  ;;  %v1475_v51 = vrot.slane %v8853_v47, %v8397_v39  ;;  %v1255_v37 = vrot.slane %v8861_v56, %v8397_v39 }
 0x143   : > { %v8826_v29 = vpop.permute.xlu0 %1048  ;;  %v1051_v14 = vpop.permute.xlu1 %1050 }
 0x144   : > { %11811 = vst [vmem:[#allocation46_spill] sm:$0xff] %v8826_v29  ;;  %v1065_v59 = vsel %vm1011_vm2, %v8826_v29, %v1051_v14  ;;  %v1479_v29 = vrot.slane %v8853_v47, %v8399_v40 }
 0x145   : > { %v8847_v49 = vmul.f32 %v1145_v2, %v1065_v59  ;;  %3493 = vrot.lane.b32.xlu0 %v8794_v6, %s7976_s29  ;;  %3270 = vrot.lane.b32.xlu1 %v8820_v26, %s7975_s15  ;;  %v8863_v2 = vmul.f32 %v937_v25, %v848_v60  ;;  %v8880_v60 = vld [vmem:[%s8163_s23 + $0x20] sm:$0xff] }
 0x147   : > { %11813 = vst [vmem:[#allocation48_spill] sm:$0xff] %v8847_v49  ;;  %v1053_v33 = vpop.permute.xlu0 %1052  ;;  %v1055_v11 = vpop.permute.xlu1 %1054  ;;  %11816 = vst [vmem:[#allocation51_spill] sm:$0xff] %v8863_v2  ;;  %v1315_v49 = vmul.f32 %v8773_v54, %v1247_v61 }
 0x148   : > { %v1066_v59 = vsel %vm1011_vm2, %v1051_v14, %v1053_v33  ;;  %v1067_v16 = vsel %vm1011_vm2, %v1053_v33, %v1055_v11  ;;  %v1068_v12 = vsel %vm1011_vm2, %v1055_v11, %v8677_v32  ;;  %v1220_v33 = vld [vmem:[%s8163_s23 + $0x70] sm:$0xff]  ;;  %v1251_v11 = vrot.slane %v8861_v56, %v8395_v38 }
 0x149   : > { %v8869_v13 = vmul.f32 %v1149_v3, %v1066_v59  ;;  %v8871_v27 = vmul.f32 %v1153_v53, %v1067_v16  ;;  %v8873_v15 = vmul.f32 %v1157_v7, %v1068_v12  ;;  %3489 = vrot.lane.b32.xlu0 %v8820_v26, %s7976_s29  ;;  %3276 = vrot.lane.b32.xlu1 %v8770_v30, %s7975_s15 }
 0x14a   : > { %v1239_v16 = vrot.slane %v8861_v56, %v8405_v43  ;;  %v1235_v7 = vrot.slane %v8861_v56, %v8411_v44  ;;  %v1243_v59 = vrot.slane %v8861_v56, %v8413_v45 }
 0x14b   : > { %11817 = vst [vmem:[#allocation52_spill] sm:$0xff] %v8869_v13  ;;  %11818 = vst [vmem:[#allocation53_spill] sm:$0xff] %v8871_v27  ;;  %v8884_v32 = vpop.permute.xlu0 %1362  ;;  %v1365_v14 = vpop.permute.xlu1 %1364  ;;  %v1463_v27 = vrot.slane %v8853_v47, %v8413_v45 }
 0x14c   : > { %11819 = vst [vmem:[#allocation54_spill] sm:$0xff] %v8873_v15  ;;  %v1367_v21 = vsel %vm1366_vm4, %v8884_v32, %v1365_v14  ;;  %v1313_v53 = vmul.f32 %v1239_v16, %v1221_v24  ;;  %v1312_v2 = vmul.f32 %v1235_v7, %v1220_v33  ;;  %v1467_v16 = vrot.slane %v8853_v47, %v8415_v46 }
 0x14d   : > { %3278 = vrot.lane.b32.xlu0 %v8880_v60, %s7975_s15  ;;  %3495 = vrot.lane.b32.xlu1 %v8770_v30, %s7976_s29  ;;  %v1532_v3 = vmul.f32 %v1455_v22, %v1367_v21  ;;  %v1471_v22 = vrot.slane %v8853_v47, %v8395_v38  ;;  %v8925_v24 = vmul.f32 %v8794_v6, %v1251_v11 }
 0x14e   : > { %v1314_v7 = vmul.f32 %v8820_v26, %v1243_v59  ;;  %v8940_v59 = vld [vmem:[%s8163_s23 + $0x18] sm:$0xff] }
 0x14f   : > { %v1385_v12 = vpop.permute.xlu0 %1384  ;;  %v1387_v25 = vpop.permute.xlu1 %1386  ;;  %v7349_v13 = vpack.c.bf16 %v1532_v3, %v1312_v2 }
 0x150   : > { %v1441_v35 = vsel %vm1366_vm4, %v1365_v14, %v1385_v12  ;;  %v1412_v14 = vsel %vm1366_vm4, %v1385_v12, %v1387_v25 }
 0x151   : > { %v1533_v15 = vmul.f32 %v1459_v34, %v1441_v35  ;;  %3497 = vrot.lane.b32.xlu0 %v8880_v60, %s7976_s29  ;;  %3710 = vrot.lane.b32.xlu1 %v8773_v54, %s7977_s20  ;;  %v1259_v35 = vrot.slane %v8861_v56, %v8399_v40  ;;  %v1534_v58 = vmul.f32 %v1463_v27, %v1412_v14 }
 0x153   : > { %v1389_v21 = vpop.permute.xlu0 %1388  ;;  %v1391_v34 = vpop.permute.xlu1 %1390  ;;  %v7347_v33 = vpack.c.bf16 %v1533_v15, %v1313_v53  ;;  %v8949_v61 = vmul.f32 %v8880_v60, %v1259_v35  ;;  %v1483_v35 = vrot.slane %v8853_v47, %v8460_v18 }
 0x154   : > { %v1413_v12 = vsel %vm1366_vm4, %v1387_v25, %v1389_v21  ;;  %v1414_v11 = vsel %vm1366_vm4, %v1389_v21, %v1391_v34 }
 0x155   : > { %v1535_v15 = vmul.f32 %v1467_v16, %v1413_v12  ;;  %v8942_v53 = vmul.f32 %v1471_v22, %v1414_v11  ;;  %3712 = vrot.lane.b32.xlu0 %v8794_v6, %s7977_s20  ;;  %3929 = vrot.lane.b32.xlu1 %v8773_v54, %s7978_s11  ;;  %11820 = vst [vmem:[#allocation55_spill] sm:$0xff] %v8949_v61 }
 0x156   : > { %7348 = vmatprep.subr.bf16.mxu0 %v7347_v33  ;;  %v8954_v16 = vmul.f32 %v8940_v59, %v1255_v37  ;;  %v1263_v22 = vrot.slane %v8861_v56, %v8460_v18  ;;  %v4995_v33 = vld [vmem:[%s8163_s23 + $0x28] sm:$0xff] }
 0x157   : > { %7350 = vmatpush1.bf16.msra.mxu0 %v7349_v13  ;;  %v1393_v25 = vpop.permute.xlu0 %1392  ;;  %v1395_v27 = vpop.permute.xlu1 %1394  ;;  %v7399_v3 = vpack.c.bf16 %v1535_v15, %v1315_v49  ;;  %v7401_v49 = vpack.c.bf16 %v1534_v58, %v1314_v7  ;;  %v1227_v37 = vld [vmem:[#allocation6 + $0x44] ss:$8 sm:$0xf]  ;;  %v1447_v7 = vld [vmem:[#allocation6 + $0x45] ss:$8 sm:$0xf] }
 0x158   : > { %v1415_v14 = vsel %vm1366_vm4, %v1391_v34, %v1393_v25  ;;  %v1416_v21 = vsel %vm1366_vm4, %v1393_v25, %v1395_v27  ;;  %v1228_v56 = vld [vmem:[#allocation6 + $0x44] ss:$8 sm:$0xf0]  ;;  %v8979_v11 = vmul.f32 %v4995_v33, %v1263_v22  ;;  %v1448_v15 = vld [vmem:[#allocation6 + $0x45] ss:$8 sm:$0xf0] }
 0x159   : > { %v8963_v12 = vmul.f32 %v1475_v51, %v1415_v14  ;;  %v8965_v13 = vmul.f32 %v1479_v29, %v1416_v21  ;;  %3931 = vrot.lane.b32.xlu0 %v8794_v6, %s7978_s11  ;;  %3708 = vrot.lane.b32.xlu1 %v8820_v26, %s7977_s20  ;;  %v8991_v14 = vor.u32 %v1448_v15, %v1447_v7  ;;  %v1216_v33 = vld [vmem:[%s8163_s23 + $0x50] sm:$0xff]  ;;  %v1218_v29 = vld [vmem:[%s8163_s23 + $0x60] sm:$0xff] }
 0x15a   : > { %7400 = vmatprep.subr.bf16.mxu1 %v7399_v3  ;;  %11824 = vst [vmem:[#allocation59_spill] sm:$0xff] %v8979_v11  ;;  %v8985_v3 = vor.u32 %v1228_v56, %v1227_v37 }
 0x15b   : > { %11821 = vst [vmem:[#allocation56_spill] sm:$0xff] %v8965_v13  ;;  %7402 = vmatpush1.bf16.msra.mxu1 %v7401_v49  ;;  %v8973_v47 = vpop.permute.xlu0 %1396  ;;  %v8975_v51 = vpop.permute.xlu1 %1398  ;;  %11827 = vst [vmem:[#allocation62_spill] sm:$0xff] %v8991_v14  ;;  %v1503_v49 = vrot.slane %v8991_v14, %v8395_v38  ;;  %v1507_v2 = vrot.slane %v8991_v14, %v8397_v39 }
 0x15c   : > { %11822 = vst [vmem:[#allocation57_spill] sm:$0xff] %v8973_v47  ;;  %11823 = vst [vmem:[#allocation58_spill] sm:$0xff] %v8975_v51  ;;  %v1417_v58 = vsel %vm1366_vm4, %v1395_v27, %v8973_v47  ;;  %v1283_v27 = vrot.slane %v8985_v3, %v8395_v38  ;;  %v1291_v7 = vrot.slane %v8985_v3, %v8399_v40 }
 0x15d   : > { %v8983_v25 = vmul.f32 %v1483_v35, %v1417_v58  ;;  %11826 = vst [vmem:[#allocation61_spill] sm:$0xff] %v8985_v3  ;;  %3927 = vrot.lane.b32.xlu0 %v8820_v26, %s7978_s11  ;;  %3714 = vrot.lane.b32.xlu1 %v8770_v30, %s7977_s20  ;;  %v1287_v15 = vrot.slane %v8985_v3, %v8397_v39 }
 0x15e   : > { %v9010_v56 = vmul.f32 %v1283_v27, %v1216_v33  ;;  %v1295_v34 = vrot.slane %v8985_v3, %v8460_v18  ;;  %v5003_v27 = vld [vmem:[%s8163_s23 + $0x68] sm:$0xff]  ;;  %v1511_v47 = vrot.slane %v8991_v14, %v8399_v40  ;;  %v9037_v17 = vmul.f32 %v1291_v7, %v1218_v29 }
 0x15f   : > { %11825 = vst [vmem:[#allocation60_spill] sm:$0xff] %v8983_v25  ;;  %v8993_v21 = vpop.permute.xlu0 %1400  ;;  %v8995_v22 = vpop.permute.xlu1 %1402  ;;  %v1664_v29 = vld [vmem:[#allocation6 + $0x6] ss:$8 sm:$0xf0] }
 0x160   : > { %11828 = vst [vmem:[#allocation63_spill] sm:$0xff] %v8993_v21  ;;  %11829 = vst [vmem:[#allocation64_spill] sm:$0xff] %v8995_v22  ;;  %v2015_v22 = vld [vmem:[%s8163_s23 + $0x58] sm:$0xff]  ;;  %v9041_v0 = vmul.f32 %v5003_v27, %v1295_v34 }
 0x161   : > { %3716 = vrot.lane.b32.xlu0 %v8880_v60, %s7977_s20  ;;  %3933 = vrot.lane.b32.xlu1 %v8770_v30, %s7978_s11  ;;  %11831 = vst [vmem:[#allocation66_spill] sm:$0xff] %v9010_v56  ;;  %11833 = vst [vmem:[#allocation68_spill] sm:$0xff] %v9037_v17  ;;  %v1663_v34 = vld [vmem:[#allocation6 + $0x6] ss:$8 sm:$0xf] }
 0x162   : > { %11835 = vst [vmem:[#allocation70_spill] sm:$0xff] %v9041_v0 }
 0x163   : > { %v9008_v37 = vpop.permute.xlu0 %1404  ;;  %v1407_v58 = vpop.permute.xlu1 %1406 }
 0x164   : > { %11830 = vst [vmem:[#allocation65_spill] sm:$0xff] %v9008_v37  ;;  %v1422_v35 = vsel %vm1366_vm4, %v9008_v37, %v1407_v58  ;;  %v1515_v37 = vrot.slane %v8991_v14, %v8460_v18 }
 0x165   : > { %v9025_v33 = vmul.f32 %v1503_v49, %v1422_v35  ;;  %3935 = vrot.lane.b32.xlu0 %v8880_v60, %s7978_s11  ;;  %4147 = vrot.lane.b32.xlu1 %v8794_v6, %s7971_s30  ;;  %v9039_v49 = vmul.f32 %v2015_v22, %v1287_v15  ;;  %v1883_v22 = vld [vmem:[#allocation6 + $0x7] ss:$8 sm:$0xf] }
 0x167   : > { %11832 = vst [vmem:[#allocation67_spill] sm:$0xff] %v9025_v33  ;;  %v1409_v21 = vpop.permute.xlu0 %1408  ;;  %v1411_v35 = vpop.permute.xlu1 %1410  ;;  %11834 = vst [vmem:[#allocation69_spill] sm:$0xff] %v9039_v49 }
 0x168   : > { %v1423_v5 = vsel %vm1366_vm4, %v1407_v58, %v1409_v21  ;;  %v1424_v41 = vsel %vm1366_vm4, %v1409_v21, %v1411_v35  ;;  %v1425_v3 = vsel %vm1366_vm4, %v1411_v35, %v8884_v32  ;;  %v1884_v58 = vld [vmem:[#allocation6 + $0x7] ss:$8 sm:$0xf0] }
 0x169   : > { %v9047_v55 = vmul.f32 %v1507_v2, %v1423_v5  ;;  %v9049_v14 = vmul.f32 %v1511_v47, %v1424_v41  ;;  %v9051_v51 = vmul.f32 %v1515_v37, %v1425_v3  ;;  %4149 = vrot.lane.b32.xlu0 %v8770_v30, %s7971_s30  ;;  %4366 = vrot.lane.b32.xlu1 %v8794_v6, %s7972_s9 }
 0x16a   : > { %v9065_v47 = vor.u32 %v1664_v29, %v1663_v34  ;;  %v9071_v3 = vor.u32 %v1884_v58, %v1883_v22  ;;  %v9089_v58 = vld [vmem:[%s8163_s23 + $0x28] sm:$0xff] }
 0x16b   : > { %11836 = vst [vmem:[#allocation71_spill] sm:$0xff] %v9047_v55  ;;  %11837 = vst [vmem:[#allocation72_spill] sm:$0xff] %v9049_v14  ;;  %v9059_v32 = vpop.permute.xlu0 %1582  ;;  %v1585_v5 = vpop.permute.xlu1 %1584 }
 0x16c   : > { %11838 = vst [vmem:[#allocation73_spill] sm:$0xff] %v9051_v51  ;;  %11839 = vst [vmem:[#allocation74_spill] sm:$0xff] %v9059_v32  ;;  %v1675_v15 = vrot.slane %v9065_v47, %v8411_v44  ;;  %v1679_v27 = vrot.slane %v9065_v47, %v8405_v43  ;;  %v1587_v35 = vsel %vm1586_vm5, %v9059_v32, %v1585_v5 }
 0x16d   : > { %4368 = vrot.lane.b32.xlu0 %v8770_v30, %s7972_s9  ;;  %4145 = vrot.lane.b32.xlu1 %v8773_v54, %s7971_s30  ;;  %v1899_v34 = vrot.slane %v9071_v3, %v8405_v43  ;;  %v1895_v29 = vrot.slane %v9071_v3, %v8411_v44 }
 0x16e   : > { %v1752_v41 = vmul.f32 %v1675_v15, %v1587_v35  ;;  %v1683_v15 = vrot.slane %v9065_v47, %v8413_v45 }
 0x16f   : > { %v1605_v37 = vpop.permute.xlu0 %1604  ;;  %v1805_v7 = vpop.permute.xlu1 %1804 }
 0x170   : > { %v1661_v22 = vsel %vm1586_vm5, %v1585_v5, %v1605_v37 }
 0x171   : > { %4364 = vrot.lane.b32.xlu0 %v8773_v54, %s7972_s9  ;;  %4151 = vrot.lane.b32.xlu1 %v8880_v60, %s7971_s30  ;;  %v1753_v0 = vmul.f32 %v1679_v27, %v1661_v22  ;;  %v2103_v27 = vld [vmem:[#allocation6 + $0x80] ss:$8 sm:$0xf] }
 0x173   : > { %v1825_v21 = vpop.permute.xlu0 %1824  ;;  %v9091_v2 = vpop.permute.xlu1 %1802 }
 0x174   : > { %11840 = vst [vmem:[#allocation75_spill] sm:$0xff] %v9091_v2  ;;  %v1881_v17 = vsel %vm1806_vm6, %v1805_v7, %v1825_v21  ;;  %v1807_v14 = vsel %vm1806_vm6, %v9091_v2, %v1805_v7  ;;  %v1687_v7 = vrot.slane %v9065_v47, %v8415_v46 }
 0x175   : > { %v1973_v51 = vmul.f32 %v1899_v34, %v1881_v17  ;;  %v1972_v56 = vmul.f32 %v1895_v29, %v1807_v14  ;;  %4153 = vrot.lane.b32.xlu0 %v9089_v58, %s7971_s30  ;;  %4370 = vrot.lane.b32.xlu1 %v8880_v60, %s7972_s9  ;;  %v2104_v17 = vld [vmem:[#allocation6 + $0x80] ss:$8 sm:$0xf0] }
 0x176   : > { %v9119_v29 = vor.u32 %v2104_v17, %v2103_v27 }
 0x177   : > { %v1607_v5 = vpop.permute.xlu0 %1606  ;;  %v9100_v33 = vpop.permute.xlu1 %1608  ;;  %v7351_v32 = vpack.c.bf16 %v1973_v51, %v1753_v0  ;;  %v7353_v49 = vpack.c.bf16 %v1972_v56, %v1752_v41  ;;  %v1903_v0 = vrot.slane %v9071_v3, %v8413_v45  ;;  %v1907_v51 = vrot.slane %v9071_v3, %v8415_v46  ;;  %v2322_v56 = vld [vmem:[#allocation6 + $0x81] ss:$8 sm:$0xf] }
 0x178   : > { %v1632_v14 = vsel %vm1586_vm5, %v1605_v37, %v1607_v5  ;;  %v2323_v41 = vld [vmem:[#allocation6 + $0x81] ss:$8 sm:$0xf0]  ;;  %v1633_v35 = vsel %vm1586_vm5, %v1607_v5, %v9100_v33  ;;  %11841 = vst [vmem:[#allocation76_spill] sm:$0xff] %v9119_v29 }
 0x179   : > { %4372 = vrot.lane.b32.xlu0 %v9089_v58, %s7972_s9  ;;  %4585 = vrot.lane.b32.xlu1 %v8794_v6, %s7973_s16  ;;  %v1754_v22 = vmul.f32 %v1683_v15, %v1632_v14  ;;  %v9124_v62 = vor.u32 %v2323_v41, %v2322_v56  ;;  %v1755_v31 = vmul.f32 %v1687_v7, %v1633_v35 }
 0x17a   : > { %7352 = vmatprep.subr.bf16.mxu0 %v7351_v32 }
 0x17b   : > { %7354 = vmatpush1.bf16.msra.mxu0 %v7353_v49  ;;  %v1827_v37 = vpop.permute.xlu0 %1826  ;;  %v9117_v34 = vpop.permute.xlu1 %1828  ;;  %11842 = vst [vmem:[#allocation77_spill] sm:$0xff] %v9124_v62  ;;  %v2334_v14 = vrot.slane %v9124_v62, %v8411_v44 }
 0x17c   : > { %v1852_v2 = vsel %vm1806_vm6, %v1825_v21, %v1827_v37  ;;  %v1853_v55 = vsel %vm1806_vm6, %v1827_v37, %v9117_v34  ;;  %v2119_v21 = vrot.slane %v9119_v29, %v8405_v43 }
 0x17d   : > { %v1974_v61 = vmul.f32 %v1903_v0, %v1852_v2  ;;  %v1975_v13 = vmul.f32 %v1907_v51, %v1853_v55  ;;  %4587 = vrot.lane.b32.xlu0 %v8770_v30, %s7973_s16  ;;  %4804 = vrot.lane.b32.xlu1 %v8794_v6, %s7974_s14  ;;  %v2338_v55 = vrot.slane %v9124_v62, %v8405_v43 }
 0x17f   : > { %v2025_v49 = vpop.permute.xlu0 %2024  ;;  %v2045_v32 = vpop.permute.xlu1 %2044  ;;  %v7403_v5 = vpack.c.bf16 %v1975_v13, %v1755_v31  ;;  %v7405_v15 = vpack.c.bf16 %v1974_v61, %v1754_v22  ;;  %v2115_v61 = vrot.slane %v9119_v29, %v8411_v44 }
 0x180   : > { %v2101_v2 = vsel %vm2026_vm7, %v2025_v49, %v2045_v32 }
 0x181   : > { %4806 = vrot.lane.b32.xlu0 %v8770_v30, %s7974_s14  ;;  %4583 = vrot.lane.b32.xlu1 %v8773_v54, %s7973_s16  ;;  %v2193_v13 = vmul.f32 %v2119_v21, %v2101_v2  ;;  %v2541_v2 = vld [vmem:[#allocation6 + $0x82] ss:$8 sm:$0xf] }
 0x182   : > { %7404 = vmatprep.subr.bf16.mxu1 %v7403_v5 }
 0x183   : > { %7406 = vmatpush1.bf16.msra.mxu1 %v7405_v15  ;;  %v2260_v7 = vpop.permute.xlu0 %2259  ;;  %v2262_v27 = vpop.permute.xlu1 %2261 }
 0x184   : > { %v2289_v31 = vsel %vm352_vm1, %v2260_v7, %v2262_v27 }
 0x185   : > { %v2412_v17 = vmul.f32 %v2338_v55, %v2289_v31  ;;  %4802 = vrot.lane.b32.xlu0 %v8773_v54, %s7974_s14  ;;  %4589 = vrot.lane.b32.xlu1 %v8880_v60, %s7973_s16  ;;  %v2123_v55 = vrot.slane %v9119_v29, %v8413_v45 }
 0x187   : > { %v9148_v0 = vpop.permute.xlu0 %2022  ;;  %v9150_v51 = vpop.permute.xlu1 %2241  ;;  %v7355_v56 = vpack.c.bf16 %v2412_v17, %v2193_v13  ;;  %v2346_v13 = vrot.slane %v9124_v62, %v8415_v46  ;;  %v2760_v17 = vld [vmem:[#allocation6 + $0x83] ss:$8 sm:$0xf] }
 0x188   : > { %11843 = vst [vmem:[#allocation78_spill] sm:$0xff] %v9148_v0  ;;  %11844 = vst [vmem:[#allocation79_spill] sm:$0xff] %v9150_v51  ;;  %v2027_v41 = vsel %vm2026_vm7, %v9148_v0, %v2025_v49  ;;  %v2320_v35 = vsel %vm352_vm1, %v9150_v51, %v2260_v7  ;;  %v2127_v49 = vrot.slane %v9119_v29, %v8415_v46  ;;  %v2542_v7 = vld [vmem:[#allocation6 + $0x82] ss:$8 sm:$0xf0] }
 0x189   : > { %v2192_v37 = vmul.f32 %v2115_v61, %v2027_v41  ;;  %v2411_v22 = vmul.f32 %v2334_v14, %v2320_v35  ;;  %4591 = vrot.lane.b32.xlu0 %v9089_v58, %s7973_s16  ;;  %4808 = vrot.lane.b32.xlu1 %v8880_v60, %s7974_s14  ;;  %v2342_v61 = vrot.slane %v9124_v62, %v8413_v45  ;;  %v2761_v14 = vld [vmem:[#allocation6 + $0x83] ss:$8 sm:$0xf0] }
 0x18a   : > { %7356 = vmatprep.subr.bf16.mxu0 %v7355_v56  ;;  %v9179_v35 = vor.u32 %v2542_v7, %v2541_v2  ;;  %v9184_v0 = vor.u32 %v2761_v14, %v2760_v17  ;;  %v9191_v7 = vld [vmem:[%s8163_s23 + $0x30] sm:$0xff] }
 0x18b   : > { %v2047_v5 = vpop.permute.xlu0 %2046  ;;  %v9160_v15 = vpop.permute.xlu1 %2048  ;;  %v7357_v21 = vpack.c.bf16 %v2411_v22, %v2192_v37 }
 0x18c   : > { %11845 = vst [vmem:[#allocation80_spill] sm:$0xff] %v9160_v15  ;;  %v2072_v31 = vsel %vm2026_vm7, %v2045_v32, %v2047_v5  ;;  %v2073_v56 = vsel %vm2026_vm7, %v2047_v5, %v9160_v15  ;;  %11847 = vst [vmem:[#allocation82_spill] sm:$0xff] %v9179_v35  ;;  %v2772_v17 = vrot.slane %v9184_v0, %v8411_v44 }
 0x18d   : > { %4810 = vrot.lane.b32.xlu0 %v9089_v58, %s7974_s14  ;;  %5160 = vrot.lane.b32.xlu1 %v8770_v30, %s7975_s15  ;;  %v2194_v37 = vmul.f32 %v2123_v55, %v2072_v31  ;;  %11848 = vst [vmem:[#allocation83_spill] sm:$0xff] %v9184_v0  ;;  %v2195_v29 = vmul.f32 %v2127_v49, %v2073_v56 }
 0x18e   : > { %7358 = vmatpush1.bf16.msra.mxu0 %v7357_v21  ;;  %v2553_v31 = vrot.slane %v9179_v35, %v8411_v44 }
 0x18f   : > { %v2264_v41 = vpop.permute.xlu0 %2263  ;;  %v9177_v32 = vpop.permute.xlu1 %2265 }
 0x190   : > { %11846 = vst [vmem:[#allocation81_spill] sm:$0xff] %v9177_v32  ;;  %v2290_v22 = vsel %vm352_vm1, %v2262_v27, %v2264_v41  ;;  %v2291_v51 = vsel %vm352_vm1, %v2264_v41, %v9177_v32  ;;  %v2557_v27 = vrot.slane %v9179_v35, %v8405_v43 }
 0x191   : > { %v2413_v62 = vmul.f32 %v2342_v61, %v2290_v22  ;;  %v2414_v11 = vmul.f32 %v2346_v13, %v2291_v51  ;;  %5162 = vrot.lane.b32.xlu0 %v8880_v60, %s7975_s15  ;;  %5158 = vrot.lane.b32.xlu1 %v8794_v6, %s7975_s15  ;;  %v2776_v51 = vrot.slane %v9184_v0, %v8405_v43 }
 0x193   : > { %v2479_v5 = vpop.permute.xlu0 %2478  ;;  %v2481_v21 = vpop.permute.xlu1 %2480  ;;  %v7407_v2 = vpack.c.bf16 %v2414_v11, %v2195_v29  ;;  %v7409_v55 = vpack.c.bf16 %v2413_v62, %v2194_v37 }
 0x194   : > { %v2508_v49 = vsel %vm571_vm0, %v2479_v5, %v2481_v21 }
 0x195   : > { %5164 = vrot.lane.b32.xlu0 %v9089_v58, %s7975_s15  ;;  %5166 = vrot.lane.b32.xlu1 %v9191_v7, %s7975_s15  ;;  %v2631_v61 = vmul.f32 %v2557_v27, %v2508_v49  ;;  %v2979_v49 = vld [vmem:[#allocation6 + $0x84] ss:$8 sm:$0xf] }
 0x196   : > { %7408 = vmatprep.subr.bf16.mxu1 %v7407_v2  ;;  %v3117_v2 = vld [vmem:[#allocation6 + $0x85] ss:$8 sm:$0xf] }
 0x197   : > { %7410 = vmatpush1.bf16.msra.mxu1 %v7409_v55  ;;  %v2698_v11 = vpop.permute.xlu0 %2697  ;;  %v2700_v62 = vpop.permute.xlu1 %2699  ;;  %v3118_v55 = vld [vmem:[#allocation6 + $0x85] ss:$8 sm:$0xf0] }
 0x198   : > { %v2727_v29 = vsel %vm791_vm3, %v2698_v11, %v2700_v62 }
 0x199   : > { %v2850_v13 = vmul.f32 %v2776_v51, %v2727_v29  ;;  %5379 = vrot.lane.b32.xlu0 %v8770_v30, %s7976_s29  ;;  %5381 = vrot.lane.b32.xlu1 %v8880_v60, %s7976_s29  ;;  %v2980_v29 = vld [vmem:[#allocation6 + $0x84] ss:$8 sm:$0xf0] }
 0x19b   : > { %v9211_v14 = vpop.permute.xlu0 %2460  ;;  %v9213_v56 = vpop.permute.xlu1 %2679  ;;  %v7359_v41 = vpack.c.bf16 %v2850_v13, %v2631_v61 }
 0x19c   : > { %11849 = vst [vmem:[#allocation84_spill] sm:$0xff] %v9211_v14  ;;  %11850 = vst [vmem:[#allocation85_spill] sm:$0xff] %v9213_v56  ;;  %v2539_v37 = vsel %vm571_vm0, %v9211_v14, %v2479_v5  ;;  %v2758_v22 = vsel %vm791_vm3, %v9213_v56, %v2698_v11  ;;  %v9225_v14 = vor.u32 %v3118_v55, %v3117_v2 }
 0x19d   : > { %v2630_v27 = vmul.f32 %v2553_v31, %v2539_v37  ;;  %v2849_v51 = vmul.f32 %v2772_v17, %v2758_v22  ;;  %5598 = vrot.lane.b32.xlu0 %v8770_v30, %s7977_s20  ;;  %5600 = vrot.lane.b32.xlu1 %v8880_v60, %s7977_s20  ;;  %v2561_v11 = vrot.slane %v9179_v35, %v8413_v45 }
 0x19e   : > { %7360 = vmatprep.subr.bf16.mxu0 %v7359_v41  ;;  %11852 = vst [vmem:[#allocation87_spill] sm:$0xff] %v9225_v14  ;;  %v2565_v31 = vrot.slane %v9179_v35, %v8415_v46  ;;  %v9231_v17 = vor.u32 %v2980_v29, %v2979_v49  ;;  %v2780_v41 = vrot.slane %v9184_v0, %v8413_v45 }
 0x19f   : > { %v2483_v61 = vpop.permute.xlu0 %2482  ;;  %v9223_v13 = vpop.permute.xlu1 %2484  ;;  %v7361_v5 = vpack.c.bf16 %v2849_v51, %v2630_v27  ;;  %v2784_v22 = vrot.slane %v9184_v0, %v8415_v46 }
 0x1a0   : > { %11851 = vst [vmem:[#allocation86_spill] sm:$0xff] %v9223_v13  ;;  %11853 = vst [vmem:[#allocation88_spill] sm:$0xff] %v9231_v17  ;;  %v2509_v37 = vsel %vm571_vm0, %v2481_v21, %v2483_v61  ;;  %v2510_v2 = vsel %vm571_vm0, %v2483_v61, %v9223_v13  ;;  %v3133_v21 = vrot.slane %v9225_v14, %v8405_v43 }
 0x1a1   : > { %5377 = vrot.lane.b32.xlu0 %v8794_v6, %s7976_s29  ;;  %5596 = vrot.lane.b32.xlu1 %v8794_v6, %s7977_s20  ;;  %v2632_v51 = vmul.f32 %v2561_v11, %v2509_v37  ;;  %v2995_v56 = vrot.slane %v9231_v17, %v8405_v43  ;;  %v2633_v35 = vmul.f32 %v2565_v31, %v2510_v2  ;;  %v9264_v31 = vld [vmem:[%s11603_s1 + $0x8] sm:$0xff] }
 0x1a2   : > { %7362 = vmatpush1.bf16.msra.mxu0 %v7361_v5  ;;  %7324 = vmatprep.mubr.msk.f32.mxu0 %vm6444_vm8, %v9264_v31  ;;  %v3137_v2 = vrot.slane %v9225_v14, %v8413_v45 }
 0x1a3   : > { %v2702_v55 = vpop.permute.xlu0 %2701  ;;  %v9244_v27 = vpop.permute.xlu1 %2703  ;;  %7325 = vmatprep.mubr.msk.f32.mxu1 %vm6444_vm8, %v9264_v31 }
 0x1a4   : > { %11854 = vst [vmem:[#allocation89_spill] sm:$0xff] %v9244_v27  ;;  %v2728_v49 = vsel %vm791_vm3, %v2700_v62, %v2702_v55  ;;  %v2729_v29 = vsel %vm791_vm3, %v2702_v55, %v9244_v27  ;;  %v3207_v62 = vmul.f32 %v8773_v54, %v3133_v21  ;;  %v3129_v55 = vrot.slane %v9225_v14, %v8411_v44 }
 0x1a5   : > { %v2851_v0 = vmul.f32 %v2780_v41, %v2728_v49  ;;  %v2852_v15 = vmul.f32 %v2784_v22, %v2729_v29  ;;  %5383 = vrot.lane.b32.xlu0 %v9089_v58, %s7976_s29  ;;  %5385 = vrot.lane.b32.xlu1 %v9191_v7, %s7976_s29  ;;  %v2991_v54 = vrot.slane %v9231_v17, %v8411_v44  ;;  %v3336_v49 = vld [vmem:[#allocation6 + $0x86] ss:$8 sm:$0xf] }
 0x1a6   : > { %v3337_v29 = vld [vmem:[#allocation6 + $0x86] ss:$8 sm:$0xf0] }
 0x1a7   : > { %v2917_v61 = vpop.permute.xlu0 %2916  ;;  %v2919_v5 = vpop.permute.xlu1 %2918  ;;  %v7411_v11 = vpack.c.bf16 %v2852_v15, %v2633_v35  ;;  %v7413_v37 = vpack.c.bf16 %v2851_v0, %v2632_v51  ;;  %v2999_v51 = vrot.slane %v9231_v17, %v8413_v45 }
 0x1a8   : > { %v2946_v13 = vsel %vm1011_vm2, %v2917_v61, %v2919_v5 }
 0x1a9   : > { %v3069_v41 = vmul.f32 %v2995_v56, %v2946_v13  ;;  %5602 = vrot.lane.b32.xlu0 %v9089_v58, %s7977_s20  ;;  %5604 = vrot.lane.b32.xlu1 %v9191_v7, %s7977_s20  ;;  %v3206_v56 = vmul.f32 %v8820_v26, %v3129_v55  ;;  %v3141_v13 = vrot.slane %v9225_v14, %v8415_v46 }
 0x1aa   : > { %7412 = vmatprep.subr.bf16.mxu1 %v7411_v11  ;;  %v3003_v26 = vrot.slane %v9231_v17, %v8415_v46  ;;  %v3555_v11 = vld [vmem:[#allocation6 + $0x87] ss:$8 sm:$0xf]  ;;  %v3208_v17 = vmul.f32 %v8794_v6, %v3137_v2 }
 0x1ab   : > { %7414 = vmatpush1.bf16.msra.mxu1 %v7413_v37  ;;  %v9274_v0 = vpop.permute.xlu0 %2898  ;;  %v2921_v15 = vpop.permute.xlu1 %2920  ;;  %v7363_v35 = vpack.c.bf16 %v3207_v62, %v3069_v41  ;;  %v3556_v37 = vld [vmem:[#allocation6 + $0x87] ss:$8 sm:$0xf0] }
 0x1ac   : > { %11855 = vst [vmem:[#allocation90_spill] sm:$0xff] %v9274_v0  ;;  %v2977_v22 = vsel %vm1011_vm2, %v9274_v0, %v2917_v61  ;;  %v2947_v61 = vsel %vm1011_vm2, %v2919_v5, %v2921_v15  ;;  %v9299_v0 = vor.u32 %v3337_v29, %v3336_v49  ;;  %v9306_v5 = vor.u32 %v3556_v37, %v3555_v11 }
 0x1ad   : > { %v3068_v21 = vmul.f32 %v2991_v54, %v2977_v22  ;;  %5817 = vrot.lane.b32.xlu0 %v8770_v30, %s7978_s11  ;;  %5819 = vrot.lane.b32.xlu1 %v8880_v60, %s7978_s11  ;;  %v3209_v54 = vmul.f32 %v3141_v13, %v8770_v30  ;;  %v3070_v14 = vmul.f32 %v2999_v51, %v2947_v61 }
 0x1ae   : > { %7364 = vmatprep.subr.bf16.mxu0 %v7363_v35  ;;  %11857 = vst [vmem:[#allocation92_spill] sm:$0xff] %v9299_v0  ;;  %11858 = vst [vmem:[#allocation93_spill] sm:$0xff] %v9306_v5  ;;  %v3348_v49 = vrot.slane %v9299_v0, %v8411_v44 }
 0x1af   : > { %v9294_v62 = vpop.permute.xlu0 %2922  ;;  %v3273_v55 = vpop.permute.xlu1 %3272  ;;  %v7365_v41 = vpack.c.bf16 %v3206_v56, %v3068_v21  ;;  %v7417_v2 = vpack.c.bf16 %v3208_v17, %v3070_v14  ;;  %v3567_v14 = vrot.slane %v9306_v5, %v8411_v44 }
 0x1b0   : > { %11856 = vst [vmem:[#allocation91_spill] sm:$0xff] %v9294_v62  ;;  %v2948_v22 = vsel %vm1011_vm2, %v2921_v15, %v9294_v62  ;;  %v3352_v15 = vrot.slane %v9299_v0, %v8405_v43 }
 0x1b1   : > { %v3071_v27 = vmul.f32 %v3003_v26, %v2948_v22  ;;  %5815 = vrot.lane.b32.xlu0 %v8794_v6, %s7978_s11  ;;  %5821 = vrot.lane.b32.xlu1 %v9089_v58, %s7978_s11  ;;  %v3571_v6 = vrot.slane %v9306_v5, %v8405_v43 }
 0x1b2   : > { %7366 = vmatpush1.bf16.msra.mxu0 %v7365_v41 }
 0x1b3   : > { %v3275_v35 = vpop.permute.xlu0 %3274  ;;  %v3492_v56 = vpop.permute.xlu1 %3491  ;;  %v7415_v13 = vpack.c.bf16 %v3209_v54, %v3071_v27 }
 0x1b4   : > { %v3303_v21 = vsel %vm1366_vm4, %v3273_v55, %v3275_v35 }
 0x1b5   : > { %5823 = vrot.lane.b32.xlu0 %v9191_v7, %s7978_s11  ;;  %1610 = vrot.lane.b32.xlu1 %v8770_v30, %s7976_s29  ;;  %v3426_v29 = vmul.f32 %v3352_v15, %v3303_v21  ;;  %v3360_v21 = vrot.slane %v9299_v0, %v8415_v46 }
 0x1b6   : > { %7416 = vmatprep.subr.bf16.mxu1 %v7415_v13 }
 0x1b7   : > { %7418 = vmatpush1.bf16.msra.mxu1 %v7417_v2  ;;  %v3494_v51 = vpop.permute.xlu0 %3493  ;;  %v9317_v26 = vpop.permute.xlu1 %3270  ;;  %v3774_v2 = vld [vmem:[#allocation6 + $0x100] ss:$8 sm:$0xf] }
 0x1b8   : > { %11859 = vst [vmem:[#allocation94_spill] sm:$0xff] %v9317_v26  ;;  %v3522_v27 = vsel %vm1586_vm5, %v3492_v56, %v3494_v51  ;;  %v3302_v17 = vsel %vm1366_vm4, %v9317_v26, %v3273_v55 }
 0x1b9   : > { %v3645_v61 = vmul.f32 %v3571_v6, %v3522_v27  ;;  %1612 = vrot.lane.b32.xlu0 %v8880_v60, %s7976_s29  ;;  %1830 = vrot.lane.b32.xlu1 %v8770_v30, %s7977_s20  ;;  %v3425_v22 = vmul.f32 %v3348_v49, %v3302_v17  ;;  %v3775_v6 = vld [vmem:[#allocation6 + $0x100] ss:$8 sm:$0xf0]  ;;  %v3579_v27 = vrot.slane %v9306_v5, %v8415_v46  ;;  %v3993_v49 = vld [vmem:[#allocation6 + $0x101] ss:$8 sm:$0xf] }
 0x1ba   : > { %v3356_v17 = vrot.slane %v9299_v0, %v8413_v45 }
 0x1bb   : > { %v9330_v11 = vpop.permute.xlu0 %3489  ;;  %v3277_v37 = vpop.permute.xlu1 %3276  ;;  %v7367_v41 = vpack.c.bf16 %v3645_v61, %v3426_v29  ;;  %v3994_v29 = vld [vmem:[#allocation6 + $0x101] ss:$8 sm:$0xf0] }
 0x1bc   : > { %11860 = vst [vmem:[#allocation95_spill] sm:$0xff] %v9330_v11  ;;  %v3521_v54 = vsel %vm1586_vm5, %v9330_v11, %v3492_v56  ;;  %v3575_v56 = vrot.slane %v9306_v5, %v8413_v45  ;;  %v9360_v11 = vor.u32 %v3775_v6, %v3774_v2  ;;  %v9362_v26 = vor.u32 %v3994_v29, %v3993_v49 }
 0x1bd   : > { %v3644_v13 = vmul.f32 %v3567_v14, %v3521_v54  ;;  %1832 = vrot.lane.b32.xlu0 %v8880_v60, %s7977_s20  ;;  %1614 = vrot.lane.b32.xlu1 %v9089_v58, %s7976_s29 }
 0x1be   : > { %7368 = vmatprep.subr.bf16.mxu0 %v7367_v41  ;;  %11863 = vst [vmem:[#allocation98_spill] sm:$0xff] %v9360_v11  ;;  %11864 = vst [vmem:[#allocation99_spill] sm:$0xff] %v9362_v26  ;;  %v4009_v2 = vrot.slane %v9362_v26, %v8405_v43 }
 0x1bf   : > { %v9338_v30 = vpop.permute.xlu0 %3278  ;;  %v3496_v15 = vpop.permute.xlu1 %3495  ;;  %v7369_v55 = vpack.c.bf16 %v3644_v13, %v3425_v22  ;;  %v3304_v22 = vsel %vm1366_vm4, %v3275_v35, %v3277_v37 }
 0x1c0   : > { %11861 = vst [vmem:[#allocation96_spill] sm:$0xff] %v9338_v30  ;;  %v3305_v61 = vsel %vm1366_vm4, %v3277_v37, %v9338_v30  ;;  %v3523_v14 = vsel %vm1586_vm5, %v3494_v51, %v3496_v15  ;;  %v3427_v51 = vmul.f32 %v3356_v17, %v3304_v22  ;;  %v3790_v37 = vrot.slane %v9360_v11, %v8405_v43 }
 0x1c1   : > { %1616 = vrot.lane.b32.xlu0 %v9191_v7, %s7976_s29  ;;  %1834 = vrot.lane.b32.xlu1 %v9089_v58, %s7977_s20  ;;  %v3428_v5 = vmul.f32 %v3360_v21, %v3305_v61  ;;  %v3646_v30 = vmul.f32 %v3575_v56, %v3523_v14 }
 0x1c2   : > { %7370 = vmatpush1.bf16.msra.mxu0 %v7369_v55 }
 0x1c3   : > { %v9355_v41 = vpop.permute.xlu0 %3497  ;;  %v3711_v54 = vpop.permute.xlu1 %3710 }
 0x1c4   : > { %11862 = vst [vmem:[#allocation97_spill] sm:$0xff] %v9355_v41  ;;  %v3524_v13 = vsel %vm1586_vm5, %v3496_v15, %v9355_v41  ;;  %v7421_v15 = vpack.c.bf16 %v3646_v30, %v3427_v51  ;;  %v4005_v30 = vrot.slane %v9362_v26, %v8411_v44  ;;  %v9402_v51 = vld [vmem:[%s8163_s23 + $0x20] sm:$0xff] }
 0x1c5   : > { %v3647_v62 = vmul.f32 %v3579_v27, %v3524_v13  ;;  %1836 = vrot.lane.b32.xlu0 %v9191_v7, %s7977_s20  ;;  %2050 = vrot.lane.b32.xlu1 %v8940_v59, %s7978_s11  ;;  %v9399_v13 = vld [vmem:[%s8163_s23 + $0x38] sm:$0xff] }
 0x1c7   : > { %v3713_v55 = vpop.permute.xlu0 %3712  ;;  %v3930_v0 = vpop.permute.xlu1 %3929  ;;  %v7419_v35 = vpack.c.bf16 %v3647_v62, %v3428_v5  ;;  %v3786_v5 = vrot.slane %v9360_v11, %v8411_v44 }
 0x1c8   : > { %v3741_v6 = vsel %vm1806_vm6, %v3711_v54, %v3713_v55 }
 0x1c9   : > { %2052 = vrot.lane.b32.xlu0 %v8880_v60, %s7978_s11  ;;  %2267 = vrot.lane.b32.xlu1 %v8880_v60, %s7971_s30  ;;  %v3864_v56 = vmul.f32 %v3790_v37, %v3741_v6  ;;  %v4013_v6 = vrot.slane %v9362_v26, %v8413_v45 }
 0x1ca   : > { %7420 = vmatprep.subr.bf16.mxu1 %v7419_v35 }
 0x1cb   : > { %7422 = vmatpush1.bf16.msra.mxu1 %v7421_v15  ;;  %v3932_v59 = vpop.permute.xlu0 %3931  ;;  %v9377_v21 = vpop.permute.xlu1 %3708  ;;  %v4212_v15 = vld [vmem:[#allocation6 + $0x102] ss:$8 sm:$0xf] }
 0x1cc   : > { %11865 = vst [vmem:[#allocation100_spill] sm:$0xff] %v9377_v21  ;;  %v3960_v62 = vsel %vm2026_vm7, %v3930_v0, %v3932_v59  ;;  %v3740_v27 = vsel %vm1806_vm6, %v9377_v21, %v3711_v54 }
 0x1cd   : > { %v4083_v60 = vmul.f32 %v4009_v2, %v3960_v62  ;;  %2269 = vrot.lane.b32.xlu0 %v9089_v58, %s7971_s30  ;;  %2054 = vrot.lane.b32.xlu1 %v9089_v58, %s7978_s11  ;;  %v3863_v17 = vmul.f32 %v3786_v5, %v3740_v27  ;;  %v4213_v2 = vld [vmem:[#allocation6 + $0x102] ss:$8 sm:$0xf0]  ;;  %v4017_v62 = vrot.slane %v9362_v26, %v8415_v46  ;;  %v4431_v5 = vld [vmem:[#allocation6 + $0x103] ss:$8 sm:$0xf] }
 0x1ce   : > { %v3794_v27 = vrot.slane %v9360_v11, %v8413_v45 }
 0x1cf   : > { %v9390_v49 = vpop.permute.xlu0 %3927  ;;  %v3715_v29 = vpop.permute.xlu1 %3714  ;;  %v7371_v61 = vpack.c.bf16 %v4083_v60, %v3864_v56  ;;  %v4432_v56 = vld [vmem:[#allocation6 + $0x103] ss:$8 sm:$0xf0] }
 0x1d0   : > { %11866 = vst [vmem:[#allocation101_spill] sm:$0xff] %v9390_v49  ;;  %v3959_v14 = vsel %vm2026_vm7, %v9390_v49, %v3930_v0  ;;  %v3798_v0 = vrot.slane %v9360_v11, %v8415_v46  ;;  %v9426_v49 = vor.u32 %v4213_v2, %v4212_v15  ;;  %v9428_v21 = vor.u32 %v4432_v56, %v4431_v5 }
 0x1d1   : > { %v4082_v22 = vmul.f32 %v4005_v30, %v3959_v14  ;;  %2056 = vrot.lane.b32.xlu0 %v9191_v7, %s7978_s11  ;;  %2271 = vrot.lane.b32.xlu1 %v9191_v7, %s7971_s30 }
 0x1d2   : > { %7372 = vmatprep.subr.bf16.mxu0 %v7371_v61  ;;  %11869 = vst [vmem:[#allocation104_spill] sm:$0xff] %v9426_v49  ;;  %11870 = vst [vmem:[#allocation105_spill] sm:$0xff] %v9428_v21  ;;  %v4447_v15 = vrot.slane %v9428_v21, %v8405_v43 }
 0x1d3   : > { %v9404_v54 = vpop.permute.xlu0 %3716  ;;  %v3934_v35 = vpop.permute.xlu1 %3933  ;;  %v7373_v37 = vpack.c.bf16 %v4082_v22, %v3863_v17  ;;  %v3742_v17 = vsel %vm1806_vm6, %v3713_v55, %v3715_v29 }
 0x1d4   : > { %11867 = vst [vmem:[#allocation102_spill] sm:$0xff] %v9404_v54  ;;  %v3743_v60 = vsel %vm1806_vm6, %v3715_v29, %v9404_v54  ;;  %v3961_v30 = vsel %vm2026_vm7, %v3932_v59, %v3934_v35  ;;  %v3865_v59 = vmul.f32 %v3794_v27, %v3742_v17  ;;  %v4228_v29 = vrot.slane %v9426_v49, %v8405_v43 }
 0x1d5   : > { %2273 = vrot.lane.b32.xlu0 %v9399_v13, %s7971_s30  ;;  %2486 = vrot.lane.b32.xlu1 %v9402_v51, %s7972_s9  ;;  %v3866_v26 = vmul.f32 %v3798_v0, %v3743_v60  ;;  %v4084_v54 = vmul.f32 %v4013_v6, %v3961_v30 }
 0x1d6   : > { %7374 = vmatpush1.bf16.msra.mxu0 %v7373_v37 }
 0x1d7   : > { %v9421_v61 = vpop.permute.xlu0 %3935  ;;  %v4148_v14 = vpop.permute.xlu1 %4147 }
 0x1d8   : > { %11868 = vst [vmem:[#allocation103_spill] sm:$0xff] %v9421_v61  ;;  %v3962_v22 = vsel %vm2026_vm7, %v3934_v35, %v9421_v61  ;;  %v7425_v35 = vpack.c.bf16 %v4084_v54, %v3865_v59  ;;  %v4443_v54 = vrot.slane %v9428_v21, %v8411_v44 }
 0x1d9   : > { %v4085_v41 = vmul.f32 %v4017_v62, %v3962_v22  ;;  %2488 = vrot.lane.b32.xlu0 %v9089_v58, %s7972_s9  ;;  %2705 = vrot.lane.b32.xlu1 %v9402_v51, %s7973_s16 }
 0x1db   : > { %v4150_v37 = vpop.permute.xlu0 %4149  ;;  %v4367_v11 = vpop.permute.xlu1 %4366  ;;  %v7423_v55 = vpack.c.bf16 %v4085_v41, %v3866_v26  ;;  %v4224_v41 = vrot.slane %v9426_v49, %v8411_v44 }
 0x1dc   : > { %v4176_v2 = vsel %vm352_vm1, %v4148_v14, %v4150_v37 }
 0x1dd   : > { %2707 = vrot.lane.b32.xlu0 %v9089_v58, %s7973_s16  ;;  %2490 = vrot.lane.b32.xlu1 %v9191_v7, %s7972_s9  ;;  %v4302_v62 = vmul.f32 %v4228_v29, %v4176_v2  ;;  %v4451_v2 = vrot.slane %v9428_v21, %v8413_v45 }
 0x1de   : > { %7424 = vmatprep.subr.bf16.mxu1 %v7423_v55 }
 0x1df   : > { %7426 = vmatpush1.bf16.msra.mxu1 %v7425_v35  ;;  %v4369_v0 = vpop.permute.xlu0 %4368  ;;  %v9443_v6 = vpop.permute.xlu1 %4145  ;;  %v4650_v35 = vld [vmem:[#allocation6 + $0x104] ss:$8 sm:$0xf] }
 0x1e0   : > { %11871 = vst [vmem:[#allocation106_spill] sm:$0xff] %v9443_v6  ;;  %v4395_v26 = vsel %vm571_vm0, %v4367_v11, %v4369_v0  ;;  %v4175_v56 = vsel %vm352_vm1, %v9443_v6, %v4148_v14 }
 0x1e1   : > { %v4521_v5 = vmul.f32 %v4447_v15, %v4395_v26  ;;  %2492 = vrot.lane.b32.xlu0 %v9399_v13, %s7972_s9  ;;  %2709 = vrot.lane.b32.xlu1 %v9191_v7, %s7973_s16  ;;  %v4301_v22 = vmul.f32 %v4224_v41, %v4175_v56  ;;  %v9465_v7 = vld [vmem:[%s8163_s23 + $0x30] sm:$0xff]  ;;  %v4455_v26 = vrot.slane %v9428_v21, %v8415_v46 }
 0x1e2   : > { %v4651_v15 = vld [vmem:[#allocation6 + $0x104] ss:$8 sm:$0xf0]  ;;  %v4869_v41 = vld [vmem:[#allocation6 + $0x105] ss:$8 sm:$0xf]  ;;  %v4232_v56 = vrot.slane %v9426_v49, %v8413_v45 }
 0x1e3   : > { %v9456_v60 = vpop.permute.xlu0 %4364  ;;  %v4152_v30 = vpop.permute.xlu1 %4151  ;;  %v7375_v27 = vpack.c.bf16 %v4521_v5, %v4302_v62  ;;  %v4870_v62 = vld [vmem:[#allocation6 + $0x105] ss:$8 sm:$0xf0] }
 0x1e4   : > { %11872 = vst [vmem:[#allocation107_spill] sm:$0xff] %v9456_v60  ;;  %v4394_v17 = vsel %vm571_vm0, %v9456_v60, %v4367_v11  ;;  %v4236_v11 = vrot.slane %v9426_v49, %v8415_v46  ;;  %v9489_v60 = vor.u32 %v4651_v15, %v4650_v35  ;;  %v9491_v6 = vor.u32 %v4870_v62, %v4869_v41 }
 0x1e5   : > { %v4520_v59 = vmul.f32 %v4443_v54, %v4394_v17  ;;  %2711 = vrot.lane.b32.xlu0 %v9399_v13, %s7973_s16  ;;  %2924 = vrot.lane.b32.xlu1 %v9402_v51, %s7974_s14 }
 0x1e6   : > { %7376 = vmatprep.subr.bf16.mxu0 %v7375_v27  ;;  %11875 = vst [vmem:[#allocation110_spill] sm:$0xff] %v9489_v60  ;;  %11876 = vst [vmem:[#allocation111_spill] sm:$0xff] %v9491_v6  ;;  %v4885_v35 = vrot.slane %v9491_v6, %v8405_v43 }
 0x1e7   : > { %v9467_v55 = vpop.permute.xlu0 %4153  ;;  %v4371_v14 = vpop.permute.xlu1 %4370  ;;  %v7377_v29 = vpack.c.bf16 %v4520_v59, %v4301_v22  ;;  %v4177_v22 = vsel %vm352_vm1, %v4150_v37, %v4152_v30 }
 0x1e8   : > { %11873 = vst [vmem:[#allocation108_spill] sm:$0xff] %v9467_v55  ;;  %v4178_v5 = vsel %vm352_vm1, %v4152_v30, %v9467_v55  ;;  %v4396_v54 = vsel %vm571_vm0, %v4369_v0, %v4371_v14  ;;  %v4303_v0 = vmul.f32 %v4232_v56, %v4177_v22  ;;  %v4666_v30 = vrot.slane %v9489_v60, %v8405_v43 }
 0x1e9   : > { %2926 = vrot.lane.b32.xlu0 %v9089_v58, %s7974_s14  ;;  %2928 = vrot.lane.b32.xlu1 %v9465_v7, %s7974_s14  ;;  %v4304_v21 = vmul.f32 %v4236_v11, %v4178_v5  ;;  %v4522_v55 = vmul.f32 %v4451_v2, %v4396_v54  ;;  %v4662_v2 = vrot.slane %v9489_v60, %v8411_v44  ;;  %v9520_v5 = vld [vmem:[%s8163_s23 + $0x40] sm:$0xff] }
 0x1ea   : > { %7378 = vmatpush1.bf16.msra.mxu0 %v7377_v29 }
 0x1eb   : > { %v9484_v27 = vpop.permute.xlu0 %4372  ;;  %v4586_v17 = vpop.permute.xlu1 %4585 }
 0x1ec   : > { %11874 = vst [vmem:[#allocation109_spill] sm:$0xff] %v9484_v27  ;;  %v4397_v59 = vsel %vm571_vm0, %v4371_v14, %v9484_v27  ;;  %v7429_v14 = vpack.c.bf16 %v4522_v55, %v4303_v0  ;;  %v4881_v55 = vrot.slane %v9491_v6, %v8411_v44  ;;  %v5008_v0 = vld [vmem:[#allocation6 + $0x106] ss:$8 sm:$0xf0] }
 0x1ed   : > { %v4523_v61 = vmul.f32 %v4455_v26, %v4397_v59  ;;  %2930 = vrot.lane.b32.xlu0 %v9399_v13, %s7974_s14  ;;  %3280 = vrot.lane.b32.xlu1 %v9089_v58, %s7975_s15  ;;  %v5007_v59 = vld [vmem:[#allocation6 + $0x106] ss:$8 sm:$0xf] }
 0x1ef   : > { %v4588_v29 = vpop.permute.xlu0 %4587  ;;  %v4805_v49 = vpop.permute.xlu1 %4804  ;;  %v7427_v37 = vpack.c.bf16 %v4523_v61, %v4304_v21 }
 0x1f0   : > { %v4614_v15 = vsel %vm791_vm3, %v4586_v17, %v4588_v29 }
 0x1f1   : > { %3282 = vrot.lane.b32.xlu0 %v9465_v7, %s7975_s15  ;;  %3499 = vrot.lane.b32.xlu1 %v9089_v58, %s7976_s29  ;;  %v4740_v26 = vmul.f32 %v4666_v30, %v4614_v15  ;;  %v9530_v15 = vor.u32 %v5008_v0, %v5007_v59 }
 0x1f2   : > { %7428 = vmatprep.subr.bf16.mxu1 %v7427_v37 }
 0x1f3   : > { %7430 = vmatpush1.bf16.msra.mxu1 %v7429_v14  ;;  %v4807_v11 = vpop.permute.xlu0 %4806  ;;  %v9506_v21 = vpop.permute.xlu1 %4583  ;;  %v5023_v59 = vrot.slane %v9530_v15, %v8405_v43  ;;  %v5019_v0 = vrot.slane %v9530_v15, %v8411_v44  ;;  %v5031_v40 = vrot.slane %v9530_v15, %v8415_v46 }
 0x1f4   : > { %11877 = vst [vmem:[#allocation112_spill] sm:$0xff] %v9506_v21  ;;  %v4833_v61 = vsel %vm1011_vm2, %v4805_v49, %v4807_v11  ;;  %v4613_v62 = vsel %vm791_vm3, %v9506_v21, %v4586_v17  ;;  %v5226_v17 = vld [vmem:[#allocation6 + $0x107] ss:$8 sm:$0xf] }
 0x1f5   : > { %v4959_v41 = vmul.f32 %v4885_v35, %v4833_v61  ;;  %3501 = vrot.lane.b32.xlu0 %v9465_v7, %s7976_s29  ;;  %3284 = vrot.lane.b32.xlu1 %v9399_v13, %s7975_s15  ;;  %v4739_v30 = vmul.f32 %v4662_v2, %v4613_v62  ;;  %v5227_v35 = vld [vmem:[#allocation6 + $0x107] ss:$8 sm:$0xf0]  ;;  %v4889_v2 = vrot.slane %v9491_v6, %v8413_v45 }
 0x1f6   : > { %v9534_v21 = vor.u32 %v5227_v35, %v5226_v17  ;;  %v4992_v17 = vld [vmem:[%s8163_s23 + $0x10] sm:$0xff] }
 0x1f7   : > { %v9522_v54 = vpop.permute.xlu0 %4802  ;;  %v4590_v56 = vpop.permute.xlu1 %4589  ;;  %v7379_v22 = vpack.c.bf16 %v4959_v41, %v4740_v26 }
 0x1f8   : > { %11878 = vst [vmem:[#allocation113_spill] sm:$0xff] %v9522_v54  ;;  %v4832_v37 = vsel %vm1011_vm2, %v9522_v54, %v4805_v49  ;;  %v4674_v49 = vrot.slane %v9489_v60, %v8415_v46  ;;  %v4615_v35 = vsel %vm791_vm3, %v4588_v29, %v4590_v56  ;;  %v5238_v54 = vrot.slane %v9534_v21, %v8411_v44 }
 0x1f9   : > { %v4958_v14 = vmul.f32 %v4881_v55, %v4832_v37  ;;  %3286 = vrot.lane.b32.xlu0 %v9520_v5, %s7975_s15  ;;  %3503 = vrot.lane.b32.xlu1 %v9399_v13, %s7976_s29  ;;  %v4893_v55 = vrot.slane %v9491_v6, %v8415_v46  ;;  %v4670_v37 = vrot.slane %v9489_v60, %v8413_v45  ;;  %v7827_v60 = vld [vmem:[%s8163_s23 + $0x18] sm:$0xff] }
 0x1fa   : > { %7380 = vmatprep.subr.bf16.mxu0 %v7379_v22  ;;  %v5097_v29 = vmul.f32 %v7827_v60, %v5023_v59  ;;  %v5250_v60 = vrot.slane %v9534_v21, %v8415_v46  ;;  %v5446_v59 = vld [vmem:[#allocation6 + $0x180] ss:$8 sm:$0xf0] }
 0x1fb   : > { %v9532_v61 = vpop.permute.xlu0 %4591  ;;  %v4809_v26 = vpop.permute.xlu1 %4808  ;;  %v7381_v41 = vpack.c.bf16 %v4958_v14, %v4739_v30  ;;  %v4741_v32 = vmul.f32 %v4670_v37, %v4615_v35  ;;  %v5665_v37 = vld [vmem:[#allocation6 + $0x181] ss:$8 sm:$0xf0] }
 0x1fc   : > { %11879 = vst [vmem:[#allocation114_spill] sm:$0xff] %v9532_v61  ;;  %v4616_v62 = vsel %vm791_vm3, %v4590_v56, %v9532_v61  ;;  %v4834_v22 = vsel %vm1011_vm2, %v4807_v11, %v4809_v26  ;;  %v5096_v56 = vmul.f32 %v5019_v0, %v4992_v17  ;;  %v5664_v0 = vld [vmem:[#allocation6 + $0x181] ss:$8 sm:$0xf] }
 0x1fd   : > { %3505 = vrot.lane.b32.xlu0 %v9520_v5, %s7976_s29  ;;  %3718 = vrot.lane.b32.xlu1 %v9089_v58, %s7977_s20  ;;  %v4742_v61 = vmul.f32 %v4674_v49, %v4616_v62  ;;  %v4960_v6 = vmul.f32 %v4889_v2, %v4834_v22  ;;  %v5027_v49 = vrot.slane %v9530_v15, %v8413_v45  ;;  %v5445_v22 = vld [vmem:[#allocation6 + $0x180] ss:$8 sm:$0xf] }
 0x1fe   : > { %7382 = vmatpush1.bf16.msra.mxu0 %v7381_v41  ;;  %v5242_v41 = vrot.slane %v9534_v21, %v8405_v43 }
 0x1ff   : > { %v9555_v30 = vpop.permute.xlu0 %4810  ;;  %v5161_v14 = vpop.permute.xlu1 %5160 }
 0x200   : > { %11880 = vst [vmem:[#allocation115_spill] sm:$0xff] %v9555_v30  ;;  %v4835_v11 = vsel %vm1011_vm2, %v4809_v26, %v9555_v30 }
 0x201   : > { %v4961_v27 = vmul.f32 %v4893_v55, %v4835_v11  ;;  %3720 = vrot.lane.b32.xlu0 %v9465_v7, %s7977_s20  ;;  %3937 = vrot.lane.b32.xlu1 %v9089_v58, %s7978_s11  ;;  %v5246_v58 = vrot.slane %v9534_v21, %v8413_v45 }
 0x203   : > { %v5163_v26 = vpop.permute.xlu0 %5162  ;;  %v9570_v30 = vpop.permute.xlu1 %5158  ;;  %v7431_v25 = vpack.c.bf16 %v4961_v27, %v4742_v61  ;;  %v7433_v61 = vpack.c.bf16 %v4960_v6, %v4741_v32 }
 0x204   : > { %11881 = vst [vmem:[#allocation116_spill] sm:$0xff] %v9570_v30  ;;  %v5187_v2 = vsel %vm1366_vm4, %v5161_v14, %v5163_v26  ;;  %v5186_v55 = vsel %vm1366_vm4, %v9570_v30, %v5161_v14 }
 0x205   : > { %v5316_v62 = vmul.f32 %v5242_v41, %v5187_v2  ;;  %v5315_v27 = vmul.f32 %v5238_v54, %v5186_v55  ;;  %3939 = vrot.lane.b32.xlu0 %v9465_v7, %s7978_s11  ;;  %3722 = vrot.lane.b32.xlu1 %v9399_v13, %s7977_s20  ;;  %v9590_v41 = vld [vmem:[%s8163_s23 + $0x28] sm:$0xff]  ;;  %v5098_v2 = vmul.f32 %v5027_v49, %v9402_v51 }
 0x206   : > { %7432 = vmatprep.subr.bf16.mxu1 %v7431_v25  ;;  %v5099_v54 = vmul.f32 %v9590_v41, %v5031_v40  ;;  %v9597_v25 = vor.u32 %v5446_v59, %v5445_v22 }
 0x207   : > { %7434 = vmatpush1.bf16.msra.mxu1 %v7433_v61  ;;  %v5165_v14 = vpop.permute.xlu0 %5164  ;;  %v9587_v17 = vpop.permute.xlu1 %5166  ;;  %v7383_v35 = vpack.c.bf16 %v5316_v62, %v5097_v29  ;;  %v7385_v11 = vpack.c.bf16 %v5315_v27, %v5096_v56  ;;  %v9603_v29 = vor.u32 %v5665_v37, %v5664_v0 }
 0x208   : > { %v5188_v55 = vsel %vm1366_vm4, %v5163_v26, %v5165_v14  ;;  %v5189_v32 = vsel %vm1366_vm4, %v5165_v14, %v9587_v17  ;;  %v5461_v62 = vrot.slane %v9597_v25, %v8405_v43  ;;  %v5457_v0 = vrot.slane %v9597_v25, %v8411_v44 }
 0x209   : > { %v5317_v6 = vmul.f32 %v5246_v58, %v5188_v55  ;;  %v5318_v61 = vmul.f32 %v5250_v60, %v5189_v32  ;;  %3724 = vrot.lane.b32.xlu0 %v9520_v5, %s7977_s20  ;;  %3941 = vrot.lane.b32.xlu1 %v9399_v13, %s7978_s11  ;;  %v5680_v58 = vrot.slane %v9603_v29, %v8405_v43 }
 0x20a   : > { %7384 = vmatprep.subr.bf16.mxu0 %v7383_v35  ;;  %v5676_v35 = vrot.slane %v9603_v29, %v8411_v44 }
 0x20b   : > { %7386 = vmatpush1.bf16.msra.mxu0 %v7385_v11  ;;  %v5380_v40 = vpop.permute.xlu0 %5379  ;;  %v5382_v56 = vpop.permute.xlu1 %5381  ;;  %v7435_v26 = vpack.c.bf16 %v5318_v61, %v5099_v54  ;;  %v7437_v49 = vpack.c.bf16 %v5317_v6, %v5098_v2 }
 0x20c   : > { %v5406_v60 = vsel %vm1586_vm5, %v5380_v40, %v5382_v56 }
 0x20d   : > { %3943 = vrot.lane.b32.xlu0 %v9520_v5, %s7978_s11  ;;  %4155 = vrot.lane.b32.xlu1 %v9465_v7, %s7971_s30  ;;  %v5535_v37 = vmul.f32 %v5461_v62, %v5406_v60  ;;  %v9636_v62 = vld [vmem:[%s8163_s23 + $0x48] sm:$0xff] }
 0x20e   : > { %7436 = vmatprep.subr.bf16.mxu1 %v7435_v26  ;;  %v5883_v26 = vld [vmem:[#allocation6 + $0x182] ss:$8 sm:$0xf] }
 0x20f   : > { %7438 = vmatpush1.bf16.msra.mxu1 %v7437_v49  ;;  %v5599_v27 = vpop.permute.xlu0 %5598  ;;  %v5601_v22 = vpop.permute.xlu1 %5600  ;;  %v5884_v49 = vld [vmem:[#allocation6 + $0x182] ss:$8 sm:$0xf0] }
 0x210   : > { %v5625_v59 = vsel %vm1806_vm6, %v5599_v27, %v5601_v22 }
 0x211   : > { %v5754_v14 = vmul.f32 %v5680_v58, %v5625_v59  ;;  %4157 = vrot.lane.b32.xlu0 %v9399_v13, %s7971_s30  ;;  %4374 = vrot.lane.b32.xlu1 %v9465_v7, %s7972_s9  ;;  %v5469_v59 = vrot.slane %v9597_v25, %v8415_v46 }
 0x213   : > { %v9623_v11 = vpop.permute.xlu0 %5377  ;;  %v9625_v54 = vpop.permute.xlu1 %5596  ;;  %v7387_v2 = vpack.c.bf16 %v5754_v14, %v5535_v37  ;;  %v5684_v14 = vrot.slane %v9603_v29, %v8413_v45 }
 0x214   : > { %11882 = vst [vmem:[#allocation117_spill] sm:$0xff] %v9623_v11  ;;  %11883 = vst [vmem:[#allocation118_spill] sm:$0xff] %v9625_v54  ;;  %v5405_v55 = vsel %vm1586_vm5, %v9623_v11, %v5380_v40  ;;  %v5624_v32 = vsel %vm1806_vm6, %v9625_v54, %v5599_v27  ;;  %v5465_v27 = vrot.slane %v9597_v25, %v8413_v45 }
 0x215   : > { %v5534_v6 = vmul.f32 %v5457_v0, %v5405_v55  ;;  %v5753_v61 = vmul.f32 %v5676_v35, %v5624_v32  ;;  %4376 = vrot.lane.b32.xlu0 %v9399_v13, %s7972_s9  ;;  %4159 = vrot.lane.b32.xlu1 %v9520_v5, %s7971_s30  ;;  %v9644_v0 = vor.u32 %v5884_v49, %v5883_v26 }
 0x216   : > { %7388 = vmatprep.subr.bf16.mxu0 %v7387_v2  ;;  %v5688_v35 = vrot.slane %v9603_v29, %v8415_v46 }
 0x217   : > { %v5384_v58 = vpop.permute.xlu0 %5383  ;;  %v9638_v60 = vpop.permute.xlu1 %5385  ;;  %v7389_v40 = vpack.c.bf16 %v5753_v61, %v5534_v6  ;;  %v5899_v26 = vrot.slane %v9644_v0, %v8405_v43 }
 0x218   : > { %v5407_v37 = vsel %vm1586_vm5, %v5382_v56, %v5384_v58  ;;  %v5408_v2 = vsel %vm1586_vm5, %v5384_v58, %v9638_v60 }
 0x219   : > { %4161 = vrot.lane.b32.xlu0 %v9636_v62, %s7971_s30  ;;  %4378 = vrot.lane.b32.xlu1 %v9520_v5, %s7972_s9  ;;  %v5536_v56 = vmul.f32 %v5465_v27, %v5407_v37  ;;  %v5537_v49 = vmul.f32 %v5469_v59, %v5408_v2 }
 0x21a   : > { %7390 = vmatpush1.bf16.msra.mxu0 %v7389_v40 }
 0x21b   : > { %v5603_v55 = vpop.permute.xlu0 %5602  ;;  %v9657_v32 = vpop.permute.xlu1 %5604 }
 0x21c   : > { %v5626_v6 = vsel %vm1806_vm6, %v5601_v22, %v5603_v55  ;;  %v5627_v61 = vsel %vm1806_vm6, %v5603_v55, %v9657_v32  ;;  %v6004_v55 = vld [vmem:[%s11603_s1] sm:$0xff] }
 0x21d   : > { %v5755_v54 = vmul.f32 %v5684_v14, %v5626_v6  ;;  %v5756_v11 = vmul.f32 %v5688_v35, %v5627_v61  ;;  %4380 = vrot.lane.b32.xlu0 %v9636_v62, %s7972_s9  ;;  %4593 = vrot.lane.b32.xlu1 %v9465_v7, %s7973_s16  ;;  %v5895_v14 = vrot.slane %v9644_v0, %v8411_v44 }
 0x21e   : > { %v5903_v6 = vrot.slane %v9644_v0, %v8413_v45 }
 0x21f   : > { %v5818_v58 = vpop.permute.xlu0 %5817  ;;  %v5820_v40 = vpop.permute.xlu1 %5819  ;;  %v7439_v27 = vpack.c.bf16 %v5756_v11, %v5537_v49  ;;  %v7441_v37 = vpack.c.bf16 %v5755_v54, %v5536_v56  ;;  %v5907_v56 = vrot.slane %v9644_v0, %v8415_v46 }
 0x220   : > { %v5844_v22 = vsel %vm2026_vm7, %v5818_v58, %v5820_v40 }
 0x221   : > { %4595 = vrot.lane.b32.xlu0 %v9399_v13, %s7973_s16  ;;  %4812 = vrot.lane.b32.xlu1 %v9465_v7, %s7974_s14  ;;  %v5973_v59 = vmul.f32 %v5899_v26, %v5844_v22 }
 0x222   : > { %7440 = vmatprep.subr.bf16.mxu1 %v7439_v27  ;;  %v11885_v27 = vpack.c.bf16 %v8502_v8, %v8496_v9  ;;  %v11887_v9 = vpack.c.bf16 %v8758_v50, %v8752_v52  ;;  %v11888_v50 = vpack.c.bf16 %v8740_v28, %v8730_v19  ;;  %v11891_v19 = vpack.c.bf16 %v8504_v10, %v8498_v1  ;;  %v9753_v10 = vld [vmem:[%s8163_s23 + $0x50] sm:$0xff] }
 0x223   : > { %7442 = vmatpush1.bf16.msra.mxu1 %v7441_v37  ;;  %v9675_v35 = vpop.permute.xlu0 %5815  ;;  %6500 = vmatprep.subr.mxu0 %v5973_v59  ;;  %v5822_v2 = vpop.permute.xlu1 %5821  ;;  %v11893_v1 = vpack.c.bf16 %v8942_v53, %v8925_v24  ;;  %v11896_v24 = vld [vmem:[#allocation60_spill] sm:$0xff]  ;;  %v11897_v53 = vld [vmem:[#allocation59_spill] sm:$0xff] }
 0x224   : > { %11884 = vst [vmem:[#allocation119_spill] sm:$0xff] %v9675_v35  ;;  %v5843_v11 = vsel %vm2026_vm7, %v9675_v35, %v5818_v58  ;;  %v5845_v61 = vsel %vm2026_vm7, %v5820_v40, %v5822_v2  ;;  %v11886_v40 = vpack.c.bf16 %v8484_v57, %v8474_v48  ;;  %v1915_v48 = vrot.slane %v9071_v3, %v8397_v39 }
 0x225   : > { %4814 = vrot.lane.b32.xlu0 %v9399_v13, %s7974_s14  ;;  %4597 = vrot.lane.b32.xlu1 %v9520_v5, %s7973_s16  ;;  %v5972_v54 = vmul.f32 %v5895_v14, %v5843_v11  ;;  %v5974_v22 = vmul.f32 %v5903_v6, %v5845_v61  ;;  %v1695_v14 = vrot.slane %v9065_v47, %v8397_v39 }
 0x226   : > { %v11889_v11 = vpack.c.bf16 %v8525_v20, %v8523_v23 }
 0x227   : > { %v9691_v26 = vpop.permute.xlu0 %5823  ;;  %6501 = vmatpush1.msra.mxu0 %v5972_v54  ;;  %v1611_v49 = vpop.permute.xlu1 %1610  ;;  %v1691_v54 = vrot.slane %v9065_v47, %v8395_v38 }
 0x228   : > { %v5846_v58 = vsel %vm2026_vm7, %v5822_v2, %v9691_v26  ;;  %7444 = vmatprep.subr.bf16.mxu0 %v11885_v27  ;;  %6513 = vmatmul.mubr.f32.vlgmr.msra.gmra.mrb[0].mxu0 %v6004_v55  ;;  %v1911_v2 = vrot.slane %v9071_v3, %v8395_v38 }
 0x229   : > { %4599 = vrot.lane.b32.xlu0 %v9636_v62, %s7973_s16  ;;  %4816 = vrot.lane.b32.xlu1 %v9520_v5, %s7974_s14  ;;  %v5975_v37 = vmul.f32 %v5907_v56, %v5846_v58  ;;  %v11890_v56 = vpack.c.bf16 %v8963_v12, %v8954_v16  ;;  %v11892_v16 = vpack.c.bf16 %v8787_v36, %v8785_v42  ;;  %v11895_v58 = vld [vmem:[#allocation19_spill] sm:$0xff] }
 0x22a   : > { %7446 = vmatpush1.bf16.msra.mxu0 %v11886_v40  ;;  %7326 = vmatprep.mubr.msk.f32.mxu0 %vm6444_vm8, %v9264_v31  ;;  %v11894_v42 = vpack.c.bf16 %v8760_v63, %v8754_v4  ;;  %v1703_v36 = vrot.slane %v9065_v47, %v8460_v18  ;;  %v1919_v27 = vrot.slane %v9071_v3, %v11895_v58 }
 0x22b   : > { %7448 = vmatprep.subr.bf16.mxu0 %v11887_v9  ;;  %v1613_v8 = vpop.permute.xlu0 %1612  ;;  %6571 = vmatprep.subr.mxu1 %v5975_v37  ;;  %v1831_v59 = vpop.permute.xlu1 %1830  ;;  %v11898_v40 = vpack.c.bf16 %v11896_v24, %v11897_v53  ;;  %v1923_v4 = vrot.slane %v9071_v3, %v8460_v18  ;;  %v1699_v63 = vrot.slane %v9065_v47, %v11895_v58 }
 0x22c   : > { %6572 = vmatpush1.msra.mxu1 %v5974_v22  ;;  %v1635_v57 = vsel %vm1586_vm5, %v1611_v49, %v1613_v8  ;;  %v1854_v52 = vsel %vm1806_vm6, %v9117_v34, %v1831_v59  ;;  %v1634_v34 = vsel %vm1586_vm5, %v9100_v33, %v1611_v49 }
 0x22d   : > { %4818 = vrot.lane.b32.xlu0 %v9636_v62, %s7974_s14  ;;  %5168 = vrot.lane.b32.xlu1 %v9399_v13, %s7975_s15  ;;  %v1757_v20 = vmul.f32 %v1695_v14, %v1635_v57  ;;  %v1976_v28 = vmul.f32 %v1911_v2, %v1854_v52  ;;  %v1756_v12 = vmul.f32 %v1691_v54, %v1634_v34  ;;  %v11899_v57 = vld [vmem:[#allocation56_spill] sm:$0xff]  ;;  %v11900_v52 = vld [vmem:[#allocation55_spill] sm:$0xff]  ;;  %v11902_v34 = vld [vmem:[#allocation77_spill] sm:$0xff] }
 0x22e   : > { %7450 = vmatpush1.bf16.msra.mxu0 %v11888_v50  ;;  %7496 = vmatprep.subr.bf16.mxu1 %v11889_v11  ;;  %v11901_v3 = vpack.c.bf16 %v11899_v57, %v11900_v52  ;;  %v2362_v57 = vrot.slane %v11902_v34, %v8460_v18 }
 0x22f   : > { %6584 = vmatmul.mubr.f32.vlgmr.msra.gmra.mrb[0].mxu1 %v6004_v55  ;;  %7452 = vmatprep.subr.bf16.mxu0 %v11890_v56  ;;  %v1833_v6 = vpop.permute.xlu0 %1832  ;;  %v1615_v61 = vpop.permute.xlu1 %1614  ;;  %v7457_v37 = vpack.c.bf16 %v1976_v28, %v1756_v12  ;;  %v11904_v28 = vld [vmem:[#allocation81_spill] sm:$0xff] }
 0x230   : > { %7498 = vmatpush1.bf16.msra.mxu1 %v11891_v19  ;;  %v1855_v23 = vsel %vm1806_vm6, %v1831_v59, %v1833_v6  ;;  %7327 = vmatprep.mubr.msk.f32.mxu1 %vm6444_vm8, %v9264_v31  ;;  %v1636_v59 = vsel %vm1586_vm5, %v1613_v8, %v1615_v61  ;;  %v2350_v19 = vrot.slane %v11902_v34, %v8395_v38 }
 0x231   : > { %v1977_v55 = vmul.f32 %v1915_v48, %v1855_v23  ;;  %7500 = vmatprep.subr.bf16.mxu1 %v11892_v16  ;;  %5170 = vrot.lane.b32.xlu0 %v9520_v5, %s7975_s15  ;;  %v1758_v54 = vmul.f32 %v1699_v63, %v1636_v59  ;;  %v11903_v23 = vld [vmem:[#allocation76_spill] sm:$0xff]  ;;  %v2354_v16 = vrot.slane %v11902_v34, %v8397_v39 }
 0x232   : > { %5172 = vrot.lane.b32.xlu1 %v9636_v62, %s7975_s15  ;;  %7454 = vmatpush1.bf16.msra.mxu0 %v11893_v1  ;;  %v2131_v1 = vrot.slane %v11903_v23, %v8395_v38  ;;  %v2358_v59 = vrot.slane %v11902_v34, %v11895_v58  ;;  %v2139_v52 = vrot.slane %v11903_v23, %v11895_v58 }
 0x233   : > { %v9755_v33 = vpop.permute.xlu0 %1616  ;;  %v1835_v31 = vpop.permute.xlu1 %1834  ;;  %v7455_v49 = vpack.c.bf16 %v1977_v55, %v1757_v20  ;;  %v2135_v20 = vrot.slane %v11903_v23, %v8397_v39 }
 0x234   : > { %7502 = vmatpush1.bf16.msra.mxu1 %v11894_v42  ;;  %v1856_v22 = vsel %vm1806_vm6, %v1833_v6, %v1835_v31  ;;  %v1637_v9 = vsel %vm1586_vm5, %v1615_v61, %v9755_v33 }
 0x235   : > { %7504 = vmatprep.subr.bf16.mxu1 %v11898_v40  ;;  %5174 = vrot.lane.b32.xlu0 %v9753_v10, %s7975_s15  ;;  %v1978_v48 = vmul.f32 %v1919_v27, %v1856_v22  ;;  %v1759_v50 = vmul.f32 %v1703_v36, %v1637_v9 }
 0x236   : > { %5387 = vrot.lane.b32.xlu1 %v9399_v13, %s7976_s29  ;;  %7456 = vmatprep.subr.bf16.mxu0 %v7455_v49 }
 0x237   : > { %7458 = vmatpush1.bf16.msra.mxu0 %v7457_v37  ;;  %v9779_v14 = vpop.permute.xlu0 %1836  ;;  %v2051_v2 = vpop.permute.xlu1 %2050  ;;  %v7509_v61 = vpack.c.bf16 %v1978_v48, %v1758_v54 }
 0x238   : > { %7506 = vmatpush1.bf16.msra.mxu1 %v11901_v3  ;;  %v1857_v47 = vsel %vm1806_vm6, %v1835_v31, %v9779_v14  ;;  %v11905_v31 = vld [vmem:[#allocation80_spill] sm:$0xff] }
 0x239   : > { %v1979_v11 = vmul.f32 %v1923_v4, %v1857_v47  ;;  %5389 = vrot.lane.b32.xlu0 %v9520_v5, %s7976_s29  ;;  %v2074_v49 = vsel %vm2026_vm7, %v11905_v31, %v2051_v2 }
 0x23a   : > { %5606 = vrot.lane.b32.xlu1 %v9399_v13, %s7977_s20  ;;  %v2196_v40 = vmul.f32 %v2131_v1, %v2074_v49 }
 0x23b   : > { %v2053_v8 = vpop.permute.xlu0 %2052  ;;  %v2268_v56 = vpop.permute.xlu1 %2267  ;;  %v7507_v6 = vpack.c.bf16 %v1979_v11, %v1759_v50 }
 0x23c   : > { %v2292_v55 = vsel %vm352_vm1, %v11904_v28, %v2268_v56  ;;  %v2075_v12 = vsel %vm2026_vm7, %v2051_v2, %v2053_v8  ;;  %v2143_v2 = vrot.slane %v11903_v23, %v8460_v18  ;;  %v11906_v28 = vld [vmem:[#allocation83_spill] sm:$0xff] }
 0x23d   : > { %5608 = vrot.lane.b32.xlu0 %v9520_v5, %s7977_s20  ;;  %7508 = vmatprep.subr.bf16.mxu1 %v7507_v6  ;;  %v2415_v27 = vmul.f32 %v2350_v19, %v2292_v55  ;;  %v2197_v24 = vmul.f32 %v2135_v20, %v2075_v12  ;;  %v2788_v55 = vrot.slane %v11906_v28, %v8395_v38  ;;  %v11908_v12 = vld [vmem:[#allocation89_spill] sm:$0xff] }
 0x23e   : > { %5391 = vrot.lane.b32.xlu1 %v9636_v62, %s7976_s29  ;;  %7510 = vmatpush1.bf16.msra.mxu1 %v7509_v61  ;;  %v2792_v49 = vrot.slane %v11906_v28, %v8397_v39 }
 0x23f   : > { %v2270_v42 = vpop.permute.xlu0 %2269  ;;  %v2055_v36 = vpop.permute.xlu1 %2054  ;;  %v7461_v9 = vpack.c.bf16 %v2415_v27, %v2196_v40  ;;  %v11909_v27 = vld [vmem:[#allocation86_spill] sm:$0xff] }
 0x240   : > { %v2293_v37 = vsel %vm352_vm1, %v2268_v56, %v2270_v42  ;;  %v2076_v47 = vsel %vm2026_vm7, %v2053_v8, %v2055_v36 }
 0x241   : > { %v2416_v53 = vmul.f32 %v2354_v16, %v2293_v37  ;;  %5393 = vrot.lane.b32.xlu0 %v9753_v10, %s7976_s29  ;;  %v2198_v34 = vmul.f32 %v2139_v52, %v2076_v47  ;;  %v11907_v16 = vld [vmem:[#allocation82_spill] sm:$0xff] }
 0x242   : > { %5610 = vrot.lane.b32.xlu1 %v9636_v62, %s7977_s20  ;;  %v2573_v1 = vrot.slane %v11907_v16, %v8397_v39  ;;  %v2581_v47 = vrot.slane %v11907_v16, %v8460_v18 }
 0x243   : > { %v9812_v22 = vpop.permute.xlu0 %2056  ;;  %v2272_v4 = vpop.permute.xlu1 %2271  ;;  %v7459_v63 = vpack.c.bf16 %v2416_v53, %v2197_v24 }
 0x244   : > { %v2294_v48 = vsel %vm352_vm1, %v2270_v42, %v2272_v4  ;;  %v2077_v3 = vsel %vm2026_vm7, %v2055_v36, %v9812_v22  ;;  %v2569_v42 = vrot.slane %v11907_v16, %v8395_v38 }
 0x245   : > { %5612 = vrot.lane.b32.xlu0 %v9753_v10, %s7977_s20  ;;  %7460 = vmatprep.subr.bf16.mxu0 %v7459_v63  ;;  %v2417_v54 = vmul.f32 %v2358_v59, %v2294_v48  ;;  %v2199_v6 = vmul.f32 %v2143_v2, %v2077_v3  ;;  %v2796_v3 = vrot.slane %v11906_v28, %v11895_v58 }
 0x246   : > { %5825 = vrot.lane.b32.xlu1 %v9399_v13, %s7978_s11  ;;  %7462 = vmatpush1.bf16.msra.mxu0 %v7461_v9 }
 0x247   : > { %v9830_v50 = vpop.permute.xlu0 %2273  ;;  %v2487_v11 = vpop.permute.xlu1 %2486  ;;  %v7513_v8 = vpack.c.bf16 %v2417_v54, %v2198_v34  ;;  %v2577_v54 = vrot.slane %v11907_v16, %v11895_v58  ;;  %v11911_v16 = vld [vmem:[#allocation88_spill] sm:$0xff] }
 0x248   : > { %v2295_v56 = vsel %vm352_vm1, %v2272_v4, %v9830_v50  ;;  %v2511_v37 = vsel %vm571_vm0, %v11909_v27, %v2487_v11 }
 0x249   : > { %v2418_v61 = vmul.f32 %v2362_v57, %v2295_v56  ;;  %5827 = vrot.lane.b32.xlu0 %v9520_v5, %s7978_s11  ;;  %v2634_v59 = vmul.f32 %v2569_v42, %v2511_v37 }
 0x24a   : > { %5829 = vrot.lane.b32.xlu1 %v9636_v62, %s7978_s11 }
 0x24b   : > { %v2489_v19 = vpop.permute.xlu0 %2488  ;;  %v2706_v23 = vpop.permute.xlu1 %2705  ;;  %v7511_v20 = vpack.c.bf16 %v2418_v61, %v2199_v6  ;;  %v11910_v6 = vld [vmem:[#allocation87_spill] sm:$0xff] }
 0x24c   : > { %v2730_v31 = vsel %vm791_vm3, %v11908_v12, %v2706_v23  ;;  %v2512_v36 = vsel %vm571_vm0, %v2487_v11, %v2489_v19  ;;  %v3145_v61 = vrot.slane %v11910_v6, %v8395_v38 }
 0x24d   : > { %5831 = vrot.lane.b32.xlu0 %v9753_v10, %s7978_s11  ;;  %7512 = vmatprep.subr.bf16.mxu1 %v7511_v20  ;;  %v2853_v40 = vmul.f32 %v2788_v55, %v2730_v31  ;;  %v2635_v63 = vmul.f32 %v2573_v1, %v2512_v36  ;;  %v3007_v1 = vrot.slane %v11911_v16, %v8395_v38 }
 0x24e   : > { %1618 = vrot.lane.b32.xlu1 %v9399_v13, %s7976_s29  ;;  %7514 = vmatpush1.bf16.msra.mxu1 %v7513_v8  ;;  %v3149_v8 = vrot.slane %v11910_v6, %v8397_v39  ;;  %v3210_v27 = vmul.f32 %v3145_v61, %v9402_v51  ;;  %v3153_v51 = vrot.slane %v11910_v6, %v11895_v58 }
 0x24f   : > { %v2708_v24 = vpop.permute.xlu0 %2707  ;;  %v2491_v53 = vpop.permute.xlu1 %2490  ;;  %v7465_v52 = vpack.c.bf16 %v2853_v40, %v2634_v59 }
 0x250   : > { %v2731_v4 = vsel %vm791_vm3, %v2706_v23, %v2708_v24  ;;  %v2513_v34 = vsel %vm571_vm0, %v2489_v19, %v2491_v53  ;;  %v3011_v19 = vrot.slane %v11911_v16, %v8397_v39 }
 0x251   : > { %v2854_v9 = vmul.f32 %v2792_v49, %v2731_v4  ;;  %1620 = vrot.lane.b32.xlu0 %v9520_v5, %s7976_s29  ;;  %v11912_v49 = vld [vmem:[#allocation91_spill] sm:$0xff]  ;;  %v2636_v36 = vmul.f32 %v2577_v54, %v2513_v34  ;;  %v3211_v4 = vmul.f32 %v9590_v41, %v3149_v8  ;;  %v3019_v41 = vrot.slane %v11911_v16, %v8460_v18 }
 0x252   : > { %1838 = vrot.lane.b32.xlu1 %v9399_v13, %s7977_s20  ;;  %v2800_v13 = vrot.slane %v11906_v28, %v8460_v18 }
 0x253   : > { %v9860_v2 = vpop.permute.xlu0 %2492  ;;  %v2710_v48 = vpop.permute.xlu1 %2709  ;;  %v7463_v57 = vpack.c.bf16 %v2854_v9, %v2635_v63  ;;  %v3157_v63 = vrot.slane %v11910_v6, %v8460_v18  ;;  %v3212_v6 = vmul.f32 %v3153_v51, %v9465_v7  ;;  %v9948_v51 = vld [vmem:[%s8163_s23 + $0x58] sm:$0xff] }
 0x254   : > { %v2732_v11 = vsel %vm791_vm3, %v2708_v24, %v2710_v48  ;;  %v2514_v56 = vsel %vm571_vm0, %v2491_v53, %v9860_v2  ;;  %v3015_v24 = vrot.slane %v11911_v16, %v11895_v58 }
 0x255   : > { %1840 = vrot.lane.b32.xlu0 %v9520_v5, %s7977_s20  ;;  %7464 = vmatprep.subr.bf16.mxu0 %v7463_v57  ;;  %v2855_v28 = vmul.f32 %v2796_v3, %v2732_v11  ;;  %v2637_v12 = vmul.f32 %v2581_v47, %v2514_v56  ;;  %v9909_v3 = vld [vmem:[%s8163_s23 + $0x38] sm:$0xff] }
 0x256   : > { %1622 = vrot.lane.b32.xlu1 %v9636_v62, %s7976_s29  ;;  %7466 = vmatpush1.bf16.msra.mxu0 %v7465_v52  ;;  %v3213_v54 = vmul.f32 %v3157_v63, %v9909_v3 }
 0x257   : > { %v9880_v23 = vpop.permute.xlu0 %2711  ;;  %v2925_v20 = vpop.permute.xlu1 %2924  ;;  %v7517_v9 = vpack.c.bf16 %v2855_v28, %v2636_v36 }
 0x258   : > { %v2733_v55 = vsel %vm791_vm3, %v2710_v48, %v9880_v23  ;;  %v2949_v42 = vsel %vm1011_vm2, %v11912_v49, %v2925_v20  ;;  %v11915_v49 = vld [vmem:[#allocation97_spill] sm:$0xff] }
 0x259   : > { %v2856_v31 = vmul.f32 %v2800_v13, %v2733_v55  ;;  %1624 = vrot.lane.b32.xlu0 %v9753_v10, %s7976_s29  ;;  %v3072_v59 = vmul.f32 %v3007_v1, %v2949_v42  ;;  %v11913_v1 = vld [vmem:[#allocation93_spill] sm:$0xff] }
 0x25a   : > { %1842 = vrot.lane.b32.xlu1 %v9636_v62, %s7977_s20  ;;  %v3583_v7 = vrot.slane %v11913_v1, %v8395_v38 }
 0x25b   : > { %v2927_v37 = vpop.permute.xlu0 %2926  ;;  %v2929_v53 = vpop.permute.xlu1 %2928  ;;  %v7515_v40 = vpack.c.bf16 %v2856_v31, %v2637_v12  ;;  %v7469_v56 = vpack.c.bf16 %v3210_v27, %v3072_v59  ;;  %v11914_v12 = vld [vmem:[#allocation92_spill] sm:$0xff] }
 0x25c   : > { %v2950_v48 = vsel %vm1011_vm2, %v2925_v20, %v2927_v37  ;;  %v2951_v52 = vsel %vm1011_vm2, %v2927_v37, %v2929_v53  ;;  %v3368_v31 = vrot.slane %v11914_v12, %v8397_v39  ;;  %v3364_v36 = vrot.slane %v11914_v12, %v8395_v38  ;;  %v11916_v37 = vld [vmem:[#allocation96_spill] sm:$0xff] }
 0x25d   : > { %v3073_v57 = vmul.f32 %v3011_v19, %v2950_v48  ;;  %1844 = vrot.lane.b32.xlu0 %v9753_v10, %s7977_s20  ;;  %7516 = vmatprep.subr.bf16.mxu1 %v7515_v40  ;;  %v3074_v61 = vmul.f32 %v3015_v24, %v2951_v52  ;;  %v3587_v19 = vrot.slane %v11913_v1, %v8397_v39 }
 0x25e   : > { %2058 = vrot.lane.b32.xlu1 %v9909_v3, %s7978_s11  ;;  %7518 = vmatpush1.bf16.msra.mxu1 %v7517_v9 }
 0x25f   : > { %v9915_v47 = vpop.permute.xlu0 %2930  ;;  %v3281_v11 = vpop.permute.xlu1 %3280  ;;  %v7467_v13 = vpack.c.bf16 %v3211_v4, %v3073_v57  ;;  %v7521_v16 = vpack.c.bf16 %v3212_v6, %v3074_v61  ;;  %v3595_v6 = vrot.slane %v11913_v1, %v8460_v18  ;;  %v3372_v61 = vrot.slane %v11914_v12, %v11895_v58 }
 0x260   : > { %v2952_v34 = vsel %vm1011_vm2, %v2929_v53, %v9915_v47  ;;  %v3306_v24 = vsel %vm1366_vm4, %v11916_v37, %v3281_v11  ;;  %v11919_v37 = vld [vmem:[#allocation98_spill] sm:$0xff] }
 0x261   : > { %v3075_v20 = vmul.f32 %v3019_v41, %v2952_v34  ;;  %2060 = vrot.lane.b32.xlu0 %v9520_v5, %s7978_s11  ;;  %7468 = vmatprep.subr.bf16.mxu0 %v7467_v13  ;;  %v3429_v48 = vmul.f32 %v3364_v36, %v3306_v24  ;;  %v3591_v13 = vrot.slane %v11913_v1, %v11895_v58  ;;  %v11918_v36 = vld [vmem:[#allocation99_spill] sm:$0xff] }
 0x262   : > { %2275 = vrot.lane.b32.xlu1 %v9520_v5, %s7971_s30  ;;  %7470 = vmatpush1.bf16.msra.mxu0 %v7469_v56  ;;  %v3806_v24 = vrot.slane %v11919_v37, %v8397_v39 }
 0x263   : > { %v3283_v8 = vpop.permute.xlu0 %3282  ;;  %v3500_v28 = vpop.permute.xlu1 %3499  ;;  %v7519_v55 = vpack.c.bf16 %v3213_v54, %v3075_v20  ;;  %v3376_v54 = vrot.slane %v11914_v12, %v8460_v18 }
 0x264   : > { %v3525_v42 = vsel %vm1586_vm5, %v11915_v49, %v3500_v28  ;;  %v3307_v27 = vsel %vm1366_vm4, %v3281_v11, %v3283_v8 }
 0x265   : > { %2277 = vrot.lane.b32.xlu0 %v9636_v62, %s7971_s30  ;;  %7520 = vmatprep.subr.bf16.mxu1 %v7519_v55  ;;  %v3648_v4 = vmul.f32 %v3583_v7, %v3525_v42  ;;  %v3430_v9 = vmul.f32 %v3368_v31, %v3307_v27  ;;  %v4021_v27 = vrot.slane %v11918_v36, %v8395_v38 }
 0x266   : > { %2062 = vrot.lane.b32.xlu1 %v9636_v62, %s7978_s11  ;;  %7522 = vmatpush1.bf16.msra.mxu1 %v7521_v16 }
 0x267   : > { %v3502_v53 = vpop.permute.xlu0 %3501  ;;  %v3285_v40 = vpop.permute.xlu1 %3284  ;;  %v7473_v11 = vpack.c.bf16 %v3648_v4, %v3429_v48  ;;  %v3802_v4 = vrot.slane %v11919_v37, %v8395_v38 }
 0x268   : > { %v3526_v63 = vsel %vm1586_vm5, %v3500_v28, %v3502_v53  ;;  %v3308_v20 = vsel %vm1366_vm4, %v3283_v8, %v3285_v40 }
 0x269   : > { %v3649_v59 = vmul.f32 %v3587_v19, %v3526_v63  ;;  %2064 = vrot.lane.b32.xlu0 %v9753_v10, %s7978_s11  ;;  %v3431_v12 = vmul.f32 %v3372_v61, %v3308_v20 }
 0x26a   : > { %2279 = vrot.lane.b32.xlu1 %v9753_v10, %s7971_s30 }
 0x26b   : > { %v9950_v57 = vpop.permute.xlu0 %3286  ;;  %v3504_v52 = vpop.permute.xlu1 %3503  ;;  %v7471_v41 = vpack.c.bf16 %v3649_v59, %v3430_v9  ;;  %v11921_v9 = vld [vmem:[#allocation102_spill] sm:$0xff] }
 0x26c   : > { %11917 = vst [vmem:[#allocation19_spill] sm:$0xff] %v9950_v57  ;;  %v3527_v56 = vsel %vm1586_vm5, %v3502_v53, %v3504_v52  ;;  %v3309_v34 = vsel %vm1366_vm4, %v3285_v40, %v9950_v57  ;;  %v11920_v53 = vld [vmem:[#allocation103_spill] sm:$0xff] }
 0x26d   : > { %2281 = vrot.lane.b32.xlu0 %v9948_v51, %s7971_s30  ;;  %7472 = vmatprep.subr.bf16.mxu0 %v7471_v41  ;;  %v3650_v16 = vmul.f32 %v3591_v13, %v3527_v56  ;;  %v3432_v1 = vmul.f32 %v3376_v54, %v3309_v34  ;;  %v10001_v34 = vld [vmem:[%s8163_s23 + $0x40] sm:$0xff] }
 0x26e   : > { %2494 = vrot.lane.b32.xlu1 %v9520_v5, %s7972_s9  ;;  %7474 = vmatpush1.bf16.msra.mxu0 %v7473_v11 }
 0x26f   : > { %v9968_v28 = vpop.permute.xlu0 %3505  ;;  %v3719_v55 = vpop.permute.xlu1 %3718  ;;  %v7525_v8 = vpack.c.bf16 %v3650_v16, %v3431_v12  ;;  %v4029_v16 = vrot.slane %v11918_v36, %v11895_v58  ;;  %v3810_v12 = vrot.slane %v11919_v37, %v11895_v58 }
 0x270   : > { %v3528_v7 = vsel %vm1586_vm5, %v3504_v52, %v9968_v28  ;;  %v3744_v59 = vsel %vm1806_vm6, %v11921_v9, %v3719_v55  ;;  %v11924_v9 = vld [vmem:[#allocation105_spill] sm:$0xff] }
 0x271   : > { %v3651_v31 = vmul.f32 %v3595_v6, %v3528_v7  ;;  %2496 = vrot.lane.b32.xlu0 %v9636_v62, %s7972_s9  ;;  %v3867_v56 = vmul.f32 %v3802_v4, %v3744_v59  ;;  %v3814_v7 = vrot.slane %v11919_v37, %v8460_v18  ;;  %v4459_v59 = vrot.slane %v11924_v9, %v8395_v38 }
 0x272   : > { %2713 = vrot.lane.b32.xlu1 %v9520_v5, %s7973_s16  ;;  %v4025_v5 = vrot.slane %v11918_v36, %v8397_v39 }
 0x273   : > { %v3721_v49 = vpop.permute.xlu0 %3720  ;;  %v3938_v42 = vpop.permute.xlu1 %3937  ;;  %v7523_v19 = vpack.c.bf16 %v3651_v31, %v3432_v1  ;;  %v4033_v31 = vrot.slane %v11918_v36, %v8460_v18 }
 0x274   : > { %v3963_v40 = vsel %vm2026_vm7, %v11920_v53, %v3938_v42  ;;  %v3745_v63 = vsel %vm1806_vm6, %v3719_v55, %v3721_v49 }
 0x275   : > { %2715 = vrot.lane.b32.xlu0 %v9636_v62, %s7973_s16  ;;  %7524 = vmatprep.subr.bf16.mxu1 %v7523_v19  ;;  %v4086_v41 = vmul.f32 %v4021_v27, %v3963_v40  ;;  %v3868_v13 = vmul.f32 %v3806_v24, %v3745_v63 }
 0x276   : > { %2498 = vrot.lane.b32.xlu1 %v9753_v10, %s7972_s9  ;;  %7526 = vmatpush1.bf16.msra.mxu1 %v7525_v8 }
 0x277   : > { %v3940_v48 = vpop.permute.xlu0 %3939  ;;  %v3723_v52 = vpop.permute.xlu1 %3722  ;;  %v7477_v55 = vpack.c.bf16 %v4086_v41, %v3867_v56  ;;  %v11926_v41 = vld [vmem:[#allocation109_spill] sm:$0xff] }
 0x278   : > { %v3964_v11 = vsel %vm2026_vm7, %v3938_v42, %v3940_v48  ;;  %v3746_v19 = vsel %vm1806_vm6, %v3721_v49, %v3723_v52 }
 0x279   : > { %v4087_v54 = vmul.f32 %v4025_v5, %v3964_v11  ;;  %2500 = vrot.lane.b32.xlu0 %v9948_v51, %s7972_s9  ;;  %v3869_v37 = vmul.f32 %v3810_v12, %v3746_v19 }
 0x27a   : > { %2717 = vrot.lane.b32.xlu1 %v9753_v10, %s7973_s16 }
 0x27b   : > { %v9998_v6 = vpop.permute.xlu0 %3724  ;;  %v3942_v61 = vpop.permute.xlu1 %3941  ;;  %v7475_v20 = vpack.c.bf16 %v4087_v54, %v3868_v13  ;;  %v4463_v13 = vrot.slane %v11924_v9, %v8397_v39 }
 0x27c   : > { %11922 = vst [vmem:[#allocation60_spill] sm:$0xff] %v9998_v6  ;;  %v3965_v1 = vsel %vm2026_vm7, %v3940_v48, %v3942_v61  ;;  %v3747_v42 = vsel %vm1806_vm6, %v3723_v52, %v9998_v6  ;;  %v11925_v48 = vld [vmem:[#allocation104_spill] sm:$0xff] }
 0x27d   : > { %2719 = vrot.lane.b32.xlu0 %v9948_v51, %s7973_s16  ;;  %7476 = vmatprep.subr.bf16.mxu0 %v7475_v20  ;;  %v4088_v24 = vmul.f32 %v4029_v16, %v3965_v1  ;;  %v3870_v36 = vmul.f32 %v3814_v7, %v3747_v42  ;;  %v4244_v52 = vrot.slane %v11925_v48, %v8397_v39 }
 0x27e   : > { %2932 = vrot.lane.b32.xlu1 %v10001_v34, %s7974_s14  ;;  %7478 = vmatpush1.bf16.msra.mxu0 %v7477_v55  ;;  %v4240_v54 = vrot.slane %v11925_v48, %v8395_v38 }
 0x27f   : > { %v10019_v8 = vpop.permute.xlu0 %3943  ;;  %v4156_v27 = vpop.permute.xlu1 %4155  ;;  %v7529_v49 = vpack.c.bf16 %v4088_v24, %v3869_v37 }
 0x280   : > { %11923 = vst [vmem:[#allocation59_spill] sm:$0xff] %v10019_v8  ;;  %v3966_v53 = vsel %vm2026_vm7, %v3942_v61, %v10019_v8  ;;  %v11927_v61 = vld [vmem:[#allocation108_spill] sm:$0xff] }
 0x281   : > { %v4089_v40 = vmul.f32 %v4033_v31, %v3966_v53  ;;  %2934 = vrot.lane.b32.xlu0 %v9636_v62, %s7974_s14  ;;  %v4179_v20 = vsel %vm352_vm1, %v11927_v61, %v4156_v27 }
 0x282   : > { %2936 = vrot.lane.b32.xlu1 %v9753_v10, %s7974_s14  ;;  %v4305_v42 = vmul.f32 %v4240_v54, %v4179_v20 }
 0x283   : > { %v4158_v5 = vpop.permute.xlu0 %4157  ;;  %v4375_v4 = vpop.permute.xlu1 %4374  ;;  %v7527_v63 = vpack.c.bf16 %v4089_v40, %v3870_v36  ;;  %v4467_v36 = vrot.slane %v11924_v9, %v11895_v58  ;;  %v4252_v40 = vrot.slane %v11925_v48, %v8460_v18 }
 0x284   : > { %v4398_v11 = vsel %vm571_vm0, %v11926_v41, %v4375_v4  ;;  %v4180_v56 = vsel %vm352_vm1, %v4156_v27, %v4158_v5 }
 0x285   : > { %2938 = vrot.lane.b32.xlu0 %v9948_v51, %s7974_s14  ;;  %7528 = vmatprep.subr.bf16.mxu1 %v7527_v63  ;;  %v4524_v7 = vmul.f32 %v4459_v59, %v4398_v11  ;;  %v4306_v31 = vmul.f32 %v4244_v52, %v4180_v56  ;;  %v4248_v63 = vrot.slane %v11925_v48, %v11895_v58  ;;  %v10067_v59 = vld [vmem:[%s8163_s23 + $0x60] sm:$0xff] }
 0x286   : > { %3288 = vrot.lane.b32.xlu1 %v9636_v62, %s7975_s15  ;;  %7530 = vmatpush1.bf16.msra.mxu1 %v7529_v49 }
 0x287   : > { %v4377_v55 = vpop.permute.xlu0 %4376  ;;  %v4160_v16 = vpop.permute.xlu1 %4159  ;;  %v7481_v27 = vpack.c.bf16 %v4524_v7, %v4305_v42 }
 0x288   : > { %v4399_v1 = vsel %vm571_vm0, %v4375_v4, %v4377_v55  ;;  %v4471_v4 = vrot.slane %v11924_v9, %v8460_v18  ;;  %v4181_v52 = vsel %vm352_vm1, %v4158_v5, %v4160_v16 }
 0x289   : > { %v4525_v12 = vmul.f32 %v4463_v13, %v4399_v1  ;;  %3290 = vrot.lane.b32.xlu0 %v9753_v10, %s7975_s15  ;;  %v4307_v56 = vmul.f32 %v4248_v63, %v4181_v52  ;;  %v11931_v1 = vld [vmem:[#allocation110_spill] sm:$0xff] }
 0x28a   : > { %3507 = vrot.lane.b32.xlu1 %v9636_v62, %s7976_s29  ;;  %v11934_v52 = vld [vmem:[#allocation22_spill] sm:$0xff] }
 0x28b   : > { %v10049_v19 = vpop.permute.xlu0 %4161  ;;  %v4379_v24 = vpop.permute.xlu1 %4378  ;;  %v7479_v53 = vpack.c.bf16 %v4525_v12, %v4306_v31  ;;  %v4682_v31 = vrot.slane %v11931_v1, %v8397_v39  ;;  %v11932_v12 = vld [vmem:[#allocation115_spill] sm:$0xff] }
 0x28c   : > { %11928 = vst [vmem:[#allocation56_spill] sm:$0xff] %v10049_v19  ;;  %v4400_v37 = vsel %vm571_vm0, %v4377_v55, %v4379_v24  ;;  %v4182_v49 = vsel %vm352_vm1, %v4160_v16, %v10049_v19  ;;  %v11930_v16 = vld [vmem:[#allocation111_spill] sm:$0xff]  ;;  %v1214_v19 = vld [vmem:[%s8163_s23 + $0x40] sm:$0xff] }
 0x28d   : > { %3509 = vrot.lane.b32.xlu0 %v9753_v10, %s7976_s29  ;;  %7480 = vmatprep.subr.bf16.mxu0 %v7479_v53  ;;  %v4526_v13 = vmul.f32 %v4467_v36, %v4400_v37  ;;  %v4308_v54 = vmul.f32 %v4252_v40, %v4182_v49  ;;  %v4897_v7 = vrot.slane %v11930_v16, %v8395_v38  ;;  %v11933_v36 = vld [vmem:[#allocation114_spill] sm:$0xff] }
 0x28e   : > { %3292 = vrot.lane.b32.xlu1 %v9948_v51, %s7975_s15  ;;  %7482 = vmatpush1.bf16.msra.mxu0 %v7481_v27  ;;  %v4678_v53 = vrot.slane %v11931_v1, %v8395_v38 }
 0x28f   : > { %v10070_v41 = vpop.permute.xlu0 %4380  ;;  %v4594_v11 = vpop.permute.xlu1 %4593  ;;  %v7533_v5 = vpack.c.bf16 %v4526_v13, %v4307_v56 }
 0x290   : > { %11929 = vst [vmem:[#allocation55_spill] sm:$0xff] %v10070_v41  ;;  %v4401_v9 = vsel %vm571_vm0, %v4379_v24, %v10070_v41  ;;  %v4901_v24 = vrot.slane %v11930_v16, %v8397_v39  ;;  %v4617_v40 = vsel %vm791_vm3, %v11933_v36, %v4594_v11 }
 0x291   : > { %v4527_v48 = vmul.f32 %v4471_v4, %v4401_v9  ;;  %3294 = vrot.lane.b32.xlu0 %v10067_v59, %s7975_s15 }
 0x292   : > { %3511 = vrot.lane.b32.xlu1 %v9948_v51, %s7976_s29 }
 0x293   : > { %v4596_v61 = vpop.permute.xlu0 %4595  ;;  %v4813_v20 = vpop.permute.xlu1 %4812  ;;  %v7531_v55 = vpack.c.bf16 %v4527_v48, %v4308_v54 }
 0x294   : > { %v4836_v42 = vsel %vm1011_vm2, %v11932_v12, %v4813_v20  ;;  %v4618_v27 = vsel %vm791_vm3, %v4594_v11, %v4596_v61 }
 0x295   : > { %3513 = vrot.lane.b32.xlu0 %v10067_v59, %s7976_s29  ;;  %7532 = vmatprep.subr.bf16.mxu1 %v7531_v55  ;;  %v4962_v63 = vmul.f32 %v4897_v7, %v4836_v42  ;;  %v4744_v9 = vmul.f32 %v4682_v31, %v4618_v27  ;;  %v4743_v55 = vmul.f32 %v4678_v53, %v4617_v40  ;;  %v11937_v53 = vld [vmem:[#allocation42_spill] sm:$0xff] }
 0x296   : > { %3726 = vrot.lane.b32.xlu1 %v9636_v62, %s7977_s20  ;;  %7534 = vmatpush1.bf16.msra.mxu1 %v7533_v5  ;;  %v4905_v40 = vrot.slane %v11930_v16, %v11895_v58  ;;  %v5039_v7 = vrot.slane %v9530_v15, %v8397_v39 }
 0x297   : > { %v4815_v37 = vpop.permute.xlu0 %4814  ;;  %v4598_v4 = vpop.permute.xlu1 %4597 }
 0x298   : > { %v4837_v49 = vsel %vm1011_vm2, %v4813_v20, %v4815_v37  ;;  %v11935_v20 = vld [vmem:[#allocation23_spill] sm:$0xff] }
 0x299   : > { %v4963_v54 = vmul.f32 %v4901_v24, %v4837_v49  ;;  %3728 = vrot.lane.b32.xlu0 %v9753_v10, %s7977_s20  ;;  %v4690_v49 = vrot.slane %v11931_v1, %v8460_v18 }
 0x29a   : > { %3945 = vrot.lane.b32.xlu1 %v9636_v62, %s7978_s11  ;;  %v7485_v62 = vpack.c.bf16 %v4962_v63, %v4743_v55  ;;  %v5254_v55 = vrot.slane %v9534_v21, %v8395_v38 }
 0x29b   : > { %v10114_v12 = vpop.permute.xlu0 %4599  ;;  %v4817_v42 = vpop.permute.xlu1 %4816  ;;  %v7483_v24 = vpack.c.bf16 %v4963_v54, %v4744_v9  ;;  %v4909_v9 = vrot.slane %v11930_v16, %v8460_v18  ;;  %v4686_v54 = vrot.slane %v11931_v1, %v11895_v58  ;;  %v4619_v16 = vsel %vm791_vm3, %v4596_v61, %v4598_v4  ;;  %v4996_v1 = vld [vmem:[%s8163_s23 + $0x30] sm:$0xff] }
 0x29c   : > { %11936 = vst [vmem:[#allocation77_spill] sm:$0xff] %v10114_v12  ;;  %v4838_v31 = vsel %vm1011_vm2, %v4815_v37, %v4817_v42  ;;  %v4620_v63 = vsel %vm791_vm3, %v4598_v4, %v10114_v12  ;;  %v5035_v37 = vrot.slane %v9530_v15, %v8395_v38  ;;  %v5258_v4 = vrot.slane %v9534_v21, %v8397_v39  ;;  %v11945_v12 = vld [vmem:[#allocation15_spill] sm:$0xff] }
 0x29d   : > { %3947 = vrot.lane.b32.xlu0 %v9753_v10, %s7978_s11  ;;  %7484 = vmatprep.subr.bf16.mxu0 %v7483_v24  ;;  %v4964_v5 = vmul.f32 %v4905_v40, %v4838_v31  ;;  %v4746_v24 = vmul.f32 %v4690_v49, %v4620_v63  ;;  %v4745_v40 = vmul.f32 %v4686_v54, %v4619_v16 }
 0x29e   : > { %3730 = vrot.lane.b32.xlu1 %v9948_v51, %s7977_s20  ;;  %7486 = vmatpush1.bf16.msra.mxu0 %v7485_v62  ;;  %v11939_v62 = vld [vmem:[#allocation43_spill] sm:$0xff]  ;;  %v5100_v48 = vmul.f32 %v5035_v37, %v4996_v1  ;;  %v5047_v63 = vrot.slane %v9530_v15, %v8460_v18  ;;  %v5262_v54 = vrot.slane %v9534_v21, %v11895_v58 }
 0x29f   : > { %v10142_v36 = vpop.permute.xlu0 %4818  ;;  %v5169_v27 = vpop.permute.xlu1 %5168  ;;  %v7537_v31 = vpack.c.bf16 %v4964_v5, %v4745_v40 }
 0x2a0   : > { %11938 = vst [vmem:[#allocation76_spill] sm:$0xff] %v10142_v36  ;;  %v4839_v11 = vsel %vm1011_vm2, %v4817_v42, %v10142_v36  ;;  %v5190_v61 = vsel %vm1366_vm4, %v9587_v17, %v5169_v27  ;;  %v5043_v17 = vrot.slane %v9530_v15, %v11895_v58  ;;  %v11940_v15 = vld [vmem:[#allocation13_spill] sm:$0xff] }
 0x2a1   : > { %v4965_v56 = vmul.f32 %v4909_v9, %v4839_v11  ;;  %3732 = vrot.lane.b32.xlu0 %v10067_v59, %s7977_s20  ;;  %v5101_v9 = vmul.f32 %v5039_v7, %v9909_v3  ;;  %v5319_v13 = vmul.f32 %v5254_v55, %v5190_v61  ;;  %v11941_v7 = vld [vmem:[#allocation12_spill] sm:$0xff]  ;;  %v11942_v55 = vld [vmem:[#allocation61_spill] sm:$0xff] }
 0x2a2   : > { %3949 = vrot.lane.b32.xlu1 %v9948_v51, %s7978_s11  ;;  %v402_v5 = vsel %vm352_vm1, %v11941_v7, %v11940_v15  ;;  %v10188_v61 = vld [vmem:[%s8163_s23 + $0x48] sm:$0xff] }
 0x2a3   : > { %v5171_v11 = vpop.permute.xlu0 %5170  ;;  %v7535_v49 = vpack.c.bf16 %v4965_v56, %v4746_v24  ;;  %v5266_v56 = vrot.slane %v9534_v21, %v8460_v18  ;;  %v1267_v24 = vrot.slane %v11942_v55, %v8411_v44  ;;  %v7489_v7 = vpack.c.bf16 %v5319_v13, %v5100_v48 }
 0x2a4   : > { %v5191_v42 = vsel %vm1366_vm4, %v5169_v27, %v5171_v11  ;;  %v5173_v37 = vpop.permute.xlu1 %5172  ;;  %v5102_v27 = vmul.f32 %v5043_v17, %v10001_v34  ;;  %v11946_v13 = vrot.slane %v11934_v52, %v8411_v44  ;;  %v7829_v17 = vld [vmem:[%s8163_s23 + $0x30] sm:$0xff] }
 0x2a5   : > { %v5320_v16 = vmul.f32 %v5258_v4, %v5191_v42  ;;  %v5192_v1 = vsel %vm1366_vm4, %v5171_v11, %v5173_v37  ;;  %3951 = vrot.lane.b32.xlu0 %v10067_v59, %s7978_s11  ;;  %7536 = vmatprep.subr.bf16.mxu1 %v7535_v49  ;;  %v11943_v4 = vld [vmem:[#allocation14_spill] sm:$0xff]  ;;  %v1275_v42 = vrot.slane %v11942_v55, %v8413_v45 }
 0x2a6   : > { %4163 = vrot.lane.b32.xlu1 %v9753_v10, %s7971_s30  ;;  %7538 = vmatpush1.bf16.msra.mxu1 %v7537_v31  ;;  %v403_v21 = vsel %vm352_vm1, %v11940_v15, %v11943_v4  ;;  %v5103_v49 = vmul.f32 %v5047_v63, %v10188_v61  ;;  %v5321_v35 = vmul.f32 %v5262_v54, %v5192_v1  ;;  %v11947_v63 = vld [vmem:[#allocation62_spill] sm:$0xff]  ;;  %v11953_v1 = vld [vmem:[#allocation24_spill] sm:$0xff] }
 0x2a7   : > { %v10195_v40 = vpop.permute.xlu0 %5174  ;;  %v7487_v11 = vpack.c.bf16 %v5320_v16, %v5101_v9  ;;  %v404_v15 = vsel %vm352_vm1, %v11943_v4, %v11945_v12  ;;  %v10212_v48 = vmul.f32 %v11946_v13, %v402_v5  ;;  %v10215_v9 = vmul.f32 %v7829_v17, %v1267_v24 }
 0x2a8   : > { %11944 = vst [vmem:[#allocation81_spill] sm:$0xff] %v10195_v40  ;;  %v5193_v31 = vsel %vm1366_vm4, %v5173_v37, %v10195_v40  ;;  %v5388_v30 = vpop.permute.xlu1 %5387  ;;  %v11948_v37 = vrot.slane %v11934_v52, %v8405_v43  ;;  %v11949_v4 = vrot.slane %v11934_v52, %v8413_v45  ;;  %v5477_v17 = vrot.slane %v9597_v25, %v8397_v39  ;;  %v11954_v40 = vld [vmem:[#allocation25_spill] sm:$0xff] }
 0x2a9   : > { %v5322_v41 = vmul.f32 %v5266_v56, %v5193_v31  ;;  %4165 = vrot.lane.b32.xlu0 %v9948_v51, %s7971_s30  ;;  %7488 = vmatprep.subr.bf16.mxu0 %v7487_v11  ;;  %v7541_v31 = vpack.c.bf16 %v5321_v35, %v5102_v27  ;;  %v5473_v35 = vrot.slane %v9597_v25, %v8395_v38  ;;  %v10253_v27 = vld [vmem:[%s8163_s23 + $0x68] sm:$0xff] }
 0x2aa   : > { %4382 = vrot.lane.b32.xlu1 %v9753_v10, %s7972_s9  ;;  %7490 = vmatpush1.bf16.msra.mxu0 %v7489_v7  ;;  %v10224_v16 = vmul.f32 %v11948_v37, %v403_v21  ;;  %v10233_v11 = vmul.f32 %v11949_v4, %v404_v15  ;;  %v10235_v7 = vmul.f32 %v1275_v42, %v1214_v19  ;;  %v11950_v42 = vld [vmem:[#allocation16_spill] sm:$0xff]  ;;  %v11951_v15 = vld [vmem:[#allocation21_spill] sm:$0xff] }
 0x2ab   : > { %v5390_v5 = vpop.permute.xlu0 %5389  ;;  %v7539_v24 = vpack.c.bf16 %v5322_v41, %v5103_v49  ;;  %v5692_v21 = vrot.slane %v9603_v29, %v8395_v38  ;;  %v5696_v41 = vrot.slane %v9603_v29, %v8397_v39  ;;  %v405_v49 = vsel %vm352_vm1, %v11945_v12, %v11950_v42 }
 0x2ac   : > { %v5607_v13 = vpop.permute.xlu1 %5606  ;;  %v5410_v19 = vsel %vm1586_vm5, %v5388_v30, %v5390_v5  ;;  %v5409_v56 = vsel %vm1586_vm5, %v9638_v60, %v5388_v30  ;;  %v622_v36 = vsel %vm571_vm0, %v11951_v15, %v11953_v1  ;;  %v623_v6 = vsel %vm571_vm0, %v11953_v1, %v11954_v40 }
 0x2ad   : > { %v5628_v37 = vsel %vm1806_vm6, %v9657_v32, %v5607_v13  ;;  %4384 = vrot.lane.b32.xlu0 %v9948_v51, %s7972_s9  ;;  %7540 = vmatprep.subr.bf16.mxu1 %v7539_v24  ;;  %v1271_v32 = vrot.slane %v11942_v55, %v8405_v43  ;;  %v11952_v24 = vld [vmem:[#allocation20_spill] sm:$0xff] }
 0x2ae   : > { %4167 = vrot.lane.b32.xlu1 %v10067_v59, %s7971_s30  ;;  %7542 = vmatpush1.bf16.msra.mxu1 %v7541_v31  ;;  %v621_v4 = vsel %vm571_vm0, %v11952_v24, %v11951_v15  ;;  %v1279_v31 = vrot.slane %v11942_v55, %v8415_v46  ;;  %v5757_v12 = vmul.f32 %v5692_v21, %v5628_v37  ;;  %v11955_v24 = vld [vmem:[#allocation26_spill] sm:$0xff] }
 0x2af   : > { %v5609_v54 = vpop.permute.xlu0 %5608  ;;  %v624_v30 = vsel %vm571_vm0, %v11954_v40, %v11955_v24  ;;  %v5539_v55 = vmul.f32 %v5477_v17, %v5410_v19  ;;  %v11956_v15 = vrot.slane %v11934_v52, %v8415_v46  ;;  %v11957_v21 = vrot.slane %v11935_v20, %v8411_v44 }
 0x2b0   : > { %v5629_v42 = vsel %vm1806_vm6, %v5607_v13, %v5609_v54  ;;  %v5392_v8 = vpop.permute.xlu1 %5391  ;;  %v5538_v37 = vmul.f32 %v5473_v35, %v5409_v56  ;;  %v10294_v40 = vmul.f32 %v9909_v3, %v1271_v32  ;;  %v11958_v17 = vrot.slane %v11935_v20, %v8405_v43  ;;  %v11962_v32 = vld [vmem:[#allocation36_spill] sm:$0xff] }
 0x2b1   : > { %v5758_v57 = vmul.f32 %v5696_v41, %v5629_v42  ;;  %4169 = vrot.lane.b32.xlu0 %v10253_v27, %s7971_s30  ;;  %v10284_v1 = vmul.f32 %v11956_v15, %v405_v49  ;;  %v10289_v13 = vmul.f32 %v11957_v21, %v621_v4  ;;  %v11959_v52 = vrot.slane %v11935_v20, %v8413_v45  ;;  %v11963_v42 = vld [vmem:[#allocation35_spill] sm:$0xff]  ;;  %v11964_v21 = vld [vmem:[#allocation37_spill] sm:$0xff] }
 0x2b2   : > { %4386 = vrot.lane.b32.xlu1 %v10067_v59, %s7972_s9  ;;  %v10299_v41 = vmul.f32 %v11958_v17, %v622_v36  ;;  %v10309_v56 = vmul.f32 %v10188_v61, %v1279_v31  ;;  %v11961_v3 = vrot.slane %v11935_v20, %v8415_v46  ;;  %v841_v36 = vsel %vm791_vm3, %v11963_v42, %v11962_v32 }
 0x2b3   : > { %v10304_v19 = vmul.f32 %v11959_v52, %v623_v6  ;;  %v10306_v49 = vpop.permute.xlu0 %5393  ;;  %v7491_v4 = vpack.c.bf16 %v5758_v57, %v5539_v55  ;;  %v7493_v24 = vpack.c.bf16 %v5757_v12, %v5538_v37  ;;  %v5700_v6 = vrot.slane %v9603_v29, %v11895_v58 }
 0x2b4   : > { %11960 = vst [vmem:[#allocation80_spill] sm:$0xff] %v10306_v49  ;;  %v10314_v35 = vmul.f32 %v11961_v3, %v624_v30  ;;  %v5611_v15 = vpop.permute.xlu1 %5610  ;;  %v5485_v57 = vrot.slane %v9597_v25, %v8460_v18  ;;  %v5704_v20 = vrot.slane %v9603_v29, %v8460_v18  ;;  %v5481_v12 = vrot.slane %v9597_v25, %v11895_v58 }
 0x2b5   : > { %v5630_v31 = vsel %vm1806_vm6, %v5609_v54, %v5611_v15  ;;  %4388 = vrot.lane.b32.xlu0 %v10253_v27, %s7972_s9  ;;  %7492 = vmatprep.subr.bf16.mxu0 %v7491_v4  ;;  %v5412_v55 = vsel %vm1586_vm5, %v5392_v8, %v10306_v49  ;;  %v842_v29 = vsel %vm791_vm3, %v11962_v32, %v11964_v21  ;;  %v11966_v54 = vld [vmem:[#allocation41_spill] sm:$0xff] }
 0x2b6   : > { %4601 = vrot.lane.b32.xlu1 %v9753_v10, %s7973_s16  ;;  %7494 = vmatpush1.bf16.msra.mxu0 %v7493_v24  ;;  %v5411_v37 = vsel %vm1586_vm5, %v5390_v5, %v5392_v8  ;;  %v7547_v25 = vpack.c.bf16 %v10299_v41, %v10224_v16  ;;  %v11965_v52 = vrot.slane %v11937_v53, %v8411_v44  ;;  %v11967_v8 = vld [vmem:[#allocation40_spill] sm:$0xff] }
 0x2b7   : > { %v10342_v17 = vpop.permute.xlu0 %5612  ;;  %v5759_v3 = vmul.f32 %v5700_v6, %v5630_v31  ;;  %v1061_v5 = vsel %vm1011_vm2, %v11967_v8, %v11966_v54  ;;  %v5541_v60 = vmul.f32 %v5485_v57, %v5412_v55  ;;  %v5915_v16 = vrot.slane %v9644_v0, %v8397_v39  ;;  %v11969_v6 = vld [vmem:[#allocation38_spill] sm:$0xff]  ;;  %v11970_v57 = vld [vmem:[#allocation39_spill] sm:$0xff]  ;;  %v11971_v55 = vld [vmem:[#allocation44_spill] sm:$0xff] }
 0x2b8   : > { %v10349_v4 = vmul.f32 %v11965_v52, %v841_v36  ;;  %v5631_v42 = vsel %vm1806_vm6, %v5611_v15, %v10342_v17  ;;  %v5826_v24 = vpop.permute.xlu1 %5825  ;;  %v11968_v41 = vrot.slane %v11937_v53, %v8405_v43  ;;  %v843_v15 = vsel %vm791_vm3, %v11964_v21, %v11969_v6 }
 0x2b9   : > { %v5760_v30 = vmul.f32 %v5704_v20, %v5631_v42  ;;  %4603 = vrot.lane.b32.xlu0 %v9948_v51, %s7973_s16  ;;  %v5540_v31 = vmul.f32 %v5481_v12, %v5411_v37  ;;  %v5911_v52 = vrot.slane %v9644_v0, %v8395_v38  ;;  %v844_v20 = vsel %vm791_vm3, %v11969_v6, %v11970_v57  ;;  %v11975_v38 = vld [vmem:[#allocation63_spill] sm:$0xff] }
 0x2ba   : > { %v963_v36 = vmul.f32 %v11968_v41, %v842_v29  ;;  %4820 = vrot.lane.b32.xlu1 %v9753_v10, %s7974_s14  ;;  %v1062_v42 = vsel %vm1011_vm2, %v11966_v54, %v11971_v55  ;;  %v5847_v29 = vsel %vm2026_vm7, %v9691_v26, %v5826_v24  ;;  %v11972_v12 = vrot.slane %v11939_v62, %v8411_v44  ;;  %v11973_v41 = vld [vmem:[#allocation46_spill] sm:$0xff]  ;;  %v11974_v10 = vld [vmem:[#allocation45_spill] sm:$0xff] }
 0x2bb   : > { %v5828_v8 = vpop.permute.xlu0 %5827  ;;  %v7543_v21 = vpack.c.bf16 %v5760_v30, %v5541_v60  ;;  %v1064_v32 = vsel %vm1011_vm2, %v11974_v10, %v11973_v41  ;;  %v7545_v39 = vpack.c.bf16 %v5759_v3, %v5540_v31  ;;  %v11976_v54 = vld [vmem:[#allocation58_spill] sm:$0xff]  ;;  %v5923_v60 = vrot.slane %v9644_v0, %v8460_v18 }
 0x2bc   : > { %v10383_v37 = vmul.f32 %v11972_v12, %v1061_v5  ;;  %v5848_v6 = vsel %vm2026_vm7, %v5826_v24, %v5828_v8  ;;  %v5830_v57 = vpop.permute.xlu1 %5829  ;;  %v1419_v49 = vsel %vm1366_vm4, %v11976_v54, %v11975_v38  ;;  %v11977_v30 = vrot.slane %v11939_v62, %v8405_v43  ;;  %v1887_v31 = vld [vmem:[#allocation6 + $0x47] ss:$8 sm:$0xf] }
 0x2bd   : > { %4822 = vrot.lane.b32.xlu0 %v9948_v51, %s7974_s14  ;;  %7544 = vmatprep.subr.bf16.mxu1 %v7543_v21  ;;  %v5977_v26 = vmul.f32 %v5915_v16, %v5848_v6  ;;  %v5976_v3 = vmul.f32 %v5911_v52, %v5847_v29  ;;  %v5919_v24 = vrot.slane %v9644_v0, %v11895_v58  ;;  %v1888_v12 = vld [vmem:[#allocation6 + $0x47] ss:$8 sm:$0xf0] }
 0x2be   : > { %v1183_v5 = vmul.f32 %v11977_v30, %v1062_v42  ;;  %4605 = vrot.lane.b32.xlu1 %v10067_v59, %s7973_s16  ;;  %7546 = vmatpush1.bf16.msra.mxu1 %v7545_v39  ;;  %v11978_v16 = vrot.slane %v11937_v53, %v8413_v45  ;;  %v11979_v41 = vrot.slane %v11937_v53, %v8415_v46 }
 0x2bf   : > { %v1063_v52 = vsel %vm1011_vm2, %v11971_v55, %v11974_v10  ;;  %v5849_v0 = vsel %vm2026_vm7, %v5828_v8, %v5830_v57  ;;  %v10415_v42 = vpop.permute.xlu0 %5831  ;;  %6642 = vmatprep.subr.mxu0 %v5977_v26  ;;  %v11980_v39 = vrot.slane %v11939_v62, %v8415_v46  ;;  %v11982_v53 = vrot.slane %v11947_v63, %v8405_v43  ;;  %v1667_v10 = vld [vmem:[#allocation6 + $0x46] ss:$8 sm:$0xf] }
 0x2c0   : > { %v10406_v21 = vmul.f32 %v11978_v16, %v843_v15  ;;  %v965_v6 = vmul.f32 %v11979_v41, %v844_v20  ;;  %v11981_v15 = vld [vmem:[#allocation57_spill] sm:$0xff]  ;;  %v5850_v55 = vsel %vm2026_vm7, %v5830_v57, %v10415_v42  ;;  %v1619_v16 = vpop.permute.xlu1 %1618  ;;  %6643 = vmatpush1.msra.mxu0 %v5976_v3  ;;  %v7553_v26 = vpack.c.bf16 %v10383_v37, %v10349_v4  ;;  %v7830_v57 = vld [vmem:[%s11603_s1] sm:$0xff] }
 0x2c1   : > { %v1185_v29 = vmul.f32 %v11980_v39, %v1064_v32  ;;  %v1418_v30 = vsel %vm1366_vm4, %v11981_v15, %v11976_v54  ;;  %v1541_v20 = vmul.f32 %v11982_v53, %v1419_v49  ;;  %v1668_v8 = vld [vmem:[#allocation6 + $0x46] ss:$8 sm:$0xf0]  ;;  %4607 = vrot.lane.b32.xlu0 %v10253_v27, %s7973_s16  ;;  %7548 = vmatprep.subr.bf16.mxu0 %v7547_v25 }
 0x2c2   : > { %v5979_v32 = vmul.f32 %v5923_v60, %v5850_v55  ;;  %v10432_v54 = vor.u32 %v1888_v12, %v1887_v31  ;;  %v11983_v49 = vrot.slane %v11939_v62, %v8413_v45  ;;  %v5978_v39 = vmul.f32 %v5919_v24, %v5849_v0  ;;  %4824 = vrot.lane.b32.xlu1 %v10067_v59, %s7974_s14  ;;  %v11985_v60 = vld [vmem:[#allocation65_spill] sm:$0xff]  ;;  %v11986_v3 = vld [vmem:[#allocation64_spill] sm:$0xff] }
 0x2c3   : > { %6655 = vmatmul.mubr.f32.vlgmr.msra.gmra.mrb[2].mxu0 %v7830_v57  ;;  %v7551_v4 = vpack.c.bf16 %v1183_v5, %v963_v36  ;;  %v11984_v25 = vrot.slane %v11947_v63, %v8411_v44  ;;  %v1421_v31 = vsel %vm1366_vm4, %v11986_v3, %v11985_v60  ;;  %v10448_v62 = vor.u32 %v1668_v8, %v1667_v10  ;;  %v1621_v12 = vpop.permute.xlu0 %1620 }
 0x2c4   : > { %v1184_v41 = vmul.f32 %v11983_v49, %v1063_v52  ;;  %v11987_v24 = vpack.c.bf16 %v10289_v13, %v10212_v48  ;;  %6713 = vmatprep.subr.mxu1 %v5979_v32  ;;  %v1420_v36 = vsel %vm1366_vm4, %v11975_v38, %v11986_v3  ;;  %v1839_v5 = vpop.permute.xlu1 %1838  ;;  %v7555_v52 = vpack.c.bf16 %v1541_v20, %v10294_v40  ;;  %v2326_v3 = vld [vmem:[#allocation6 + $0xc1] ss:$8 sm:$0xf] }
 0x2c5   : > { %v1540_v37 = vmul.f32 %v11984_v25, %v1418_v30  ;;  %6714 = vmatpush1.msra.mxu1 %v5978_v39  ;;  %v7603_v0 = vpack.c.bf16 %v1185_v29, %v965_v6  ;;  %v1711_v15 = vrot.slane %v10448_v62, %v8405_v43  ;;  %v1927_v30 = vrot.slane %v10432_v54, %v8411_v44 }
 0x2c6   : > { %7550 = vmatpush1.bf16.msra.mxu0 %v11987_v24  ;;  %4826 = vrot.lane.b32.xlu0 %v10253_v27, %s7974_s14  ;;  %v11988_v48 = vpack.c.bf16 %v10314_v35, %v10284_v1  ;;  %v1931_v38 = vrot.slane %v10432_v54, %v8405_v43  ;;  %v11989_v13 = vrot.slane %v11947_v63, %v8415_v46 }
 0x2c7   : > { %7552 = vmatprep.subr.bf16.mxu0 %v7551_v4  ;;  %v1639_v6 = vsel %vm1586_vm5, %v1619_v16, %v1621_v12  ;;  %v1858_v29 = vsel %vm1806_vm6, %v9779_v14, %v1839_v5  ;;  %5176 = vrot.lane.b32.xlu1 %v9948_v51, %s7975_s15  ;;  %v7605_v53 = vpack.c.bf16 %v1184_v41, %v10406_v21  ;;  %v1841_v55 = vpop.permute.xlu0 %1840 }
 0x2c8   : > { %7600 = vmatprep.subr.bf16.mxu1 %v11988_v48  ;;  %v1543_v40 = vmul.f32 %v11989_v13, %v1421_v31  ;;  %6726 = vmatmul.mubr.f32.vlgmr.msra.gmra.mrb[2].mxu1 %v7830_v57  ;;  %v7557_v1 = vpack.c.bf16 %v1540_v37, %v10215_v9  ;;  %v1707_v35 = vrot.slane %v10448_v62, %v8411_v44  ;;  %v1623_v9 = vpop.permute.xlu1 %1622 }
 0x2c9   : > { %v11990_v20 = vpack.c.bf16 %v10304_v19, %v10233_v11  ;;  %v11991_v14 = vrot.slane %v11947_v63, %v8413_v45  ;;  %v1638_v8 = vsel %vm1586_vm5, %v9755_v33, %v1619_v16  ;;  %v1859_v21 = vsel %vm1806_vm6, %v1839_v5, %v1841_v55  ;;  %v7831_v11 = vld [vmem:[%s11603_s1 + $0x8] sm:$0xff]  ;;  %v10499_v63 = vld [vmem:[%s8163_s23 + $0x70] sm:$0xff] }
 0x2ca   : > { %7554 = vmatpush1.bf16.msra.mxu0 %v7553_v26  ;;  %v1761_v32 = vmul.f32 %v1711_v15, %v1639_v6  ;;  %v1980_v26 = vmul.f32 %v1927_v30, %v1858_v29  ;;  %v1981_v49 = vmul.f32 %v1931_v38, %v1859_v21  ;;  %5178 = vrot.lane.b32.xlu0 %v10067_v59, %s7975_s15 }
 0x2cb   : > { %7602 = vmatpush1.bf16.msra.mxu1 %v11990_v20  ;;  %v1542_v10 = vmul.f32 %v11991_v14, %v1420_v36  ;;  %7556 = vmatprep.subr.bf16.mxu0 %v7555_v52  ;;  %v7607_v33 = vpack.c.bf16 %v1543_v40, %v10309_v56  ;;  %v1760_v19 = vmul.f32 %v1707_v35, %v1638_v8  ;;  %v10502_v16 = vpop.permute.xlu0 %1624  ;;  %v2107_v52 = vld [vmem:[#allocation6 + $0xc0] ss:$8 sm:$0xf] }
 0x2cc   : > { %7604 = vmatprep.subr.bf16.mxu1 %v7603_v0  ;;  %7328 = vmatprep.mubr.msk.f32.mxu0 %vm6444_vm8, %v7831_v11  ;;  %v7559_v41 = vpack.c.bf16 %v1981_v49, %v1761_v32  ;;  %v1719_v57 = vrot.slane %v10448_v62, %v8415_v46  ;;  %v1935_v4 = vrot.slane %v10432_v54, %v8413_v45  ;;  %v1843_v56 = vpop.permute.xlu1 %1842  ;;  %v2108_v0 = vld [vmem:[#allocation6 + $0xc0] ss:$8 sm:$0xf0] }
 0x2cd   : > { %5180 = vrot.lane.b32.xlu1 %v10253_v27, %s7975_s15  ;;  %7329 = vmatprep.mubr.msk.f32.mxu1 %vm6444_vm8, %v7831_v11  ;;  %v7609_v39 = vpack.c.bf16 %v1542_v10, %v10235_v7  ;;  %v7561_v25 = vpack.c.bf16 %v1980_v26, %v1760_v19  ;;  %v1860_v37 = vsel %vm1806_vm6, %v1841_v55, %v1843_v56  ;;  %v2327_v7 = vld [vmem:[#allocation6 + $0xc1] ss:$8 sm:$0xf0] }
 0x2ce   : > { %7558 = vmatpush1.bf16.msra.mxu0 %v7557_v1  ;;  %5182 = vrot.lane.b32.xlu0 %v10499_v63, %s7975_s15  ;;  %v1939_v60 = vrot.slane %v10432_v54, %v8415_v46  ;;  %v1715_v31 = vrot.slane %v10448_v62, %v8413_v45  ;;  %v1641_v24 = vsel %vm1586_vm5, %v1623_v9, %v10502_v16 }
 0x2cf   : > { %7606 = vmatpush1.bf16.msra.mxu1 %v7605_v53  ;;  %7560 = vmatprep.subr.bf16.mxu0 %v7559_v41  ;;  %v1640_v36 = vsel %vm1586_vm5, %v1621_v12, %v1623_v9  ;;  %v10521_v5 = vpop.permute.xlu0 %1844  ;;  %v1982_v15 = vmul.f32 %v1935_v4, %v1860_v37  ;;  %v10525_v38 = vor.u32 %v2327_v7, %v2326_v3  ;;  %v2765_v3 = vld [vmem:[#allocation6 + $0xc3] ss:$8 sm:$0xf0] }
 0x2d0   : > { %7608 = vmatprep.subr.bf16.mxu1 %v7607_v33  ;;  %v1861_v30 = vsel %vm1806_vm6, %v1843_v56, %v10521_v5  ;;  %v2059_v48 = vpop.permute.xlu1 %2058  ;;  %v1763_v13 = vmul.f32 %v1719_v57, %v1641_v24  ;;  %v1762_v6 = vmul.f32 %v1715_v31, %v1640_v36  ;;  %v10529_v12 = vor.u32 %v2108_v0, %v2107_v52  ;;  %v2545_v52 = vld [vmem:[#allocation6 + $0xc2] ss:$8 sm:$0xf] }
 0x2d1   : > { %5395 = vrot.lane.b32.xlu1 %v9948_v51, %s7976_s29  ;;  %v1983_v40 = vmul.f32 %v1939_v60, %v1861_v30  ;;  %v2366_v35 = vrot.slane %v10525_v38, %v8411_v44  ;;  %v2370_v10 = vrot.slane %v10525_v38, %v8405_v43  ;;  %v2078_v9 = vsel %vm2026_vm7, %v9812_v22, %v2059_v48  ;;  %v2764_v60 = vld [vmem:[#allocation6 + $0xc3] ss:$8 sm:$0xf]  ;;  %v2546_v0 = vld [vmem:[#allocation6 + $0xc2] ss:$8 sm:$0xf0] }
 0x2d2   : > { %7562 = vmatpush1.bf16.msra.mxu0 %v7561_v25  ;;  %5397 = vrot.lane.b32.xlu0 %v10067_v59, %s7976_s29  ;;  %v7613_v1 = vpack.c.bf16 %v1982_v15, %v1762_v6  ;;  %v2151_v55 = vrot.slane %v10529_v12, %v8405_v43  ;;  %v2147_v8 = vrot.slane %v10529_v12, %v8411_v44 }
 0x2d3   : > { %7610 = vmatpush1.bf16.msra.mxu1 %v7609_v39  ;;  %v2061_v29 = vpop.permute.xlu0 %2060  ;;  %v7611_v53 = vpack.c.bf16 %v1983_v40, %v1763_v13  ;;  %v2374_v22 = vrot.slane %v10525_v38, %v8413_v45  ;;  %v2159_v56 = vrot.slane %v10529_v12, %v8415_v46  ;;  %v2378_v37 = vrot.slane %v10525_v38, %v8415_v46 }
 0x2d4   : > { %v2276_v20 = vpop.permute.xlu1 %2275  ;;  %v2079_v21 = vsel %vm2026_vm7, %v2059_v48, %v2061_v29  ;;  %v2200_v19 = vmul.f32 %v2147_v8, %v2078_v9  ;;  %v2155_v7 = vrot.slane %v10529_v12, %v8413_v45  ;;  %v10577_v13 = vor.u32 %v2765_v3, %v2764_v60 }
 0x2d5   : > { %5614 = vrot.lane.b32.xlu1 %v9948_v51, %s7977_s20  ;;  %v2296_v14 = vsel %vm352_vm1, %v9830_v50, %v2276_v20  ;;  %7612 = vmatprep.subr.bf16.mxu1 %v7611_v53  ;;  %v2201_v11 = vmul.f32 %v2151_v55, %v2079_v21 }
 0x2d6   : > { %5616 = vrot.lane.b32.xlu0 %v10067_v59, %s7977_s20  ;;  %v2419_v32 = vmul.f32 %v2366_v35, %v2296_v14  ;;  %v2804_v55 = vrot.slane %v10577_v13, %v8411_v44  ;;  %v2808_v21 = vrot.slane %v10577_v13, %v8405_v43  ;;  %v2812_v3 = vrot.slane %v10577_v13, %v8413_v45 }
 0x2d7   : > { %7614 = vmatpush1.bf16.msra.mxu1 %v7613_v1  ;;  %v2278_v50 = vpop.permute.xlu0 %2277  ;;  %v10581_v1 = vor.u32 %v2546_v0, %v2545_v52  ;;  %v2816_v0 = vrot.slane %v10577_v13, %v8415_v46 }
 0x2d8   : > { %v2297_v26 = vsel %vm352_vm1, %v2276_v20, %v2278_v50  ;;  %v2063_v49 = vpop.permute.xlu1 %2062  ;;  %v7565_v57 = vpack.c.bf16 %v2419_v32, %v2200_v19 }
 0x2d9   : > { %5399 = vrot.lane.b32.xlu1 %v10253_v27, %s7976_s29  ;;  %v2420_v33 = vmul.f32 %v2370_v10, %v2297_v26  ;;  %v2080_v24 = vsel %vm2026_vm7, %v2061_v29, %v2063_v49  ;;  %v2589_v10 = vrot.slane %v10581_v1, %v8405_v43  ;;  %v2585_v9 = vrot.slane %v10581_v1, %v8411_v44  ;;  %v3121_v26 = vld [vmem:[#allocation6 + $0xc5] ss:$8 sm:$0xf] }
 0x2da   : > { %5401 = vrot.lane.b32.xlu0 %v10499_v63, %s7976_s29  ;;  %v2202_v53 = vmul.f32 %v2155_v7, %v2080_v24  ;;  %v2597_v24 = vrot.slane %v10581_v1, %v8415_v46 }
 0x2db   : > { %v10555_v41 = vpop.permute.xlu0 %2064  ;;  %v7563_v39 = vpack.c.bf16 %v2420_v33, %v2201_v11 }
 0x2dc   : > { %v2280_v4 = vpop.permute.xlu1 %2279  ;;  %v2081_v31 = vsel %vm2026_vm7, %v2063_v49, %v10555_v41  ;;  %v3122_v49 = vld [vmem:[#allocation6 + $0xc5] ss:$8 sm:$0xf0] }
 0x2dd   : > { %5618 = vrot.lane.b32.xlu1 %v10253_v27, %s7977_s20  ;;  %v2298_v25 = vsel %vm352_vm1, %v2278_v50, %v2280_v4  ;;  %7564 = vmatprep.subr.bf16.mxu0 %v7563_v39  ;;  %v2203_v40 = vmul.f32 %v2159_v56, %v2081_v31 }
 0x2de   : > { %5620 = vrot.lane.b32.xlu0 %v10499_v63, %s7977_s20  ;;  %7566 = vmatpush1.bf16.msra.mxu0 %v7565_v57  ;;  %v2421_v15 = vmul.f32 %v2374_v22, %v2298_v25  ;;  %v2983_v22 = vld [vmem:[#allocation6 + $0xc4] ss:$8 sm:$0xf]  ;;  %v10607_v25 = vor.u32 %v3122_v49, %v3121_v26 }
 0x2df   : > { %v10573_v36 = vpop.permute.xlu0 %2281 }
 0x2e0   : > { %v2299_v30 = vsel %vm352_vm1, %v2280_v4, %v10573_v36  ;;  %v2495_v48 = vpop.permute.xlu1 %2494  ;;  %v7617_v20 = vpack.c.bf16 %v2421_v15, %v2202_v53  ;;  %v2984_v4 = vld [vmem:[#allocation6 + $0xc4] ss:$8 sm:$0xf0]  ;;  %v2593_v15 = vrot.slane %v10581_v1, %v8413_v45  ;;  %v3165_v53 = vrot.slane %v10607_v25, %v8405_v43 }
 0x2e1   : > { %5833 = vrot.lane.b32.xlu1 %v9948_v51, %s7978_s11  ;;  %v2422_v6 = vmul.f32 %v2378_v37, %v2299_v30  ;;  %v10613_v31 = vor.u32 %v2984_v4, %v2983_v22  ;;  %v3169_v26 = vrot.slane %v10607_v25, %v8413_v45 }
 0x2e2   : > { %5835 = vrot.lane.b32.xlu0 %v10067_v59, %s7978_s11  ;;  %v3215_v49 = vmul.f32 %v10188_v61, %v3165_v53 }
 0x2e3   : > { %v2497_v29 = vpop.permute.xlu0 %2496  ;;  %v7615_v35 = vpack.c.bf16 %v2422_v6, %v2203_v40  ;;  %v3035_v61 = vrot.slane %v10613_v31, %v8415_v46 }
 0x2e4   : > { %v2714_v14 = vpop.permute.xlu1 %2713  ;;  %v2516_v50 = vsel %vm571_vm0, %v2495_v48, %v2497_v29 }
 0x2e5   : > { %5837 = vrot.lane.b32.xlu1 %v10253_v27, %s7978_s11  ;;  %v2734_v8 = vsel %vm791_vm3, %v9880_v23, %v2714_v14  ;;  %7616 = vmatprep.subr.bf16.mxu1 %v7615_v35  ;;  %v2515_v23 = vsel %vm571_vm0, %v9860_v2, %v2495_v48  ;;  %v2639_v39 = vmul.f32 %v2589_v10, %v2516_v50 }
 0x2e6   : > { %5839 = vrot.lane.b32.xlu0 %v10499_v63, %s7978_s11  ;;  %7618 = vmatpush1.bf16.msra.mxu1 %v7617_v20  ;;  %v2857_v11 = vmul.f32 %v2804_v55, %v2734_v8  ;;  %v2638_v56 = vmul.f32 %v2585_v9, %v2515_v23  ;;  %v3161_v48 = vrot.slane %v10607_v25, %v8411_v44  ;;  %v10647_v23 = vld [vmem:[%s8163_s23 + $0x58] sm:$0xff] }
 0x2e7   : > { %v2716_v32 = vpop.permute.xlu0 %2715  ;;  %v3023_v55 = vrot.slane %v10613_v31, %v8411_v44 }
 0x2e8   : > { %v2735_v33 = vsel %vm791_vm3, %v2714_v14, %v2716_v32  ;;  %v2499_v19 = vpop.permute.xlu1 %2498  ;;  %v7569_v60 = vpack.c.bf16 %v2857_v11, %v2638_v56  ;;  %v3214_v50 = vmul.f32 %v3161_v48, %v10001_v34  ;;  %v3173_v11 = vrot.slane %v10607_v25, %v8415_v46 }
 0x2e9   : > { %1626 = vrot.lane.b32.xlu1 %v9948_v51, %s7976_s29  ;;  %v2858_v57 = vmul.f32 %v2808_v21, %v2735_v33  ;;  %v7832_v51 = vld [vmem:[%s8163_s23 + $0x58] sm:$0xff]  ;;  %v2517_v40 = vsel %vm571_vm0, %v2497_v29, %v2499_v19  ;;  %v3027_v29 = vrot.slane %v10613_v31, %v8405_v43  ;;  %v3031_v34 = vrot.slane %v10613_v31, %v8413_v45 }
 0x2ea   : > { %1628 = vrot.lane.b32.xlu0 %v10067_v59, %s7976_s29  ;;  %v2640_v9 = vmul.f32 %v2593_v15, %v2517_v40 }
 0x2eb   : > { %v10609_v2 = vpop.permute.xlu0 %2500  ;;  %v7567_v37 = vpack.c.bf16 %v2858_v57, %v2639_v39  ;;  %v10660_v57 = vld [vmem:[%s8163_s23 + $0x50] sm:$0xff] }
 0x2ec   : > { %v2718_v7 = vpop.permute.xlu1 %2717  ;;  %v2518_v30 = vsel %vm571_vm0, %v2499_v19, %v10609_v2 }
 0x2ed   : > { %1846 = vrot.lane.b32.xlu1 %v7832_v51, %s7977_s20  ;;  %v2736_v52 = vsel %vm791_vm3, %v2716_v32, %v2718_v7  ;;  %7568 = vmatprep.subr.bf16.mxu0 %v7567_v37  ;;  %v2641_v10 = vmul.f32 %v2597_v24, %v2518_v30  ;;  %v3559_v51 = vld [vmem:[#allocation6 + $0xc7] ss:$8 sm:$0xf]  ;;  %v3341_v24 = vld [vmem:[#allocation6 + $0xc6] ss:$8 sm:$0xf0] }
 0x2ee   : > { %1848 = vrot.lane.b32.xlu0 %v10067_v59, %s7977_s20  ;;  %7570 = vmatpush1.bf16.msra.mxu0 %v7569_v60  ;;  %v2859_v35 = vmul.f32 %v2812_v3, %v2736_v52  ;;  %v3560_v37 = vld [vmem:[#allocation6 + $0xc7] ss:$8 sm:$0xf0]  ;;  %v3216_v60 = vmul.f32 %v3169_v26, %v10660_v57 }
 0x2ef   : > { %v10631_v6 = vpop.permute.xlu0 %2719  ;;  %v10675_v53 = vor.u32 %v3560_v37, %v3559_v51 }
 0x2f0   : > { %v2737_v20 = vsel %vm791_vm3, %v2718_v7, %v10631_v6  ;;  %v2933_v14 = vpop.permute.xlu1 %2932  ;;  %v7621_v33 = vpack.c.bf16 %v2859_v35, %v2640_v9  ;;  %v3340_v7 = vld [vmem:[#allocation6 + $0xc6] ss:$8 sm:$0xf] }
 0x2f1   : > { %1630 = vrot.lane.b32.xlu1 %v10253_v27, %s7976_s29  ;;  %v2860_v8 = vmul.f32 %v2816_v0, %v2737_v20  ;;  %v2953_v21 = vsel %vm1011_vm2, %v9915_v47, %v2933_v14  ;;  %v3217_v0 = vmul.f32 %v10647_v23, %v3173_v11  ;;  %v10679_v20 = vor.u32 %v3341_v24, %v3340_v7 }
 0x2f2   : > { %1850 = vrot.lane.b32.xlu0 %v10253_v27, %s7977_s20  ;;  %v3076_v19 = vmul.f32 %v3023_v55, %v2953_v21  ;;  %v3607_v37 = vrot.slane %v10675_v53, %v8413_v45 }
 0x2f3   : > { %v2935_v32 = vpop.permute.xlu0 %2934  ;;  %v7619_v47 = vpack.c.bf16 %v2860_v8, %v2641_v10  ;;  %v3599_v8 = vrot.slane %v10675_v53, %v8411_v44  ;;  %v3392_v7 = vrot.slane %v10679_v20, %v8415_v46 }
 0x2f4   : > { %v2954_v39 = vsel %vm1011_vm2, %v2933_v14, %v2935_v32  ;;  %v2937_v22 = vpop.permute.xlu1 %2936  ;;  %v7573_v15 = vpack.c.bf16 %v3214_v50, %v3076_v19  ;;  %v3603_v50 = vrot.slane %v10675_v53, %v8405_v43 }
 0x2f5   : > { %2066 = vrot.lane.b32.xlu1 %v10647_v23, %s7978_s11  ;;  %v3077_v4 = vmul.f32 %v3027_v29, %v2954_v39  ;;  %v2955_v56 = vsel %vm1011_vm2, %v2935_v32, %v2937_v22  ;;  %7620 = vmatprep.subr.bf16.mxu1 %v7619_v47  ;;  %v3384_v29 = vrot.slane %v10679_v20, %v8405_v43  ;;  %v11992_v47 = vld [vmem:[#allocation19_spill] sm:$0xff] }
 0x2f6   : > { %2068 = vrot.lane.b32.xlu0 %v10067_v59, %s7978_s11  ;;  %7622 = vmatpush1.bf16.msra.mxu1 %v7621_v33  ;;  %v3078_v30 = vmul.f32 %v3031_v34, %v2955_v56  ;;  %v3380_v32 = vrot.slane %v10679_v20, %v8411_v44 }
 0x2f7   : > { %v10670_v3 = vpop.permute.xlu0 %2938  ;;  %v7571_v52 = vpack.c.bf16 %v3215_v49, %v3077_v4  ;;  %v7979_v4 = vmov 0  }
 0x2f8   : > { %v2956_v48 = vsel %vm1011_vm2, %v2937_v22, %v10670_v3  ;;  %v3289_v40 = vpop.permute.xlu1 %3288  ;;  %v7625_v10 = vpack.c.bf16 %v3216_v60, %v3078_v30  ;;  %7823 = vset.pattern.permute.xlu0 %v7979_v4  ;;  %7824 = vset.pattern.permute.xlu1 %v7979_v4 }
 0x2f9   : > { %2283 = vrot.lane.b32.xlu1 %v10067_v59, %s7971_s30  ;;  %v3079_v35 = vmul.f32 %v3035_v61, %v2956_v48  ;;  %7572 = vmatprep.subr.bf16.mxu0 %v7571_v52  ;;  %v3310_v49 = vsel %vm1366_vm4, %v11992_v47, %v3289_v40  ;;  %v3997_v52 = vld [vmem:[#allocation6 + $0x141] ss:$8 sm:$0xf]  ;;  %v3778_v48 = vld [vmem:[#allocation6 + $0x140] ss:$8 sm:$0xf] }
 0x2fa   : > { %2285 = vrot.lane.b32.xlu0 %v10253_v27, %s7971_s30  ;;  %7574 = vmatpush1.bf16.msra.mxu0 %v7573_v15  ;;  %v3433_v22 = vmul.f32 %v3380_v32, %v3310_v49  ;;  %v3388_v15 = vrot.slane %v10679_v20, %v8413_v45 }
 0x2fb   : > { %v3291_v55 = vpop.permute.xlu0 %3290  ;;  %v7623_v14 = vpack.c.bf16 %v3217_v0, %v3079_v35  ;;  %v3998_v0 = vld [vmem:[#allocation6 + $0x141] ss:$8 sm:$0xf0] }
 0x2fc   : > { %v3508_v21 = vpop.permute.xlu1 %3507  ;;  %v3311_v26 = vsel %vm1366_vm4, %v3289_v40, %v3291_v55 }
 0x2fd   : > { %2070 = vrot.lane.b32.xlu1 %v10253_v27, %s7978_s11  ;;  %v3529_v9 = vsel %vm1586_vm5, %v9968_v28, %v3508_v21  ;;  %7624 = vmatprep.subr.bf16.mxu1 %v7623_v14  ;;  %v3434_v39 = vmul.f32 %v3384_v29, %v3311_v26  ;;  %v3779_v14 = vld [vmem:[#allocation6 + $0x140] ss:$8 sm:$0xf0] }
 0x2fe   : > { %2287 = vrot.lane.b32.xlu0 %v10499_v63, %s7971_s30  ;;  %7626 = vmatpush1.bf16.msra.mxu1 %v7625_v10  ;;  %v3652_v11 = vmul.f32 %v3599_v8, %v3529_v9  ;;  %v10726_v10 = vld [vmem:[%s8163_s23 + $0x60] sm:$0xff]  ;;  %v10730_v9 = vor.u32 %v3998_v0, %v3997_v52  ;;  %v10734_v47 = vor.u32 %v3779_v14, %v3778_v48 }
 0x2ff   : > { %v3510_v28 = vpop.permute.xlu0 %3509 }
 0x300   : > { %v3530_v33 = vsel %vm1586_vm5, %v3508_v21, %v3510_v28  ;;  %v3293_v19 = vpop.permute.xlu1 %3292  ;;  %v7577_v51 = vpack.c.bf16 %v3652_v11, %v3433_v22  ;;  %v4037_v11 = vrot.slane %v10730_v9, %v8411_v44  ;;  %v4041_v22 = vrot.slane %v10730_v9, %v8405_v43 }
 0x301   : > { %2502 = vrot.lane.b32.xlu1 %v10067_v59, %s7972_s9  ;;  %v3653_v34 = vmul.f32 %v3603_v50, %v3530_v33  ;;  %v3312_v40 = vsel %vm1366_vm4, %v3291_v55, %v3293_v19  ;;  %v3818_v4 = vrot.slane %v10734_v47, %v8411_v44  ;;  %v4045_v14 = vrot.slane %v10730_v9, %v8413_v45 }
 0x302   : > { %2504 = vrot.lane.b32.xlu0 %v10253_v27, %s7972_s9  ;;  %v3435_v26 = vmul.f32 %v3388_v15, %v3312_v40 }
 0x303   : > { %v10705_v56 = vpop.permute.xlu0 %3294  ;;  %v7575_v61 = vpack.c.bf16 %v3653_v34, %v3434_v39  ;;  %v11993_v39 = vld [vmem:[#allocation59_spill] sm:$0xff] }
 0x304   : > { %v3512_v60 = vpop.permute.xlu1 %3511  ;;  %v3313_v30 = vsel %vm1366_vm4, %v3293_v19, %v10705_v56  ;;  %v3822_v19 = vrot.slane %v10734_v47, %v8405_v43 }
 0x305   : > { %2721 = vrot.lane.b32.xlu1 %v10067_v59, %s7973_s16  ;;  %v3531_v24 = vsel %vm1586_vm5, %v3510_v28, %v3512_v60  ;;  %7576 = vmatprep.subr.bf16.mxu0 %v7575_v61  ;;  %v3611_v59 = vrot.slane %v10675_v53, %v8415_v46  ;;  %v3436_v50 = vmul.f32 %v3392_v7, %v3313_v30 }
 0x306   : > { %2723 = vrot.lane.b32.xlu0 %v10253_v27, %s7973_s16  ;;  %7578 = vmatpush1.bf16.msra.mxu0 %v7577_v51  ;;  %v3654_v8 = vmul.f32 %v3607_v37, %v3531_v24  ;;  %v11994_v51 = vld [vmem:[#allocation60_spill] sm:$0xff] }
 0x307   : > { %v10723_v35 = vpop.permute.xlu0 %3513 }
 0x308   : > { %v3532_v21 = vsel %vm1586_vm5, %v3512_v60, %v10723_v35  ;;  %v3727_v29 = vpop.permute.xlu1 %3726  ;;  %v7629_v28 = vpack.c.bf16 %v3654_v8, %v3435_v26  ;;  %v4436_v26 = vld [vmem:[#allocation6 + $0x143] ss:$8 sm:$0xf0] }
 0x309   : > { %2506 = vrot.lane.b32.xlu1 %v10499_v63, %s7972_s9  ;;  %v3655_v32 = vmul.f32 %v3611_v59, %v3532_v21  ;;  %v3748_v37 = vsel %vm1806_vm6, %v11994_v51, %v3727_v29  ;;  %v3830_v21 = vrot.slane %v10734_v47, %v8415_v46 }
 0x30a   : > { %2725 = vrot.lane.b32.xlu0 %v10499_v63, %s7973_s16  ;;  %v3871_v15 = vmul.f32 %v3818_v4, %v3748_v37 }
 0x30b   : > { %v3729_v55 = vpop.permute.xlu0 %3728  ;;  %v7627_v49 = vpack.c.bf16 %v3655_v32, %v3436_v50  ;;  %v4049_v50 = vrot.slane %v10730_v9, %v8415_v46  ;;  %v4435_v32 = vld [vmem:[#allocation6 + $0x143] ss:$8 sm:$0xf] }
 0x30c   : > { %v3946_v33 = vpop.permute.xlu1 %3945  ;;  %v3749_v61 = vsel %vm1806_vm6, %v3727_v29, %v3729_v55  ;;  %v10785_v51 = vor.u32 %v4436_v26, %v4435_v32 }
 0x30d   : > { %2940 = vrot.lane.b32.xlu1 %v10726_v10, %s7974_s14  ;;  %v3967_v34 = vsel %vm2026_vm7, %v11993_v39, %v3946_v33  ;;  %7628 = vmatprep.subr.bf16.mxu1 %v7627_v49  ;;  %v3872_v52 = vmul.f32 %v3822_v19, %v3749_v61  ;;  %v3826_v49 = vrot.slane %v10734_v47, %v8413_v45  ;;  %v4216_v39 = vld [vmem:[#allocation6 + $0x142] ss:$8 sm:$0xf] }
 0x30e   : > { %2942 = vrot.lane.b32.xlu0 %v10253_v27, %s7974_s14  ;;  %7630 = vmatpush1.bf16.msra.mxu1 %v7629_v28  ;;  %v4090_v7 = vmul.f32 %v4037_v11, %v3967_v34  ;;  %v10778_v11 = vld [vmem:[%s8163_s23 + $0x78] sm:$0xff] }
 0x30f   : > { %v3948_v60 = vpop.permute.xlu0 %3947  ;;  %v4217_v34 = vld [vmem:[#allocation6 + $0x142] ss:$8 sm:$0xf0] }
 0x310   : > { %v3968_v24 = vsel %vm2026_vm7, %v3946_v33, %v3948_v60  ;;  %v3731_v59 = vpop.permute.xlu1 %3730  ;;  %v7581_v40 = vpack.c.bf16 %v4090_v7, %v3871_v15 }
 0x311   : > { %2944 = vrot.lane.b32.xlu1 %v10499_v63, %s7974_s14  ;;  %v4091_v0 = vmul.f32 %v4041_v22, %v3968_v24  ;;  %v3750_v33 = vsel %vm1806_vm6, %v3729_v55, %v3731_v59  ;;  %v10789_v24 = vor.u32 %v4217_v34, %v4216_v39 }
 0x312   : > { %3296 = vrot.lane.b32.xlu0 %v10253_v27, %s7975_s15  ;;  %v3873_v7 = vmul.f32 %v3826_v49, %v3750_v33 }
 0x313   : > { %v10760_v30 = vpop.permute.xlu0 %3732  ;;  %v7579_v48 = vpack.c.bf16 %v4091_v0, %v3872_v52  ;;  %v4475_v0 = vrot.slane %v10785_v51, %v8411_v44 }
 0x314   : > { %v3950_v8 = vpop.permute.xlu1 %3949  ;;  %v3751_v28 = vsel %vm1806_vm6, %v3731_v59, %v10760_v30 }
 0x315   : > { %3298 = vrot.lane.b32.xlu1 %v10499_v63, %s7975_s15  ;;  %v3969_v29 = vsel %vm2026_vm7, %v3948_v60, %v3950_v8  ;;  %7580 = vmatprep.subr.bf16.mxu0 %v7579_v48  ;;  %v3874_v37 = vmul.f32 %v3830_v21, %v3751_v28  ;;  %v4260_v48 = vrot.slane %v10789_v24, %v8405_v43 }
 0x316   : > { %3515 = vrot.lane.b32.xlu0 %v10253_v27, %s7976_s29  ;;  %7582 = vmatpush1.bf16.msra.mxu0 %v7581_v40  ;;  %v4092_v22 = vmul.f32 %v4045_v14, %v3969_v29  ;;  %v11995_v40 = vld [vmem:[#allocation55_spill] sm:$0xff]  ;;  %v4256_v21 = vrot.slane %v10789_v24, %v8411_v44 }
 0x317   : > { %v10781_v19 = vpop.permute.xlu0 %3951 }
 0x318   : > { %v3970_v4 = vsel %vm2026_vm7, %v3950_v8, %v10781_v19  ;;  %v4164_v61 = vpop.permute.xlu1 %4163  ;;  %v7633_v52 = vpack.c.bf16 %v4092_v22, %v3873_v7  ;;  %v4479_v8 = vrot.slane %v10785_v51, %v8405_v43 }
 0x319   : > { %3517 = vrot.lane.b32.xlu1 %v10499_v63, %s7976_s29  ;;  %v4093_v60 = vmul.f32 %v4049_v50, %v3970_v4  ;;  %v11996_v50 = vld [vmem:[#allocation56_spill] sm:$0xff] }
 0x31a   : > { %3300 = vrot.lane.b32.xlu0 %v10778_v11, %s7975_s15  ;;  %v4183_v32 = vsel %vm352_vm1, %v11996_v50, %v4164_v61 }
 0x31b   : > { %v4166_v55 = vpop.permute.xlu0 %4165  ;;  %v7631_v59 = vpack.c.bf16 %v4093_v60, %v3874_v37  ;;  %v4309_v22 = vmul.f32 %v4256_v21, %v4183_v32  ;;  %v4654_v21 = vld [vmem:[#allocation6 + $0x144] ss:$8 sm:$0xf] }
 0x31c   : > { %v4383_v15 = vpop.permute.xlu1 %4382  ;;  %v4184_v29 = vsel %vm352_vm1, %v4164_v61, %v4166_v55  ;;  %v4483_v61 = vrot.slane %v10785_v51, %v8413_v45 }
 0x31d   : > { %3519 = vrot.lane.b32.xlu1 %v10778_v11, %s7976_s29  ;;  %v4402_v14 = vsel %vm571_vm0, %v11995_v40, %v4383_v15  ;;  %7632 = vmatprep.subr.bf16.mxu1 %v7631_v59  ;;  %v4310_v39 = vmul.f32 %v4260_v48, %v4184_v29  ;;  %v4268_v59 = vrot.slane %v10789_v24, %v8415_v46  ;;  %v4655_v29 = vld [vmem:[#allocation6 + $0x144] ss:$8 sm:$0xf0] }
 0x31e   : > { %3734 = vrot.lane.b32.xlu0 %v10253_v27, %s7977_s20  ;;  %7634 = vmatpush1.bf16.msra.mxu1 %v7633_v52  ;;  %v4528_v49 = vmul.f32 %v4475_v0, %v4402_v14  ;;  %v4873_v0 = vld [vmem:[#allocation6 + $0x145] ss:$8 sm:$0xf]  ;;  %v4264_v48 = vrot.slane %v10789_v24, %v8413_v45 }
 0x31f   : > { %v4385_v26 = vpop.permute.xlu0 %4384 }
 0x320   : > { %v4403_v28 = vsel %vm571_vm0, %v4383_v15, %v4385_v26  ;;  %v4168_v33 = vpop.permute.xlu1 %4167  ;;  %v7585_v60 = vpack.c.bf16 %v4528_v49, %v4309_v22  ;;  %v4874_v15 = vld [vmem:[#allocation6 + $0x145] ss:$8 sm:$0xf0]  ;;  %v10841_v22 = vor.u32 %v4655_v29, %v4654_v21  ;;  %v5011_v29 = vld [vmem:[#allocation6 + $0x146] ss:$8 sm:$0xf] }
 0x321   : > { %3736 = vrot.lane.b32.xlu1 %v10499_v63, %s7977_s20  ;;  %v4529_v34 = vmul.f32 %v4479_v8, %v4403_v28  ;;  %v4185_v14 = vsel %vm352_vm1, %v4166_v55, %v4168_v33  ;;  %v10837_v49 = vor.u32 %v4874_v15, %v4873_v0 }
 0x322   : > { %3953 = vrot.lane.b32.xlu0 %v10253_v27, %s7978_s11  ;;  %v4487_v27 = vrot.slane %v10785_v51, %v8415_v46  ;;  %v4694_v0 = vrot.slane %v10841_v22, %v8411_v44 }
 0x323   : > { %v10815_v4 = vpop.permute.xlu0 %4169  ;;  %v7583_v37 = vpack.c.bf16 %v4529_v34, %v4310_v39  ;;  %v4311_v34 = vmul.f32 %v4264_v48, %v4185_v14  ;;  %v10861_v48 = vld [vmem:[%s8163_s23] sm:$0xff] }
 0x324   : > { %11997 = vst [vmem:[#allocation83_spill] sm:$0xff] %v10815_v4  ;;  %v4387_v7 = vpop.permute.xlu1 %4386  ;;  %v4186_v40 = vsel %vm352_vm1, %v4168_v33, %v10815_v4 }
 0x325   : > { %3955 = vrot.lane.b32.xlu1 %v10499_v63, %s7978_s11  ;;  %v4404_v52 = vsel %vm571_vm0, %v4385_v26, %v4387_v7  ;;  %7584 = vmatprep.subr.bf16.mxu0 %v7583_v37  ;;  %v4312_v28 = vmul.f32 %v4268_v59, %v4186_v40  ;;  %v11999_v59 = vld [vmem:[#allocation76_spill] sm:$0xff]  ;;  %v12000_v40 = vld [vmem:[#allocation77_spill] sm:$0xff] }
 0x326   : > { %3738 = vrot.lane.b32.xlu0 %v10778_v11, %s7977_s20  ;;  %7586 = vmatpush1.bf16.msra.mxu0 %v7585_v60  ;;  %v4530_v50 = vmul.f32 %v4483_v61, %v4404_v52  ;;  %v4913_v60 = vrot.slane %v10837_v49, %v8411_v44 }
 0x327   : > { %v10833_v8 = vpop.permute.xlu0 %4388 }
 0x328   : > { %11998 = vst [vmem:[#allocation82_spill] sm:$0xff] %v10833_v8  ;;  %v4405_v32 = vsel %vm571_vm0, %v4387_v7, %v10833_v8  ;;  %v4602_v26 = vpop.permute.xlu1 %4601  ;;  %v7637_v37 = vpack.c.bf16 %v4530_v50, %v4311_v34  ;;  %v4698_v7 = vrot.slane %v10841_v22, %v8405_v43  ;;  %v5012_v50 = vld [vmem:[#allocation6 + $0x146] ss:$8 sm:$0xf0] }
 0x329   : > { %3957 = vrot.lane.b32.xlu1 %v10778_v11, %s7978_s11  ;;  %v4531_v39 = vmul.f32 %v4487_v27, %v4405_v32  ;;  %v4917_v27 = vrot.slane %v10837_v49, %v8405_v43  ;;  %v4621_v14 = vsel %vm791_vm3, %v12000_v40, %v4602_v26  ;;  %v5231_v8 = vld [vmem:[#allocation6 + $0x147] ss:$8 sm:$0xf0]  ;;  %v10870_v4 = vor.u32 %v5012_v50, %v5011_v29 }
 0x32a   : > { %4171 = vrot.lane.b32.xlu0 %v10499_v63, %s7971_s30 }
 0x32b   : > { %v4604_v55 = vpop.permute.xlu0 %4603  ;;  %v7635_v33 = vpack.c.bf16 %v4531_v39, %v4312_v28  ;;  %12001 = vst [vmem:[#allocation89_spill] sm:$0xff] %v10870_v4 }
 0x32c   : > { %v4821_v61 = vpop.permute.xlu1 %4820  ;;  %v4622_v15 = vsel %vm791_vm3, %v4602_v26, %v4604_v55 }
 0x32d   : > { %4173 = vrot.lane.b32.xlu1 %v10778_v11, %s7971_s30  ;;  %v4840_v52 = vsel %vm1011_vm2, %v11999_v59, %v4821_v61  ;;  %7636 = vmatprep.subr.bf16.mxu1 %v7635_v33  ;;  %v4748_v34 = vmul.f32 %v4698_v7, %v4622_v15  ;;  %v5230_v59 = vld [vmem:[#allocation6 + $0x147] ss:$8 sm:$0xf]  ;;  %v4925_v15 = vrot.slane %v10837_v49, %v8415_v46 }
 0x32e   : > { %4390 = vrot.lane.b32.xlu0 %v10499_v63, %s7972_s9  ;;  %7638 = vmatpush1.bf16.msra.mxu1 %v7637_v37  ;;  %v4966_v32 = vmul.f32 %v4913_v60, %v4840_v52  ;;  %v4747_v37 = vmul.f32 %v4694_v0, %v4621_v14  ;;  %v10876_v52 = vor.u32 %v5231_v8, %v5230_v59 }
 0x32f   : > { %v4823_v21 = vpop.permute.xlu0 %4822  ;;  %v4702_v14 = vrot.slane %v10841_v22, %v8413_v45  ;;  %v5051_v8 = vrot.slane %v10870_v4, %v8411_v44 }
 0x330   : > { %v4841_v28 = vsel %vm1011_vm2, %v4821_v61, %v4823_v21  ;;  %v4606_v39 = vpop.permute.xlu1 %4605  ;;  %v7589_v60 = vpack.c.bf16 %v4966_v32, %v4747_v37  ;;  %v4921_v61 = vrot.slane %v10837_v49, %v8413_v45  ;;  %12003 = vst [vmem:[#allocation87_spill] sm:$0xff] %v10876_v52  ;;  %v5055_v32 = vrot.slane %v10870_v4, %v8405_v43 }
 0x331   : > { %4392 = vrot.lane.b32.xlu1 %v10778_v11, %s7972_s9  ;;  %v4967_v33 = vmul.f32 %v4917_v27, %v4841_v28  ;;  %v4706_v27 = vrot.slane %v10841_v22, %v8415_v46 }
 0x332   : > { %4205 = vrot.lane.b32.xlu0 %v10861_v48, %s7971_s30  ;;  %s324_s30 = scalar_select %p323_p4, %s8042_s28, 1 }
 0x333   : > { %v10872_v26 = vpop.permute.xlu0 %4607  ;;  %v7587_v40 = vpack.c.bf16 %v4967_v33, %v4748_v34  ;;  %v5270_v33 = vrot.slane %v10876_v52, %v8411_v44 }
 0x334   : > { %12002 = vst [vmem:[#allocation86_spill] sm:$0xff] %v10872_v26  ;;  %v4825_v7 = vpop.permute.xlu1 %4824  ;;  %v4624_v29 = vsel %vm791_vm3, %v4606_v39, %v10872_v26 }
 0x335   : > { %4424 = vrot.lane.b32.xlu1 %v10861_v48, %s7972_s9  ;;  %v4842_v0 = vsel %vm1011_vm2, %v4823_v21, %v4825_v7  ;;  %7588 = vmatprep.subr.bf16.mxu0 %v7587_v40  ;;  %v4623_v21 = vsel %vm791_vm3, %v4604_v55, %v4606_v39  ;;  %v4750_v37 = vmul.f32 %v4706_v27, %v4624_v29  ;;  %s7323_s9 = sshll.u32 %s324_s30, 3 }
 0x336   : > { %4609 = vrot.lane.b32.xlu0 %v10499_v63, %s7973_s16  ;;  %7590 = vmatpush1.bf16.msra.mxu0 %v7589_v60  ;;  %v4968_v28 = vmul.f32 %v4921_v61, %v4842_v0  ;;  %v12004_v60 = vld [vmem:[#allocation81_spill] sm:$0xff]  ;;  %v5274_v55 = vrot.slane %v10876_v52, %v8405_v43  ;;  %v4749_v39 = vmul.f32 %v4702_v14, %v4623_v21 }
 0x337   : > { %v5104_v61 = vmul.f32 %v5051_v8, %v10660_v57  ;;  %v5059_v27 = vrot.slane %v10870_v4, %v8413_v45  ;;  %v5063_v29 = vrot.slane %v10870_v4, %v8415_v46  ;;  %v5278_v57 = vrot.slane %v10876_v52, %v8413_v45 }
 0x338   : > { %v10894_v50 = vpop.permute.xlu0 %4826 }
 0x339   : > { %4611 = vrot.lane.b32.xlu1 %v10778_v11, %s7973_s16  ;;  %v4843_v34 = vsel %vm1011_vm2, %v4825_v7, %v10894_v50  ;;  %v5177_v59 = vpop.permute.xlu1 %5176 }
 0x33a   : > { %v4969_v40 = vmul.f32 %v4925_v15, %v4843_v34  ;;  %v5194_v26 = vsel %vm1366_vm4, %v12004_v60, %v5177_v59  ;;  %4828 = vrot.lane.b32.xlu0 %v10499_v63, %s7974_s14  ;;  %v5105_v15 = vmul.f32 %v10647_v23, %v5055_v32  ;;  %v7641_v63 = vpack.c.bf16 %v4968_v28, %v4749_v39  ;;  %v5668_v32 = vld [vmem:[#allocation6 + $0x1c1] ss:$8 sm:$0xf] }
 0x33b   : > { %v5323_v34 = vmul.f32 %v5270_v33, %v5194_v26  ;;  %v5282_v23 = vrot.slane %v10876_v52, %v8415_v46  ;;  %v5669_v28 = vld [vmem:[#allocation6 + $0x1c1] ss:$8 sm:$0xf0]  ;;  %v5106_v26 = vmul.f32 %v5059_v27, %v10726_v10 }
 0x33c   : > { %v5179_v7 = vpop.permute.xlu0 %5178  ;;  %v7639_v0 = vpack.c.bf16 %v4969_v40, %v4750_v37  ;;  %v5450_v37 = vld [vmem:[#allocation6 + $0x1c0] ss:$8 sm:$0xf0]  ;;  %v10935_v4 = vor.u32 %v5669_v28, %v5668_v32 }
 0x33d   : > { %4830 = vrot.lane.b32.xlu1 %v10778_v11, %s7974_s14  ;;  %v5195_v60 = vsel %vm1366_vm4, %v5177_v59, %v5179_v7  ;;  %v5449_v59 = vld [vmem:[#allocation6 + $0x1c0] ss:$8 sm:$0xf] }
 0x33e   : > { %v5324_v8 = vmul.f32 %v5274_v55, %v5195_v60  ;;  %4643 = vrot.lane.b32.xlu0 %v10861_v48, %s7973_s16  ;;  %7640 = vmatprep.subr.bf16.mxu1 %v7639_v0  ;;  %v10930_v55 = vld [vmem:[%s8163_s23 + $0x68] sm:$0xff]  ;;  %v10939_v27 = vor.u32 %v5450_v37, %v5449_v59 }
 0x33f   : > { %v5181_v14 = vpop.permute.xlu1 %5180  ;;  %7642 = vmatpush1.bf16.msra.mxu1 %v7641_v63  ;;  %v5107_v39 = vmul.f32 %v10930_v55, %v5063_v29 }
 0x340   : > { %v5196_v21 = vsel %vm1366_vm4, %v5179_v7, %v5181_v14  ;;  %v10927_v33 = vpop.permute.xlu0 %5182  ;;  %v7591_v40 = vpack.c.bf16 %v5324_v8, %v5105_v15  ;;  %v7593_v7 = vpack.c.bf16 %v5323_v34, %v5104_v61  ;;  %v10944_v15 = vld [vmem:[%s8163_s23 + $0x8] sm:$0xff]  ;;  %v5493_v8 = vrot.slane %v10939_v27, %v8405_v43 }
 0x341   : > { %4862 = vrot.lane.b32.xlu1 %v10861_v48, %s7974_s14  ;;  %12005 = vst [vmem:[#allocation88_spill] sm:$0xff] %v10927_v33  ;;  %v5325_v0 = vmul.f32 %v5278_v57, %v5196_v21  ;;  %v5197_v60 = vsel %vm1366_vm4, %v5181_v14, %v10927_v33  ;;  %v5708_v57 = vrot.slane %v10935_v4, %v8411_v44  ;;  %v5888_v33 = vld [vmem:[#allocation6 + $0x1c2] ss:$8 sm:$0xf0]  ;;  %s7338_s14 = sshll.u32 %s8042_s28, 11  ;;  %s7206_s28 = scalar_lea.sflag [#allocation5], %s8157_s10 }
 0x342   : > { %v5326_v63 = vmul.f32 %v5282_v23, %v5197_v60  ;;  %5184 = vrot.lane.b32.xlu0 %v10778_v11, %s7975_s15  ;;  %7592 = vmatprep.subr.bf16.mxu0 %v7591_v40  ;;  %v5712_v23 = vrot.slane %v10935_v4, %v8405_v43  ;;  %v5489_v32 = vrot.slane %v10939_v27, %v8411_v44 }
 0x343   : > { %v5396_v52 = vpop.permute.xlu1 %5395  ;;  %7594 = vmatpush1.bf16.msra.mxu0 %v7593_v7  ;;  %v7645_v34 = vpack.c.bf16 %v5325_v0, %v5106_v26  ;;  %v12006_v26 = vld [vmem:[#allocation80_spill] sm:$0xff] }
 0x344   : > { %v5398_v61 = vpop.permute.xlu0 %5397  ;;  %v7643_v29 = vpack.c.bf16 %v5326_v63, %v5107_v39  ;;  %v5887_v63 = vld [vmem:[#allocation6 + $0x1c2] ss:$8 sm:$0xf] }
 0x345   : > { %5215 = vrot.lane.b32.xlu1 %v10861_v48, %s7975_s15  ;;  %v5414_v28 = vsel %vm1586_vm5, %v5396_v52, %v5398_v61 }
 0x346   : > { %5217 = vrot.lane.b32.xlu0 %v10944_v15, %s7975_s15  ;;  %7644 = vmatprep.subr.bf16.mxu1 %v7643_v29  ;;  %v5543_v7 = vmul.f32 %v5493_v8, %v5414_v28  ;;  %v5501_v8 = vrot.slane %v10939_v27, %v8415_v46  ;;  %s326_s15 = scalar_lea.vmem %s11608_s6, %s7323_s9 }
 0x347   : > { %v5615_v14 = vpop.permute.xlu1 %5614  ;;  %7646 = vmatpush1.bf16.msra.mxu1 %v7645_v34 }
 0x348   : > { %v5632_v21 = vsel %vm1806_vm6, %v10342_v17, %v5615_v14  ;;  %v5413_v17 = vsel %vm1586_vm5, %v12006_v26, %v5396_v52  ;;  %v5617_v59 = vpop.permute.xlu0 %5616  ;;  %v10986_v26 = vor.u32 %v5888_v33, %v5887_v63 }
 0x349   : > { %5403 = vrot.lane.b32.xlu1 %v10778_v11, %s7976_s29  ;;  %v5761_v37 = vmul.f32 %v5708_v57, %v5632_v21  ;;  %v5633_v40 = vsel %vm1806_vm6, %v5615_v14, %v5617_v59  ;;  %v5542_v60 = vmul.f32 %v5489_v32, %v5413_v17  ;;  %v5716_v57 = vrot.slane %v10935_v4, %v8413_v45 }
 0x34a   : > { %v5762_v0 = vmul.f32 %v5712_v23, %v5633_v40  ;;  %5434 = vrot.lane.b32.xlu0 %v10861_v48, %s7976_s29  ;;  %v5720_v23 = vrot.slane %v10935_v4, %v8415_v46  ;;  %v5497_v32 = vrot.slane %v10939_v27, %v8413_v45  ;;  %12007 = vst [vmem:[#allocation91_spill] sm:$0xff] %v10986_v26 }
 0x34b   : > { %v5400_v39 = vpop.permute.xlu1 %5399  ;;  %v7597_v52 = vpack.c.bf16 %v5761_v37, %v5542_v60  ;;  %v10994_v37 = vpop.f32.mrb[0].mxu0  ;;  %v5931_v33 = vrot.slane %v10986_v26, %v8405_v43  ;;  %v5939_v43 = vrot.slane %v10986_v26, %v8415_v46  ;;  %v6438_v46 = vld [vmem:[%s11605_s3] sm:$0xff] }
 0x34c   : > { %v10968_v29 = vpop.permute.xlu0 %5401  ;;  %v7595_v34 = vpack.c.bf16 %v5762_v0, %v5543_v7  ;;  %v5415_v17 = vsel %vm1586_vm5, %v5398_v61, %v5400_v39  ;;  %12008 = vst [vmem:[#allocation93_spill] sm:$0xff] %v10994_v37  ;;  %v12037_v37 = vld [vmem:[#allocation54_spill] sm:$0xff] }
 0x34d   : > { %5622 = vrot.lane.b32.xlu1 %v10778_v11, %s7977_s20  ;;  %v5416_v28 = vsel %vm1586_vm5, %v5400_v39, %v10968_v29  ;;  %v5544_v61 = vmul.f32 %v5497_v32, %v5415_v17  ;;  %v5927_v39 = vrot.slane %v10986_v26, %v8411_v44  ;;  %v5935_v32 = vrot.slane %v10986_v26, %v8413_v45 }
 0x34e   : > { %5653 = vrot.lane.b32.xlu0 %v10861_v48, %s7977_s20  ;;  %7596 = vmatprep.subr.bf16.mxu0 %v7595_v34  ;;  %v5545_v60 = vmul.f32 %v5501_v8, %v5416_v28 }
 0x34f   : > { %v5619_v14 = vpop.permute.xlu1 %5618  ;;  %7598 = vmatpush1.bf16.msra.mxu0 %v7597_v52 }
 0x350   : > { %v5634_v21 = vsel %vm1806_vm6, %v5617_v59, %v5619_v14  ;;  %v10989_v59 = vpop.permute.xlu0 %5620 }
 0x351   : > { %5436 = vrot.lane.b32.xlu1 %v10944_v15, %s7976_s29  ;;  %v5763_v40 = vmul.f32 %v5716_v57, %v5634_v21  ;;  %v5635_v7 = vsel %vm1806_vm6, %v5619_v14, %v10989_v59 }
 0x352   : > { %v5764_v34 = vmul.f32 %v5720_v23, %v5635_v7  ;;  %5655 = vrot.lane.b32.xlu0 %v10944_v15, %s7977_s20  ;;  %v12011_v7 = vld [vmem:[#allocation32_spill] sm:$0xff] }
 0x353   : > { %v5834_v0 = vpop.permute.xlu1 %5833  ;;  %v7649_v14 = vpack.c.bf16 %v5763_v40, %v5544_v61  ;;  %v11031_v40 = vld [vmem:[%s11603_s1] sm:$0xff] }
 0x354   : > { %v5851_v63 = vsel %vm2026_vm7, %v10415_v42, %v5834_v0  ;;  %v5836_v52 = vpop.permute.xlu0 %5835  ;;  %v7647_v57 = vpack.c.bf16 %v5764_v34, %v5545_v60  ;;  %12010 = vst [vmem:[#allocation97_spill] sm:$0xff] %v11031_v40  ;;  %v7016_v34 = vld [vmem:[%s326_s15] sm:$0xff]  ;;  %s11510_s15 = scalar_lea.vmem [#allocation8], %s7320_s22 }
 0x355   : > { %5841 = vrot.lane.b32.xlu1 %v10778_v11, %s7978_s11  ;;  %v5852_v8 = vsel %vm2026_vm7, %v5834_v0, %v5836_v52  ;;  %v5980_v44 = vmul.f32 %v5927_v39, %v5851_v63  ;;  %v12012_v0 = vld [vmem:[#allocation29_spill] sm:$0xff]  ;;  %v12015_v39 = vld [vmem:[#allocation28_spill] sm:$0xff]  ;;  %v12016_v63 = vld [vmem:[#allocation27_spill] sm:$0xff]  ;;  %s7220_s29 = sshll.u32 %s11510_s15, 4  ;;  %s11548_s29 = int_to_ptr.vmem [resolvable:$true] %s7220_s29 }
 0x356   : > { %v5981_v23 = vmul.f32 %v5931_v33, %v5852_v8  ;;  %5872 = vrot.lane.b32.xlu0 %v10861_v48, %s7978_s11  ;;  %7648 = vmatprep.subr.bf16.mxu1 %v7647_v57  ;;  %v12013_v60 = vpack.c.bf16 %v12011_v7, %v12012_v0  ;;  %v11037_v33 = vpop.f32.mrb[1].mxu0  ;;  %v11042_v57 = vpop.f32.mrb[0].mxu1  ;;  %v12019_v8 = vld [vmem:[#allocation52_spill] sm:$0xff]  ;;  %v12026_v0 = vld [vmem:[#allocation31_spill] sm:$0xff]  ;;  %s7895_s12 = scalar_lea.vmem %s11548_s29, 2048  ;;  %p7902_p13 = scmp.lt.s32.totalorder %s11548_s29, %s7900_s21 }
 0x357   : > { %v5838_v21 = vpop.permute.xlu1 %5837  ;;  %7650 = vmatpush1.bf16.msra.mxu1 %v7649_v14  ;;  %12014 = vst [vmem:[#allocation96_spill] sm:$0xff] %v11037_v33  ;;  %12018 = vst [vmem:[#allocation99_spill] sm:$0xff] %v11042_v57  ;;  %v12038_v33 = vld [vmem:[#allocation51_spill] sm:$0xff]  ;;  %p7896_p6 = scmp.ne.s32.totalorder %s11548_s29, %s7895_s12 }
 0x358   : > { %v5853_v42 = vsel %vm2026_vm7, %v5836_v52, %v5838_v21  ;;  %v11021_v28 = vpop.permute.xlu0 %5839  ;;  %6784 = vmatprep.subr.mxu0 %v5981_v23  ;;  %v12017_v52 = vpack.c.bf16 %v12015_v39, %v12016_v63 }
 0x359   : > { %5874 = vrot.lane.b32.xlu1 %v10944_v15, %s7978_s11  ;;  %12009 = vst [vmem:[#allocation92_spill] sm:$0xff] %v11021_v28  ;;  %v5854_v45 = vsel %vm2026_vm7, %v5838_v21, %v11021_v28  ;;  %6785 = vmatpush1.msra.mxu0 %v5980_v44  ;;  %v5982_v61 = vmul.f32 %v5935_v32, %v5853_v42  ;;  %v12020_v21 = vld [vmem:[#allocation49_spill] sm:$0xff]  ;;  %v12024_v32 = vld [vmem:[#allocation18_spill] sm:$0xff]  ;;  %s11544_s11 = scalar_lea.hbm %s11609_s7, %s7338_s14  ;;  %p7897_p8 = pnand %p7896_p6, %p8112_p12 }
 0x35a   : > { %v5983_v17 = vmul.f32 %v5939_v43, %v5854_v45  ;;  %6797 = vmatmul.mubr.f32.vlgmr.msra.gmra.mrb[4].mxu0 %v11031_v40  ;;  %7652 = vmatprep.subr.bf16.mxu0 %v12013_v60  ;;  %v12021_v23 = vpack.c.bf16 %v12019_v8, %v12020_v21  ;;  %v11047_v43 = vpop.f32.mrb[1].mxu1  ;;  %v12023_v44 = vld [vmem:[#allocation17_spill] sm:$0xff]  ;;  %v1727_v42 = vrot.slane %v10448_v62, %v12024_v32 }
 0x35b   : > { %v1627_v48 = vpop.permute.xlu1 %1626  ;;  %7654 = vmatpush1.bf16.msra.mxu0 %v12017_v52  ;;  %6441 = vperm.xlu0 %7823, %v6438_v46   ;;  %12022 = vst [vmem:[#allocation98_spill] sm:$0xff] %v11047_v43  ;;  %v1943_v45 = vrot.slane %v10432_v54, %v12023_v44  ;;  %v1947_v39 = vrot.slane %v10432_v54, %v12024_v32  ;;  %v12029_v52 = vld [vmem:[#allocation47_spill] sm:$0xff]  ;;  %v12031_v21 = vld [vmem:[#allocation33_spill] sm:$0xff]  ;;  %p7898_p10 = pneg %p7897_p8 }
 0x35c   : > { %v1629_v14 = vpop.permute.xlu0 %1628  ;;  %6855 = vmatprep.subr.mxu1 %v5983_v17  ;;  %7656 = vmatprep.subr.bf16.mxu0 %v12021_v23  ;;  %v12025_v17 = vld [vmem:[#allocation34_spill] sm:$0xff]  ;;  %v1723_v63 = vrot.slane %v10448_v62, %v12023_v44  ;;  %v12035_v43 = vld [vmem:[#allocation69_spill] sm:$0xff] }
 0x35d   : > { %6856 = vmatpush1.msra.mxu1 %v5982_v61  ;;  %7019 = vperm.xlu1 %7824, %v7016_v34   ;;  %v12027_v60 = vpack.c.bf16 %v12025_v17, %v12026_v0  ;;  %v1643_v34 = vsel %vm1586_vm5, %v1627_v48, %v1629_v14  ;;  %v12028_v61 = vld [vmem:[#allocation48_spill] sm:$0xff]  ;;  %v1642_v17 = vsel %vm1586_vm5, %v10502_v16, %v1627_v48  ;;  %v7836_v16 = vld [vmem:[%s11603_s1 + $0x8] sm:$0xff] }
 0x35e   : > { %6868 = vmatmul.mubr.f32.vlgmr.msra.gmra.mrb[4].mxu1 %v11031_v40  ;;  %v12030_v8 = vpack.c.bf16 %v12028_v61, %v12029_v52  ;;  %v12039_v40 = vpack.c.bf16 %v12037_v37, %v12038_v33  ;;  %v1731_v61 = vrot.slane %v10448_v62, %v11895_v58  ;;  %7330 = vmatprep.mubr.msk.f32.mxu0 %vm6444_vm8, %v7836_v16 }
 0x35f   : > { %v1847_v7 = vpop.permute.xlu1 %1846  ;;  %7704 = vmatprep.subr.bf16.mxu1 %v12027_v60  ;;  %v12034_v60 = vld [vmem:[#allocation71_spill] sm:$0xff]  ;;  %7331 = vmatprep.mubr.msk.f32.mxu1 %vm6444_vm8, %v7836_v16  ;;  %v1765_v37 = vmul.f32 %v1727_v42, %v1643_v34  ;;  %v1955_v33 = vrot.slane %v10432_v54, %v8460_v18  ;;  %v12045_v16 = vld [vmem:[#allocation50_spill] sm:$0xff]  ;;  %v12047_v34 = vld [vmem:[#allocation73_spill] sm:$0xff] }
 0x360   : > { %v1862_v46 = vsel %vm1806_vm6, %v10521_v5, %v1847_v7  ;;  %7658 = vmatpush1.bf16.msra.mxu0 %v12030_v8  ;;  %v12032_v5 = vld [vmem:[#allocation30_spill] sm:$0xff]  ;;  %v1849_v0 = vpop.permute.xlu0 %1848  ;;  %v12036_v57 = vpack.c.bf16 %v12034_v60, %v12035_v43  ;;  %v12044_v60 = vld [vmem:[#allocation53_spill] sm:$0xff] }
 0x361   : > { %v12033_v23 = vpack.c.bf16 %v12031_v21, %v12032_v5  ;;  %v1984_v52 = vmul.f32 %v1943_v45, %v1862_v46  ;;  %v1863_v8 = vsel %vm1806_vm6, %v1847_v7, %v1849_v0  ;;  %v1735_v21 = vrot.slane %v10448_v62, %v8460_v18  ;;  %v12040_v43 = vld [vmem:[#allocation74_spill] sm:$0xff]  ;;  %v12041_v7 = vld [vmem:[#allocation67_spill] sm:$0xff] }
 0x362   : > { %7660 = vmatprep.subr.bf16.mxu0 %v12036_v57  ;;  %v1985_v48 = vmul.f32 %v1947_v39, %v1863_v8  ;;  %v1764_v57 = vmul.f32 %v1723_v63, %v1642_v17  ;;  %v12042_v46 = vld [vmem:[#allocation66_spill] sm:$0xff]  ;;  %v12046_v42 = vpack.c.bf16 %v12044_v60, %v12045_v16  ;;  %v12050_v17 = vld [vmem:[#allocation75_spill] sm:$0xff]  ;;  %v12051_v60 = vld [vmem:[#allocation72_spill] sm:$0xff] }
 0x363   : > { %7706 = vmatpush1.bf16.msra.mxu1 %v12033_v23  ;;  %v1631_v5 = vpop.permute.xlu1 %1630  ;;  %v12043_v23 = vpack.c.bf16 %v12041_v7, %v12042_v46  ;;  %v12048_v8 = vld [vmem:[#allocation70_spill] sm:$0xff]  ;;  %v12052_v16 = vld [vmem:[#allocation68_spill] sm:$0xff] }
 0x364   : > { %7708 = vmatprep.subr.bf16.mxu1 %v12039_v40  ;;  %v1951_v40 = vrot.slane %v10432_v54, %v11895_v58  ;;  %v1644_v62 = vsel %vm1586_vm5, %v1629_v14, %v1631_v5  ;;  %v1645_v45 = vsel %vm1586_vm5, %v1631_v5, %v12040_v43  ;;  %v1851_v39 = vpop.permute.xlu0 %1850  ;;  %v12049_v28 = vpack.c.bf16 %v12047_v34, %v12048_v8 }
 0x365   : > { %7662 = vmatpush1.bf16.msra.mxu0 %v12043_v23  ;;  %v7663_v54 = vpack.c.bf16 %v1985_v48, %v1765_v37  ;;  %v7665_v63 = vpack.c.bf16 %v1984_v52, %v1764_v57  ;;  %v1864_v14 = vsel %vm1806_vm6, %v1849_v0, %v1851_v39  ;;  %v1865_v5 = vsel %vm1806_vm6, %v1851_v39, %v12050_v17 }
 0x366   : > { %v1766_v26 = vmul.f32 %v1731_v61, %v1644_v62  ;;  %v1767_v7 = vmul.f32 %v1735_v21, %v1645_v45  ;;  %v1986_v46 = vmul.f32 %v1951_v40, %v1864_v14  ;;  %v1987_v23 = vmul.f32 %v1955_v33, %v1865_v5 }
 0x367   : > { %7710 = vmatpush1.bf16.msra.mxu1 %v12046_v42  ;;  %v2067_v43 = vpop.permute.xlu1 %2066  ;;  %7664 = vmatprep.subr.bf16.mxu0 %v7663_v54  ;;  %v12053_v42 = vpack.c.bf16 %v12051_v60, %v12052_v16  ;;  %v2382_v0 = vrot.slane %v10525_v38, %v12023_v44  ;;  %v2167_v48 = vrot.slane %v10529_v12, %v12024_v32  ;;  %v12055_v16 = vld [vmem:[#allocation79_spill] sm:$0xff] }
 0x368   : > { %7712 = vmatprep.subr.bf16.mxu1 %v12049_v28  ;;  %v7717_v34 = vpack.c.bf16 %v1986_v46, %v1766_v26  ;;  %v2069_v28 = vpop.permute.xlu0 %2068  ;;  %v7715_v37 = vpack.c.bf16 %v1987_v23, %v1767_v7  ;;  %v2386_v21 = vrot.slane %v10525_v38, %v12024_v32  ;;  %v2163_v40 = vrot.slane %v10529_v12, %v12023_v44 }
 0x369   : > { %7666 = vmatpush1.bf16.msra.mxu0 %v7665_v63  ;;  %v2083_v26 = vsel %vm2026_vm7, %v2067_v43, %v2069_v28  ;;  %v2082_v33 = vsel %vm2026_vm7, %v10555_v41, %v2067_v43  ;;  %v2175_v39 = vrot.slane %v10529_v12, %v8460_v18  ;;  %v2390_v14 = vrot.slane %v10525_v38, %v11895_v58  ;;  %v12054_v43 = vld [vmem:[#allocation78_spill] sm:$0xff] }
 0x36a   : > { %v2205_v54 = vmul.f32 %v2167_v48, %v2083_v26  ;;  %v2394_v17 = vrot.slane %v10525_v38, %v8460_v18  ;;  %v2204_v41 = vmul.f32 %v2163_v40, %v2082_v33  ;;  %v2605_v26 = vrot.slane %v10581_v1, %v12024_v32 }
 0x36b   : > { %7714 = vmatpush1.bf16.msra.mxu1 %v12053_v42  ;;  %v2284_v52 = vpop.permute.xlu1 %2283 }
 0x36c   : > { %v2300_v61 = vsel %vm352_vm1, %v10573_v36, %v2284_v52  ;;  %7716 = vmatprep.subr.bf16.mxu1 %v7715_v37  ;;  %v2286_v57 = vpop.permute.xlu0 %2285  ;;  %v2171_v36 = vrot.slane %v10529_v12, %v11895_v58 }
 0x36d   : > { %v2423_v62 = vmul.f32 %v2382_v0, %v2300_v61  ;;  %v2301_v45 = vsel %vm352_vm1, %v2284_v52, %v2286_v57 }
 0x36e   : > { %v2424_v63 = vmul.f32 %v2386_v21, %v2301_v45  ;;  %v2820_v21 = vrot.slane %v10577_v13, %v12023_v44 }
 0x36f   : > { %7718 = vmatpush1.bf16.msra.mxu1 %v7717_v34  ;;  %v2071_v8 = vpop.permute.xlu1 %2070  ;;  %v7669_v60 = vpack.c.bf16 %v2423_v62, %v2204_v41  ;;  %v2601_v62 = vrot.slane %v10581_v1, %v12023_v44  ;;  %v2832_v41 = vrot.slane %v10577_v13, %v8460_v18 }
 0x370   : > { %v2084_v5 = vsel %vm2026_vm7, %v2069_v28, %v2071_v8  ;;  %v2085_v7 = vsel %vm2026_vm7, %v2071_v8, %v12054_v43  ;;  %v2288_v46 = vpop.permute.xlu0 %2287  ;;  %v7667_v23 = vpack.c.bf16 %v2424_v63, %v2205_v54  ;;  %v2609_v8 = vrot.slane %v10581_v1, %v11895_v58 }
 0x371   : > { %v2302_v12 = vsel %vm352_vm1, %v2286_v57, %v2288_v46  ;;  %v2303_v42 = vsel %vm352_vm1, %v2288_v46, %v12055_v16  ;;  %v2206_v37 = vmul.f32 %v2171_v36, %v2084_v5  ;;  %v2207_v0 = vmul.f32 %v2175_v39, %v2085_v7 }
 0x372   : > { %v2425_v52 = vmul.f32 %v2390_v14, %v2302_v12  ;;  %v2426_v48 = vmul.f32 %v2394_v17, %v2303_v42  ;;  %7668 = vmatprep.subr.bf16.mxu0 %v7667_v23  ;;  %v2824_v57 = vrot.slane %v10577_v13, %v12024_v32  ;;  %v2828_v17 = vrot.slane %v10577_v13, %v11895_v58  ;;  %v12056_v23 = vld [vmem:[#allocation84_spill] sm:$0xff] }
 0x373   : > { %v2503_v34 = vpop.permute.xlu1 %2502  ;;  %7670 = vmatpush1.bf16.msra.mxu0 %v7669_v60  ;;  %v3039_v7 = vrot.slane %v10613_v31, %v12023_v44  ;;  %v3177_v60 = vrot.slane %v10607_v25, %v12023_v44  ;;  %v3043_v12 = vrot.slane %v10613_v31, %v12024_v32  ;;  %v3185_v42 = vrot.slane %v10607_v25, %v11895_v58 }
 0x374   : > { %v7721_v38 = vpack.c.bf16 %v2425_v52, %v2206_v37  ;;  %v2505_v28 = vpop.permute.xlu0 %2504  ;;  %v7719_v61 = vpack.c.bf16 %v2426_v48, %v2207_v0  ;;  %v2519_v36 = vsel %vm571_vm0, %v10609_v2, %v2503_v34  ;;  %v3189_v37 = vrot.slane %v10607_v25, %v8460_v18 }
 0x375   : > { %v2520_v45 = vsel %vm571_vm0, %v2503_v34, %v2505_v28  ;;  %v2642_v46 = vmul.f32 %v2601_v62, %v2519_v36  ;;  %v3181_v34 = vrot.slane %v10607_v25, %v12024_v32  ;;  %v3047_v25 = vrot.slane %v10613_v31, %v11895_v58 }
 0x376   : > { %7720 = vmatprep.subr.bf16.mxu1 %v7719_v61  ;;  %v2643_v5 = vmul.f32 %v2605_v26, %v2520_v45  ;;  %v3051_v62 = vrot.slane %v10613_v31, %v8460_v18  ;;  %v3218_v36 = vmul.f32 %v3177_v60, %v10726_v10 }
 0x377   : > { %v2722_v40 = vpop.permute.xlu1 %2721  ;;  %7722 = vmatpush1.bf16.msra.mxu1 %v7721_v38  ;;  %v12057_v38 = vld [vmem:[#allocation85_spill] sm:$0xff] }
 0x378   : > { %v2738_v33 = vsel %vm791_vm3, %v10631_v6, %v2722_v40  ;;  %v2724_v39 = vpop.permute.xlu0 %2723  ;;  %v2613_v6 = vrot.slane %v10581_v1, %v8460_v18 }
 0x379   : > { %v2861_v54 = vmul.f32 %v2820_v21, %v2738_v33  ;;  %v2739_v63 = vsel %vm791_vm3, %v2722_v40, %v2724_v39 }
 0x37a   : > { %v2862_v43 = vmul.f32 %v2824_v57, %v2739_v63  ;;  %v11181_v57 = vld [vmem:[%s8163_s23 + $0x70] sm:$0xff] }
 0x37b   : > { %v2507_v14 = vpop.permute.xlu1 %2506  ;;  %v7673_v0 = vpack.c.bf16 %v2861_v54, %v2642_v46  ;;  %v3220_v63 = vmul.f32 %v3185_v42, %v11181_v57  ;;  %v3619_v42 = vrot.slane %v10675_v53, %v12024_v32 }
 0x37c   : > { %v2521_v2 = vsel %vm571_vm0, %v2505_v28, %v2507_v14  ;;  %v2522_v1 = vsel %vm571_vm0, %v2507_v14, %v12056_v23  ;;  %v2726_v16 = vpop.permute.xlu0 %2725  ;;  %v7671_v13 = vpack.c.bf16 %v2862_v43, %v2643_v5  ;;  %v12058_v43 = vld [vmem:[#allocation90_spill] sm:$0xff] }
 0x37d   : > { %v2644_v52 = vmul.f32 %v2609_v8, %v2521_v2  ;;  %v2740_v48 = vsel %vm791_vm3, %v2724_v39, %v2726_v16  ;;  %v2741_v28 = vsel %vm791_vm3, %v2726_v16, %v12057_v38  ;;  %v2645_v21 = vmul.f32 %v2613_v6, %v2522_v1 }
 0x37e   : > { %v2863_v40 = vmul.f32 %v2828_v17, %v2740_v48  ;;  %v2864_v26 = vmul.f32 %v2832_v41, %v2741_v28  ;;  %7672 = vmatprep.subr.bf16.mxu0 %v7671_v13  ;;  %v3219_v6 = vmul.f32 %v10930_v55, %v3181_v34  ;;  %v3221_v17 = vmul.f32 %v10778_v11, %v3189_v37 }
 0x37f   : > { %v2941_v61 = vpop.permute.xlu1 %2940  ;;  %7674 = vmatpush1.bf16.msra.mxu0 %v7673_v0  ;;  %v3396_v16 = vrot.slane %v10679_v20, %v12023_v44  ;;  %v3615_v11 = vrot.slane %v10675_v53, %v12023_v44  ;;  %v3400_v13 = vrot.slane %v10679_v20, %v12024_v32  ;;  %v3404_v48 = vrot.slane %v10679_v20, %v11895_v58 }
 0x380   : > { %v2957_v33 = vsel %vm1011_vm2, %v10670_v3, %v2941_v61  ;;  %v7725_v45 = vpack.c.bf16 %v2863_v40, %v2644_v52  ;;  %v2943_v39 = vpop.permute.xlu0 %2942  ;;  %v7723_v8 = vpack.c.bf16 %v2864_v26, %v2645_v21  ;;  %v3623_v26 = vrot.slane %v10675_v53, %v11895_v58 }
 0x381   : > { %v3080_v54 = vmul.f32 %v3039_v7, %v2957_v33  ;;  %v2958_v3 = vsel %vm1011_vm2, %v2941_v61, %v2943_v39  ;;  %v3408_v61 = vrot.slane %v10679_v20, %v8460_v18  ;;  %v3627_v33 = vrot.slane %v10675_v53, %v8460_v18 }
 0x382   : > { %v3081_v41 = vmul.f32 %v3043_v12, %v2958_v3  ;;  %7724 = vmatprep.subr.bf16.mxu1 %v7723_v8  ;;  %v12060_v3 = vld [vmem:[#allocation95_spill] sm:$0xff] }
 0x383   : > { %v2945_v14 = vpop.permute.xlu1 %2944  ;;  %7726 = vmatpush1.bf16.msra.mxu1 %v7725_v45  ;;  %v7677_v7 = vpack.c.bf16 %v3218_v36, %v3080_v54  ;;  %v12059_v45 = vld [vmem:[#allocation94_spill] sm:$0xff] }
 0x384   : > { %v2959_v5 = vsel %vm1011_vm2, %v2943_v39, %v2945_v14  ;;  %v2960_v31 = vsel %vm1011_vm2, %v2945_v14, %v12058_v43  ;;  %v3297_v46 = vpop.permute.xlu0 %3296  ;;  %v7675_v55 = vpack.c.bf16 %v3219_v6, %v3081_v41 }
 0x385   : > { %v3082_v10 = vmul.f32 %v3047_v25, %v2959_v5  ;;  %v3083_v2 = vmul.f32 %v3051_v62, %v2960_v31  ;;  %v3314_v12 = vsel %vm1366_vm4, %v10705_v56, %v3297_v46  ;;  %v3834_v31 = vrot.slane %v10734_v47, %v12023_v44 }
 0x386   : > { %7676 = vmatprep.subr.bf16.mxu0 %v7675_v55  ;;  %v3437_v56 = vmul.f32 %v3396_v16, %v3314_v12  ;;  %v4057_v55 = vrot.slane %v10730_v9, %v12024_v32  ;;  %v3842_v16 = vrot.slane %v10734_v47, %v11895_v58 }
 0x387   : > { %v7729_v23 = vpack.c.bf16 %v3220_v63, %v3082_v10  ;;  %v3299_v1 = vpop.permute.xlu1 %3298  ;;  %v7727_v60 = vpack.c.bf16 %v3221_v17, %v3083_v2  ;;  %7678 = vmatpush1.bf16.msra.mxu0 %v7677_v7  ;;  %v4053_v10 = vrot.slane %v10730_v9, %v12023_v44 }
 0x388   : > { %v3315_v34 = vsel %vm1366_vm4, %v3297_v46, %v3299_v1  ;;  %v3516_v37 = vpop.permute.xlu0 %3515  ;;  %v3838_v46 = vrot.slane %v10734_v47, %v12024_v32 }
 0x389   : > { %7728 = vmatprep.subr.bf16.mxu1 %v7727_v60  ;;  %v3533_v0 = vsel %vm1586_vm5, %v10723_v35, %v3516_v37  ;;  %v3438_v21 = vmul.f32 %v3400_v13, %v3315_v34  ;;  %v3846_v13 = vrot.slane %v10734_v47, %v8460_v18 }
 0x38a   : > { %7730 = vmatpush1.bf16.msra.mxu1 %v7729_v23  ;;  %v3656_v38 = vmul.f32 %v3615_v11, %v3533_v0  ;;  %v4061_v0 = vrot.slane %v10730_v9, %v11895_v58 }
 0x38b   : > { %v3518_v52 = vpop.permute.xlu1 %3517 }
 0x38c   : > { %v3534_v28 = vsel %vm1586_vm5, %v3516_v37, %v3518_v52  ;;  %v7681_v35 = vpack.c.bf16 %v3656_v38, %v3437_v56  ;;  %v3301_v25 = vpop.permute.xlu0 %3300 }
 0x38d   : > { %v3657_v40 = vmul.f32 %v3619_v42, %v3534_v28  ;;  %v3316_v62 = vsel %vm1366_vm4, %v3299_v1, %v3301_v25  ;;  %v3334_v36 = vsel %vm1366_vm4, %v3301_v25, %v12059_v45  ;;  %v12061_v28 = vld [vmem:[#allocation100_spill] sm:$0xff] }
 0x38e   : > { %v3439_v6 = vmul.f32 %v3404_v48, %v3316_v62  ;;  %v3440_v54 = vmul.f32 %v3408_v61, %v3334_v36 }
 0x38f   : > { %v3520_v39 = vpop.permute.xlu1 %3519  ;;  %v7679_v8 = vpack.c.bf16 %v3657_v40, %v3438_v21 }
 0x390   : > { %v3535_v20 = vsel %vm1586_vm5, %v3518_v52, %v3520_v39  ;;  %v3553_v63 = vsel %vm1586_vm5, %v3520_v39, %v12060_v3  ;;  %v3735_v53 = vpop.permute.xlu0 %3734  ;;  %v4491_v3 = vrot.slane %v10785_v51, %v12023_v44 }
 0x391   : > { %v3658_v14 = vmul.f32 %v3623_v26, %v3535_v20  ;;  %v3659_v17 = vmul.f32 %v3627_v33, %v3553_v63  ;;  %7680 = vmatprep.subr.bf16.mxu0 %v7679_v8  ;;  %v3752_v2 = vsel %vm1806_vm6, %v10760_v30, %v3735_v53  ;;  %v4272_v20 = vrot.slane %v10789_v24, %v12023_v44  ;;  %v12063_v63 = vld [vmem:[#allocation83_spill] sm:$0xff] }
 0x392   : > { %7682 = vmatpush1.bf16.msra.mxu0 %v7681_v35  ;;  %v3875_v11 = vmul.f32 %v3834_v31, %v3752_v2  ;;  %v12062_v35 = vld [vmem:[#allocation101_spill] sm:$0xff]  ;;  %v4280_v2 = vrot.slane %v10789_v24, %v11895_v58 }
 0x393   : > { %v7733_v41 = vpack.c.bf16 %v3658_v14, %v3439_v6  ;;  %v3737_v5 = vpop.permute.xlu1 %3736  ;;  %v7731_v43 = vpack.c.bf16 %v3659_v17, %v3440_v54  ;;  %v4276_v17 = vrot.slane %v10789_v24, %v12024_v32 }
 0x394   : > { %v3753_v7 = vsel %vm1806_vm6, %v3735_v53, %v3737_v5  ;;  %v3954_v23 = vpop.permute.xlu0 %3953  ;;  %v4495_v53 = vrot.slane %v10785_v51, %v12024_v32 }
 0x395   : > { %7732 = vmatprep.subr.bf16.mxu1 %v7731_v43  ;;  %v3971_v1 = vsel %vm2026_vm7, %v10781_v19, %v3954_v23  ;;  %v3876_v34 = vmul.f32 %v3838_v46, %v3753_v7  ;;  %v4065_v19 = vrot.slane %v10730_v9, %v8460_v18  ;;  %v12064_v43 = vld [vmem:[#allocation82_spill] sm:$0xff] }
 0x396   : > { %7734 = vmatpush1.bf16.msra.mxu1 %v7733_v41  ;;  %v4094_v30 = vmul.f32 %v4053_v10, %v3971_v1  ;;  %v11241_v42 = vpop.f32.mrb[2].mxu0 }
 0x397   : > { %v3956_v60 = vpop.permute.xlu1 %3955  ;;  %v11247_v52 = vpop.f32.mrb[3].mxu0 }
 0x398   : > { %v3972_v12 = vsel %vm2026_vm7, %v3954_v23, %v3956_v60  ;;  %v7685_v48 = vpack.c.bf16 %v4094_v30, %v3875_v11  ;;  %v3739_v56 = vpop.permute.xlu0 %3738  ;;  %v4284_v23 = vrot.slane %v10789_v24, %v8460_v18  ;;  %v4503_v11 = vrot.slane %v10785_v51, %v8460_v18  ;;  %v12066_v24 = vld [vmem:[#allocation107_spill] sm:$0xff] }
 0x399   : > { %v4095_v37 = vmul.f32 %v4057_v55, %v3972_v12  ;;  %v3754_v38 = vsel %vm1806_vm6, %v3737_v5, %v3739_v56  ;;  %v3772_v61 = vsel %vm1806_vm6, %v3739_v56, %v12061_v28 }
 0x39a   : > { %v3877_v40 = vmul.f32 %v3842_v16, %v3754_v38  ;;  %v3878_v26 = vmul.f32 %v3846_v13, %v3772_v61  ;;  %v4499_v16 = vrot.slane %v10785_v51, %v11895_v58  ;;  %v12065_v13 = vld [vmem:[#allocation106_spill] sm:$0xff] }
 0x39b   : > { %v3958_v47 = vpop.permute.xlu1 %3957  ;;  %v7683_v21 = vpack.c.bf16 %v4095_v37, %v3876_v34  ;;  %v11255_v62 = vpop.f32.mrb[2].mxu1 }
 0x39c   : > { %v3973_v33 = vsel %vm2026_vm7, %v3956_v60, %v3958_v47  ;;  %v3991_v25 = vsel %vm2026_vm7, %v3958_v47, %v12062_v35  ;;  %v11257_v36 = vpop.f32.mrb[3].mxu1  ;;  %v4172_v39 = vpop.permute.xlu0 %4171  ;;  %v4929_v35 = vrot.slane %v10837_v49, %v12023_v44 }
 0x39d   : > { %v4096_v9 = vmul.f32 %v4061_v0, %v3973_v33  ;;  %v4097_v45 = vmul.f32 %v4065_v19, %v3991_v25  ;;  %7684 = vmatprep.subr.bf16.mxu0 %v7683_v21  ;;  %v4187_v14 = vsel %vm352_vm1, %v12063_v63, %v4172_v39  ;;  %v4710_v33 = vrot.slane %v10841_v22, %v12023_v44  ;;  %v12067_v25 = vld [vmem:[#allocation86_spill] sm:$0xff] }
 0x39e   : > { %7686 = vmatpush1.bf16.msra.mxu0 %v7685_v48  ;;  %v4313_v46 = vmul.f32 %v4272_v20, %v4187_v14 }
 0x39f   : > { %v7737_v8 = vpack.c.bf16 %v4096_v9, %v3877_v40  ;;  %v4174_v6 = vpop.permute.xlu1 %4173  ;;  %v7735_v54 = vpack.c.bf16 %v4097_v45, %v3878_v26  ;;  %v4714_v45 = vrot.slane %v10841_v22, %v12024_v32 }
 0x3a0   : > { %v4188_v41 = vsel %vm352_vm1, %v4172_v39, %v4174_v6  ;;  %v4391_v5 = vpop.permute.xlu0 %4390  ;;  %v4933_v39 = vrot.slane %v10837_v49, %v12024_v32 }
 0x3a1   : > { %7736 = vmatprep.subr.bf16.mxu1 %v7735_v54  ;;  %v4406_v31 = vsel %vm571_vm0, %v12064_v43, %v4391_v5  ;;  %v4314_v1 = vmul.f32 %v4276_v17, %v4188_v41  ;;  %v4937_v43 = vrot.slane %v10837_v49, %v11895_v58 }
 0x3a2   : > { %7738 = vmatpush1.bf16.msra.mxu1 %v7737_v8  ;;  %v4532_v55 = vmul.f32 %v4491_v3, %v4406_v31  ;;  %v4718_v3 = vrot.slane %v10841_v22, %v11895_v58 }
 0x3a3   : > { %v4393_v10 = vpop.permute.xlu1 %4392 }
 0x3a4   : > { %v4407_v7 = vsel %vm571_vm0, %v4391_v5, %v4393_v10  ;;  %v7689_v30 = vpack.c.bf16 %v4532_v55, %v4313_v46  ;;  %v4206_v12 = vpop.permute.xlu0 %4205  ;;  %v12069_v55 = vld [vmem:[#allocation87_spill] sm:$0xff] }
 0x3a5   : > { %v4533_v60 = vmul.f32 %v4495_v53, %v4407_v7  ;;  %v4207_v34 = vsel %vm352_vm1, %v4206_v12, %v12065_v13  ;;  %v4210_v37 = vsel %vm352_vm1, %v4174_v6, %v4206_v12  ;;  %v4722_v53 = vrot.slane %v10841_v22, %v8460_v18  ;;  %v12071_v12 = vld [vmem:[#allocation113_spill] sm:$0xff] }
 0x3a6   : > { %v4315_v48 = vmul.f32 %v4280_v2, %v4210_v37  ;;  %v4316_v56 = vmul.f32 %v4284_v23, %v4207_v34  ;;  %v12068_v2 = vld [vmem:[#allocation89_spill] sm:$0xff]  ;;  %v5286_v7 = vrot.slane %v12069_v55, %v12023_v44  ;;  %v12070_v23 = vld [vmem:[#allocation112_spill] sm:$0xff]  ;;  %v5005_v37 = vld [vmem:[%s8163_s23 + $0x78] sm:$0xff] }
 0x3a7   : > { %v4425_v0 = vpop.permute.xlu1 %4424  ;;  %v7687_v19 = vpack.c.bf16 %v4533_v60, %v4314_v1  ;;  %v5067_v46 = vrot.slane %v12068_v2, %v12023_v44 }
 0x3a8   : > { %v4426_v38 = vsel %vm571_vm0, %v4425_v0, %v12066_v24  ;;  %v4429_v28 = vsel %vm571_vm0, %v4393_v10, %v4425_v0  ;;  %v4610_v51 = vpop.permute.xlu0 %4609 }
 0x3a9   : > { %v4534_v61 = vmul.f32 %v4499_v16, %v4429_v28  ;;  %v4535_v47 = vmul.f32 %v4503_v11, %v4426_v38  ;;  %7688 = vmatprep.subr.bf16.mxu0 %v7687_v19  ;;  %v4625_v9 = vsel %vm791_vm3, %v12067_v25, %v4610_v51  ;;  %v5071_v11 = vrot.slane %v12068_v2, %v12024_v32 }
 0x3aa   : > { %7690 = vmatpush1.bf16.msra.mxu0 %v7689_v30  ;;  %v4751_v63 = vmul.f32 %v4710_v33, %v4625_v9  ;;  %v5075_v38 = vrot.slane %v12068_v2, %v11895_v58  ;;  %v5079_v28 = vrot.slane %v12068_v2, %v8460_v18  ;;  %v5298_v9 = vrot.slane %v12069_v55, %v8460_v18 }
 0x3ab   : > { %v7741_v21 = vpack.c.bf16 %v4534_v61, %v4315_v48  ;;  %v4612_v40 = vpop.permute.xlu1 %4611  ;;  %v7739_v26 = vpack.c.bf16 %v4535_v47, %v4316_v56  ;;  %v5290_v48 = vrot.slane %v12069_v55, %v12024_v32  ;;  %v5108_v56 = vmul.f32 %v5067_v46, %v11181_v57  ;;  %v12072_v47 = vld [vmem:[#allocation88_spill] sm:$0xff] }
 0x3ac   : > { %v4626_v8 = vsel %vm791_vm3, %v4610_v51, %v4612_v40  ;;  %v4829_v6 = vpop.permute.xlu0 %4828  ;;  %v5109_v33 = vmul.f32 %v5071_v11, %v5005_v37  ;;  %v5294_v57 = vrot.slane %v12069_v55, %v11895_v58  ;;  %v5728_v46 = vrot.slane %v10935_v4, %v12024_v32  ;;  %v12074_v37 = vld [vmem:[#allocation117_spill] sm:$0xff] }
 0x3ad   : > { %7740 = vmatprep.subr.bf16.mxu1 %v7739_v26  ;;  %v4844_v54 = vsel %vm1011_vm2, %v10894_v50, %v4829_v6  ;;  %v4752_v41 = vmul.f32 %v4714_v45, %v4626_v8  ;;  %v4941_v50 = vrot.slane %v10837_v49, %v8460_v18  ;;  %v4990_v26 = vld [vmem:[%s8163_s23] sm:$0xff]  ;;  %v5505_v55 = vrot.slane %v10939_v27, %v12023_v44  ;;  %s7901_s23 = scalar_lea.vmem %s7900_s21, 4096 }
 0x3ae   : > { %7742 = vmatpush1.bf16.msra.mxu1 %v7741_v21  ;;  %v4970_v14 = vmul.f32 %v4929_v35, %v4844_v54  ;;  %v5110_v8 = vmul.f32 %v5075_v38, %v4990_v26  ;;  %v5111_v54 = vmul.f32 %v10944_v15, %v5079_v28  ;;  %v5509_v15 = vrot.slane %v10939_v27, %v12024_v32  ;;  %p7903_p3 = scmp.lt.s32.totalorder %s7901_s23, %s7895_s12 }
 0x3af   : > { %v4831_v20 = vpop.permute.xlu1 %4830 }
 0x3b0   : > { %v4845_v17 = vsel %vm1011_vm2, %v4829_v6, %v4831_v20  ;;  %v7693_v31 = vpack.c.bf16 %v4970_v14, %v4751_v63  ;;  %v4644_v10 = vpop.permute.xlu0 %4643  ;;  %p7904_p7 = por %p7903_p3, %p7902_p13 }
 0x3b1   : > { %v4971_v5 = vmul.f32 %v4933_v39, %v4845_v17  ;;  %v4645_v22 = vsel %vm791_vm3, %v4644_v10, %v12070_v23  ;;  %v4648_v1 = vsel %vm791_vm3, %v4612_v40, %v4644_v10 }
 0x3b2   : > { %v4753_v30 = vmul.f32 %v4718_v3, %v4648_v1  ;;  %v4754_v49 = vmul.f32 %v4722_v53, %v4645_v22  ;;  %v12073_v3 = vld [vmem:[#allocation116_spill] sm:$0xff]  ;;  %p7905_p9 = pnand %p7904_p7, %p7898_p10 }
 0x3b3   : > { %v4863_v60 = vpop.permute.xlu1 %4862  ;;  %v7691_v16 = vpack.c.bf16 %v4971_v5, %v4752_v41 }
 0x3b4   : > { %v4864_v13 = vsel %vm1011_vm2, %v4863_v60, %v12071_v12  ;;  %v4867_v34 = vsel %vm1011_vm2, %v4831_v20, %v4863_v60  ;;  %v5185_v24 = vpop.permute.xlu0 %5184  ;;  %v5732_v12 = vrot.slane %v10935_v4, %v11895_v58 }
 0x3b5   : > { %v4972_v0 = vmul.f32 %v4937_v43, %v4867_v34  ;;  %v4973_v19 = vmul.f32 %v4941_v50, %v4864_v13  ;;  %7692 = vmatprep.subr.bf16.mxu0 %v7691_v16  ;;  %v5198_v51 = vsel %vm1366_vm4, %v12072_v47, %v5185_v24  ;;  %v5517_v16 = vrot.slane %v10939_v27, %v8460_v18 }
 0x3b6   : > { %7694 = vmatpush1.bf16.msra.mxu0 %v7693_v31  ;;  %v5327_v35 = vmul.f32 %v5286_v7, %v5198_v51  ;;  %v5724_v31 = vrot.slane %v10935_v4, %v12023_v44  ;;  %v5736_v13 = vrot.slane %v10935_v4, %v8460_v18 }
 0x3b7   : > { %v7745_v61 = vpack.c.bf16 %v4972_v0, %v4753_v30  ;;  %v5216_v21 = vpop.permute.xlu1 %5215  ;;  %v7743_v40 = vpack.c.bf16 %v4973_v19, %v4754_v49 }
 0x3b8   : > { %v5224_v25 = vsel %vm1366_vm4, %v5185_v24, %v5216_v21  ;;  %v7697_v39 = vpack.c.bf16 %v5327_v35, %v5108_v56  ;;  %v5218_v6 = vpop.permute.xlu0 %5217  ;;  %v12075_v24 = vld [vmem:[#allocation118_spill] sm:$0xff] }
 0x3b9   : > { %v5328_v45 = vmul.f32 %v5290_v48, %v5224_v25  ;;  %7744 = vmatprep.subr.bf16.mxu1 %v7743_v40  ;;  %v5219_v20 = vsel %vm1366_vm4, %v5216_v21, %v5218_v6  ;;  %v5220_v63 = vsel %vm1366_vm4, %v5218_v6, %v12073_v3  ;;  %v12077_v25 = vld [vmem:[#allocation92_spill] sm:$0xff] }
 0x3ba   : > { %7746 = vmatpush1.bf16.msra.mxu1 %v7745_v61  ;;  %v5329_v53 = vmul.f32 %v5294_v57, %v5219_v20  ;;  %v5330_v41 = vmul.f32 %v5298_v9, %v5220_v63  ;;  %v12076_v61 = vld [vmem:[#allocation91_spill] sm:$0xff] }
 0x3bb   : > { %v5404_v14 = vpop.permute.xlu1 %5403  ;;  %v7695_v17 = vpack.c.bf16 %v5328_v45, %v5109_v33  ;;  %v5947_v47 = vrot.slane %v12076_v61, %v12024_v32  ;;  %v5943_v26 = vrot.slane %v12076_v61, %v12023_v44  ;;  %v5955_v33 = vrot.slane %v12076_v61, %v8460_v18  ;;  %v12078_v44 = vld [vmem:[#allocation119_spill] sm:$0xff] }
 0x3bc   : > { %v7749_v5 = vpack.c.bf16 %v5329_v53, %v5110_v8  ;;  %v5435_v43 = vpop.permute.xlu0 %5434  ;;  %v7747_v50 = vpack.c.bf16 %v5330_v41, %v5111_v54  ;;  %v5417_v23 = vsel %vm1586_vm5, %v10968_v29, %v5404_v14 }
 0x3bd   : > { %7696 = vmatprep.subr.bf16.mxu0 %v7695_v17  ;;  %v5443_v7 = vsel %vm1586_vm5, %v5404_v14, %v5435_v43  ;;  %v5546_v29 = vmul.f32 %v5505_v55, %v5417_v23  ;;  %v12079_v14 = vld [vmem:[#allocation97_spill] sm:$0xff]  ;;  %v12083_v23 = vld [vmem:[#allocation98_spill] sm:$0xff] }
 0x3be   : > { %7698 = vmatpush1.bf16.msra.mxu0 %v7697_v39  ;;  %7748 = vmatprep.subr.bf16.mxu1 %v7747_v50  ;;  %v5547_v30 = vmul.f32 %v5509_v15, %v5443_v7  ;;  %v5951_v39 = vrot.slane %v12076_v61, %v11895_v58 }
 0x3bf   : > { %v5623_v10 = vpop.permute.xlu1 %5622  ;;  %7750 = vmatpush1.bf16.msra.mxu1 %v7749_v5 }
 0x3c0   : > { %v5636_v2 = vsel %vm1806_vm6, %v10989_v59, %v5623_v10  ;;  %v5654_v22 = vpop.permute.xlu0 %5653  ;;  %v5513_v59 = vrot.slane %v10939_v27, %v11895_v58 }
 0x3c1   : > { %v5765_v1 = vmul.f32 %v5724_v31, %v5636_v2  ;;  %v5662_v60 = vsel %vm1806_vm6, %v5623_v10, %v5654_v22  ;;  %v12081_v31 = vld [vmem:[#allocation93_spill] sm:$0xff]  ;;  %v12082_v2 = vld [vmem:[#allocation99_spill] sm:$0xff] }
 0x3c2   : > { %v5766_v49 = vmul.f32 %v5728_v46, %v5662_v60 }
 0x3c3   : > { %v5437_v11 = vpop.permute.xlu1 %5436  ;;  %v7701_v56 = vpack.c.bf16 %v5765_v1, %v5546_v29 }
 0x3c4   : > { %v5438_v34 = vsel %vm1586_vm5, %v5435_v43, %v5437_v11  ;;  %v5439_v0 = vsel %vm1586_vm5, %v5437_v11, %v12074_v37  ;;  %v5656_v19 = vpop.permute.xlu0 %5655  ;;  %v7699_v48 = vpack.c.bf16 %v5766_v49, %v5547_v30  ;;  %v12080_v43 = vld [vmem:[#allocation96_spill] sm:$0xff] }
 0x3c5   : > { %v5657_v27 = vsel %vm1806_vm6, %v5654_v22, %v5656_v19  ;;  %v5658_v38 = vsel %vm1806_vm6, %v5656_v19, %v12075_v24  ;;  %v5548_v51 = vmul.f32 %v5513_v59, %v5438_v34  ;;  %v5549_v4 = vmul.f32 %v5517_v16, %v5439_v0 }
 0x3c6   : > { %v5767_v21 = vmul.f32 %v5732_v12, %v5657_v27  ;;  %v5768_v40 = vmul.f32 %v5736_v13, %v5658_v38  ;;  %7700 = vmatprep.subr.bf16.mxu0 %v7699_v48 }
 0x3c7   : > { %v5842_v28 = vpop.permute.xlu1 %5841  ;;  %7702 = vmatpush1.bf16.msra.mxu0 %v7701_v56 }
 0x3c8   : > { %v7753_v35 = vpack.c.bf16 %v5767_v21, %v5548_v51  ;;  %v5855_v57 = vsel %vm2026_vm7, %v12077_v25, %v5842_v28  ;;  %v5873_v9 = vpop.permute.xlu0 %5872  ;;  %v7751_v45 = vpack.c.bf16 %v5768_v40, %v5549_v4 }
 0x3c9   : > { %v5881_v32 = vsel %vm2026_vm7, %v5842_v28, %v5873_v9  ;;  %v5984_v18 = vmul.f32 %v5943_v26, %v5855_v57 }
 0x3ca   : > { %v5985_v6 = vmul.f32 %v5947_v47, %v5881_v32  ;;  %7752 = vmatprep.subr.bf16.mxu1 %v7751_v45 }
 0x3cb   : > { %v5875_v8 = vpop.permute.xlu1 %5874  ;;  %7754 = vmatpush1.bf16.msra.mxu1 %v7753_v35 }
 0x3cc   : > { %v5876_v54 = vsel %vm2026_vm7, %v5873_v9, %v5875_v8  ;;  %v5877_v20 = vsel %vm2026_vm7, %v5875_v8, %v12078_v44  ;;  %6926 = vmatprep.subr.mxu0 %v5985_v6 }
 0x3cd   : > { %v5987_v3 = vmul.f32 %v5955_v33, %v5877_v20  ;;  %v5986_v63 = vmul.f32 %v5951_v39, %v5876_v54  ;;  %6927 = vmatpush1.msra.mxu0 %v5984_v18 }
 0x3ce   : > { %6939 = vmatmul.mubr.f32.vlgmr.msra.gmra.mrb[6].mxu0 %v12079_v14 }
 0x3cf   : > { %6997 = vmatprep.subr.mxu1 %v5987_v3 }
 0x3d0   : > { %6998 = vmatpush1.msra.mxu1 %v5986_v63 }
 0x3d1   : > { %7010 = vmatmul.mubr.f32.vlgmr.msra.gmra.mrb[6].mxu1 %v12079_v14 }
 0x3da   : > { %v11385_v5 = vpop.permute.xlu0 %6441 }
 0x3db   : > { %v6517_v50 = vadd.f32 %v12080_v43, %v11385_v5  ;;  %v6515_v10 = vadd.f32 %v12081_v31, %v11385_v5  ;;  %v6586_v46 = vadd.f32 %v12082_v2, %v11385_v5  ;;  %v6588_v22 = vadd.f32 %v12083_v23, %v11385_v5 }
 0x3dc   : > { %v11391_v15 = vpop.permute.xlu1 %7019  ;;  %v6657_v12 = vadd.f32 %v11241_v42, %v11385_v5  ;;  %v6659_v0 = vadd.f32 %v11247_v52, %v11385_v5  ;;  %v6728_v27 = vadd.f32 %v11255_v62, %v11385_v5  ;;  %v6730_v61 = vadd.f32 %v11257_v36, %v11385_v5 }
 0x3dd   : > { %v11396_v55 = vmul.f32 %v11391_v15, %v6515_v10  ;;  %v11399_v7 = vmul.f32 %v11391_v15, %v6517_v50  ;;  %v11404_v1 = vmul.f32 %v11391_v15, %v6586_v46  ;;  %v11413_v11 = vmul.f32 %v11391_v15, %v6588_v22 }
 0x3de   : > { %v11423_v37 = vmul.f32 %v11391_v15, %v6657_v12  ;;  %v11431_v42 = vmul.f32 %v11391_v15, %v6659_v0  ;;  %v11439_v52 = vmul.f32 %v11391_v15, %v6728_v27  ;;  %v11448_v21 = vmul.f32 %v11391_v15, %v6730_v61 }
 0x3df   : > { %v7056_v60 = vmul.f32 %v11396_v55, %v11396_v55  ;;  %v7057_v59 = vmul.f32 %v11399_v7, %v11399_v7  ;;  %v7038_v16 = vadd.f32 %v11399_v7, %v11396_v55  ;;  %v7058_v30 = vmul.f32 %v11404_v1, %v11404_v1 }
 0x3e0   : > { %v7059_v29 = vmul.f32 %v11413_v11, %v11413_v11  ;;  %v7060_v56 = vmul.f32 %v11423_v37, %v11423_v37  ;;  %v7061_v28 = vmul.f32 %v11431_v42, %v11431_v42  ;;  %v7062_v62 = vmul.f32 %v11439_v52, %v11439_v52 }
 0x3e1   : > { %v7072_v49 = vadd.f32 %v7057_v59, %v7056_v60  ;;  %v7039_v13 = vadd.f32 %v7038_v16, %v11404_v1  ;;  %v7063_v36 = vmul.f32 %v11448_v21, %v11448_v21 }
 0x3e3   : > { %v7073_v34 = vadd.f32 %v7072_v49, %v7058_v30  ;;  %v7040_v19 = vadd.f32 %v7039_v13, %v11413_v11 }
 0x3e5   : > { %v7074_v48 = vadd.f32 %v7073_v34, %v7059_v29  ;;  %v7041_v24 = vadd.f32 %v7040_v19, %v11423_v37 }
 0x3e7   : > { %v7075_v38 = vadd.f32 %v7074_v48, %v7060_v56  ;;  %v7042_v47 = vadd.f32 %v7041_v24, %v11431_v42 }
 0x3e9   : > { %v7076_v4 = vadd.f32 %v7075_v38, %v7061_v28  ;;  %v7043_v40 = vadd.f32 %v7042_v47, %v11439_v52 }
 0x3eb   : > { %v7077_v35 = vadd.f32 %v7076_v4, %v7062_v62  ;;  %v7044_v25 = vadd.f32 %v7043_v40, %v11448_v21 }
 0x3ed   : > { %v7078_v32 = vadd.f32 %v7077_v35, %v7063_v36  ;;  %v7096_v35 = vld [vmem:[%s11607_s5] sm:$0xff] }
 0x42d   : > { %v6798_v58 = vpop.f32.mrb[4].mxu0 }
 0x42e   : > { %v6800_v17 = vpop.f32.mrb[5].mxu0  ;;  %v6799_v51 = vadd.f32 %v6798_v58, %v11385_v5 }
 0x42f   : > { %v6801_v33 = vadd.f32 %v6800_v17, %v11385_v5 }
 0x430   : > { %v11452_v26 = vmul.f32 %v11391_v15, %v6799_v51 }
 0x431   : > { %v6869_v53 = vpop.f32.mrb[4].mxu1  ;;  %v11461_v9 = vmul.f32 %v11391_v15, %v6801_v33 }
 0x432   : > { %v6871_v41 = vpop.f32.mrb[5].mxu1  ;;  %v7064_v57 = vmul.f32 %v11452_v26, %v11452_v26  ;;  %v6870_v45 = vadd.f32 %v6869_v53, %v11385_v5  ;;  %v7045_v39 = vadd.f32 %v7044_v25, %v11452_v26 }
 0x433   : > { %v7065_v6 = vmul.f32 %v11461_v9, %v11461_v9  ;;  %v6872_v44 = vadd.f32 %v6871_v41, %v11385_v5 }
 0x434   : > { %v7079_v8 = vadd.f32 %v7078_v32, %v7064_v57  ;;  %v11468_v54 = vmul.f32 %v11391_v15, %v6870_v45  ;;  %v7046_v20 = vadd.f32 %v7045_v39, %v11461_v9 }
 0x435   : > { %v7033_v63 = vmul.f32 %v11391_v15, %v6872_v44 }
 0x436   : > { %v7080_v18 = vadd.f32 %v7079_v8, %v7065_v6  ;;  %v7066_v3 = vmul.f32 %v11468_v54, %v11468_v54  ;;  %v7047_v14 = vadd.f32 %v7046_v20, %v11468_v54 }
 0x437   : > { %v7067_v53 = vmul.f32 %v7033_v63, %v7033_v63 }
 0x438   : > { %v7081_v17 = vadd.f32 %v7080_v18, %v7066_v3  ;;  %v7048_v41 = vadd.f32 %v7047_v14, %v7033_v63 }
 0x43a   : > { %v7082_v59 = vadd.f32 %v7081_v17, %v7067_v53 }
 0x4a1   : > { %v6940_v58 = vpop.f32.mrb[6].mxu0 }
 0x4a2   : > { %v6941_v43 = vadd.f32 %v6940_v58, %v11385_v5  ;;  %v6942_v50 = vpop.f32.mrb[7].mxu0 }
 0x4a3   : > { %v6943_v31 = vadd.f32 %v6942_v50, %v11385_v5 }
 0x4a4   : > { %v7011_v10 = vpop.f32.mrb[6].mxu1  ;;  %v7034_v2 = vmul.f32 %v11391_v15, %v6941_v43 }
 0x4a5   : > { %v7012_v46 = vadd.f32 %v7011_v10, %v11385_v5  ;;  %v7013_v23 = vpop.f32.mrb[7].mxu1  ;;  %v7035_v22 = vmul.f32 %v11391_v15, %v6943_v31 }
 0x4a6   : > { %v7014_v60 = vadd.f32 %v7013_v23, %v11385_v5  ;;  %v7049_v16 = vadd.f32 %v7048_v41, %v7034_v2  ;;  %v7068_v30 = vmul.f32 %v7034_v2, %v7034_v2 }
 0x4a7   : > { %v7036_v49 = vmul.f32 %v11391_v15, %v7012_v46  ;;  %v7069_v12 = vmul.f32 %v7035_v22, %v7035_v22 }
 0x4a8   : > { %v7083_v13 = vadd.f32 %v7082_v59, %v7068_v30  ;;  %v7050_v29 = vadd.f32 %v7049_v16, %v7035_v22  ;;  %v7037_v34 = vmul.f32 %v11391_v15, %v7014_v60  ;;  %v7094_v15 = vld [vmem:[%s11606_s4] sm:$0xff] }
 0x4a9   : > { %v7070_v0 = vmul.f32 %v7036_v49, %v7036_v49 }
 0x4aa   : > { %v7051_v19 = vadd.f32 %v7050_v29, %v7036_v49  ;;  %v7084_v48 = vadd.f32 %v7083_v13, %v7069_v12  ;;  %v7071_v27 = vmul.f32 %v7037_v34, %v7037_v34 }
 0x4ac   : > { %v7052_v56 = vadd.f32 %v7051_v19, %v7037_v34  ;;  %v7085_v24 = vadd.f32 %v7084_v48, %v7070_v0 }
 0x4ae   : > { %7053 = vadd.xlane.f32.xlu1 %v7052_v56  ;;  %v7086_v38 = vadd.f32 %v7085_v24, %v7071_v27 }
 0x4b0   : > { %7087 = vadd.xlane.f32.xlu0 %v7086_v38 }
 0x53b   : > { %v7054_v5 = vpop.xlane.xlu1 %7053 }
 0x53c   : > { %v7055_v28 = vmul.f32 0.00048828125, %v7054_v5 }
 0x53d   : > { %v7088_v61 = vpop.xlane.xlu0 %7087 }
 0x53e   : > { %v7090_v47 = vmul.f32 %v7055_v28, %v7055_v28  ;;  %v7089_v51 = vmul.f32 0.00048828125, %v7088_v61 }
 0x540   : > { %v7091_v4 = vsub.f32 %v7089_v51, %v7090_v47 }
 0x542   : > { %v7092_v62 = vadd.f32 1e-05, %v7091_v4 }
 0x544   : > { %7825 = vrsqrt.f32 %v7092_v62 }
 0x54e   : > { %v7826_v40 = vpop.eup %7825 }
 0x54f   : > { %v7095_v33 = vmul.f32 %v7826_v40, %v7094_v15 }
 0x551   : > { %7101 = vperm.xlu0 %7823, %v7095_v33   ;;  %v7097_v36 = vmul.f32 %v7095_v33, %v7055_v28 }
 0x553   : > { %v7098_v25 = vsub.f32 %v7096_v35, %v7097_v36 }
 0x555   : > { %7122 = vperm.xlu1 %7824, %v7098_v25  }
 0x5d0   : > { %v7102_v57 = vpop.permute.xlu0 %7101 }
 0x5d1   : > { %v7104_v45 = vmul.f32 %v7102_v57, %v11396_v55  ;;  %v7105_v32 = vmul.f32 %v7102_v57, %v11399_v7  ;;  %v7106_v39 = vmul.f32 %v7102_v57, %v11404_v1  ;;  %v7107_v8 = vmul.f32 %v7102_v57, %v11413_v11 }
 0x5d2   : > { %v7108_v6 = vmul.f32 %v7102_v57, %v11423_v37  ;;  %v7109_v44 = vmul.f32 %v7102_v57, %v11431_v42  ;;  %v7110_v20 = vmul.f32 %v7102_v57, %v11439_v52  ;;  %v7111_v18 = vmul.f32 %v7102_v57, %v11448_v21 }
 0x5d3   : > { %v7112_v3 = vmul.f32 %v7102_v57, %v11452_v26  ;;  %v7113_v14 = vmul.f32 %v7102_v57, %v11461_v9  ;;  %v7114_v55 = vmul.f32 %v7102_v57, %v11468_v54  ;;  %v7115_v58 = vmul.f32 %v7102_v57, %v7033_v63 }
 0x5d4   : > { %v7116_v7 = vmul.f32 %v7102_v57, %v7034_v2  ;;  %v7117_v17 = vmul.f32 %v7102_v57, %v7035_v22  ;;  %v7118_v1 = vmul.f32 %v7102_v57, %v7036_v49  ;;  %v7119_v53 = vmul.f32 %v7102_v57, %v7037_v34  ;;  %v7123_v11 = vpop.permute.xlu1 %7122 }
 0x5d5   : > { %v7125_v43 = vadd.f32 %v7123_v11, %v7104_v45  ;;  %v7126_v37 = vadd.f32 %v7123_v11, %v7105_v32  ;;  %v7127_v50 = vadd.f32 %v7123_v11, %v7106_v39  ;;  %v7128_v42 = vadd.f32 %v7123_v11, %v7107_v8 }
 0x5d6   : > { %v7129_v31 = vadd.f32 %v7123_v11, %v7108_v6  ;;  %v7130_v52 = vadd.f32 %v7123_v11, %v7109_v44  ;;  %v7131_v10 = vadd.f32 %v7123_v11, %v7110_v20  ;;  %v7132_v21 = vadd.f32 %v7123_v11, %v7111_v18 }
 0x5d7   : > { %v7133_v41 = vadd.f32 %v7123_v11, %v7112_v3  ;;  %v7134_v26 = vadd.f32 %v7123_v11, %v7113_v14  ;;  %v7135_v46 = vadd.f32 %v7123_v11, %v7114_v55  ;;  %v7136_v9 = vadd.f32 %v7123_v11, %v7115_v58 }
 0x5d8   : > { %v7137_v23 = vadd.f32 %v7123_v11, %v7116_v7  ;;  %v7138_v54 = vadd.f32 %v7123_v11, %v7117_v17  ;;  %v11501_v63 = vadd.f32 %v7123_v11, %v7118_v1  ;;  %v11503_v2 = vadd.f32 %v7123_v11, %v7119_v53 }
 0x5d9   : > { %vm7141_vm9 = vcmp.ge.f32.partialorder %v7125_v43, 0.0  ;;  %vm7142_vm10 = vcmp.ge.f32.partialorder %v7126_v37, 0.0  ;;  %vm7143_vm11 = vcmp.ge.f32.partialorder %v7127_v50, 0.0  ;;  %vm7144_vm12 = vcmp.ge.f32.partialorder %v7128_v42, 0.0 }
 0x5da   : > { %vm7145_vm13 = vcmp.ge.f32.partialorder %v7129_v31, 0.0  ;;  %vm7146_vm14 = vcmp.ge.f32.partialorder %v7130_v52, 0.0  ;;  %vm7147_vm15 = vcmp.ge.f32.partialorder %v7131_v10, 0.0  ;;  %vm7148_vm0 = vcmp.ge.f32.partialorder %v7132_v21, 0.0 }
 0x5db   : > { %vm7149_vm1 = vcmp.ge.f32.partialorder %v7133_v41, 0.0  ;;  %vm7150_vm2 = vcmp.ge.f32.partialorder %v7134_v26, 0.0  ;;  %vm7151_vm3 = vcmp.ge.f32.partialorder %v7135_v46, 0.0  ;;  %vm7152_vm4 = vcmp.ge.f32.partialorder %v7136_v9, 0.0 }
 0x5dc   : > { %vm7153_vm5 = vcmp.ge.f32.partialorder %v7137_v23, 0.0  ;;  %vm7154_vm6 = vcmp.ge.f32.partialorder %v7138_v54, 0.0  ;;  %vm7155_vm7 = vcmp.ge.f32.partialorder %v11501_v63, 0.0  ;;  %vm7156_vm8 = vcmp.ge.f32.partialorder %v11503_v2, 0.0 }
 0x5dd   : > { %v7157_v22 = vmul.f32 0.01, %v7125_v43  ;;  %v7158_v60 = vmul.f32 0.01, %v7126_v37  ;;  %v7159_v59 = vmul.f32 0.01, %v7127_v50 }
 0x5de   : > { %v7160_v16 = vmul.f32 0.01, %v7128_v42  ;;  %v7161_v30 = vmul.f32 0.01, %v7129_v31  ;;  %v7162_v49 = vmul.f32 0.01, %v7130_v52 }
 0x5df   : > { %v7163_v12 = vmul.f32 0.01, %v7131_v10  ;;  %v7164_v13 = vmul.f32 0.01, %v7132_v21  ;;  %v7165_v29 = vmul.f32 0.01, %v7133_v41  ;;  %v7173_v34 = vsel %vm7141_vm9, %v7125_v43, %v7157_v22 }
 0x5e0   : > { %v7166_v0 = vmul.f32 0.01, %v7134_v26  ;;  %v7167_v19 = vmul.f32 0.01, %v7135_v46  ;;  %v7168_v48 = vmul.f32 0.01, %v7136_v9  ;;  %v7174_v56 = vsel %vm7142_vm10, %v7126_v37, %v7158_v60  ;;  %7189 = vst [vmem:[%s11510_s15] sm:$0xff] %v7173_v34 }
 0x5e1   : > { %v7169_v27 = vmul.f32 0.01, %v7137_v23  ;;  %v7170_v24 = vmul.f32 0.01, %v7138_v54  ;;  %v7171_v38 = vmul.f32 0.01, %v11501_v63  ;;  %v7175_v5 = vsel %vm7143_vm11, %v7127_v50, %v7159_v59 }
 0x5e2   : > { %7190 = vst [vmem:[%s11510_s15 + $0x8] sm:$0xff] %v7174_v56  ;;  %v7172_v28 = vmul.f32 0.01, %v11503_v2  ;;  %v7176_v61 = vsel %vm7144_vm12, %v7128_v42, %v7160_v16  ;;  %v7177_v47 = vsel %vm7145_vm13, %v7129_v31, %v7161_v30  ;;  %v7178_v51 = vsel %vm7146_vm14, %v7130_v52, %v7162_v49  ;;  %7191 = vst [vmem:[%s11510_s15 + $0x10] sm:$0xff] %v7175_v5 }
 0x5e3   : > { %v7179_v4 = vsel %vm7147_vm15, %v7131_v10, %v7163_v12  ;;  %v7180_v62 = vsel %vm7148_vm0, %v7132_v21, %v7164_v13  ;;  %v7181_v15 = vsel %vm7149_vm1, %v7133_v41, %v7165_v29  ;;  %v7182_v40 = vsel %vm7150_vm2, %v7134_v26, %v7166_v0  ;;  %7192 = vst [vmem:[%s11510_s15 + $0x18] sm:$0xff] %v7176_v61 }
 0x5e4   : > { %7193 = vst [vmem:[%s11510_s15 + $0x20] sm:$0xff] %v7177_v47  ;;  %7194 = vst [vmem:[%s11510_s15 + $0x28] sm:$0xff] %v7178_v51  ;;  %v7183_v33 = vsel %vm7151_vm3, %v7135_v46, %v7167_v19  ;;  %v7184_v35 = vsel %vm7152_vm4, %v7136_v9, %v7168_v48  ;;  %v7185_v36 = vsel %vm7153_vm5, %v7137_v23, %v7169_v27 }
 0x5e5   : > { %v7186_v25 = vsel %vm7154_vm6, %v7138_v54, %v7170_v24  ;;  %7195 = vst [vmem:[%s11510_s15 + $0x30] sm:$0xff] %v7179_v4  ;;  %7196 = vst [vmem:[%s11510_s15 + $0x38] sm:$0xff] %v7180_v62  ;;  %v7187_v57 = vsel %vm7155_vm7, %v11501_v63, %v7171_v38  ;;  %v7188_v45 = vsel %vm7156_vm8, %v11503_v2, %v7172_v28 }
 0x5e6   : > { %7197 = vst [vmem:[%s11510_s15 + $0x40] sm:$0xff] %v7181_v15  ;;  %7198 = vst [vmem:[%s11510_s15 + $0x48] sm:$0xff] %v7182_v40 }
 0x5e7   : > { %7199 = vst [vmem:[%s11510_s15 + $0x50] sm:$0xff] %v7183_v33  ;;  %7200 = vst [vmem:[%s11510_s15 + $0x58] sm:$0xff] %v7184_v35 }
 0x5e8   : > { %7201 = vst [vmem:[%s11510_s15 + $0x60] sm:$0xff] %v7185_v36  ;;  %7202 = vst [vmem:[%s11510_s15 + $0x68] sm:$0xff] %v7186_v25 }
 0x5e9   : > { %7203 = vst [vmem:[%s11510_s15 + $0x70] sm:$0xff] %v7187_v57  ;;  %7204 = vst [vmem:[%s11510_s15 + $0x78] sm:$0xff] %v7188_v45 }
 0x5ea   : > { %7908 = shalt.err (!%p7905_p9)
}
 0x5eb   : > { %s7909_s10 = scalar_lea.hbm %s11544_s11, 2048  ;;  %s7913_s16 = scalar_lea.hbm %s11609_s7, 4096 }
 0x5ec   : > { %p7910_p2 = scmp.ne.s32.totalorder %s11544_s11, %s7909_s10  ;;  %p7914_p11 = scmp.lt.u32.totalorder %s11544_s11, %s11609_s7 }
 0x5ed   : > { %p7915_p1 = scmp.lt.u32.totalorder %s7913_s16, %s7909_s10  ;;  %p7917_p6 = scmp.lt.u32.totalorder %s7909_s10, %s11544_s11 }
 0x5ee   : > { %p7911_p5 = pnand %p7910_p2, %p8112_p12 }
 0x5ef   : > { %p7916_p4 = por %p7915_p1, %p7914_p11 }
 0x5f0   : > { %p7912_p0 = pneg %p7911_p5 }
 0x5f1   : > { %p7918_p8 = por %p7917_p6, %p7916_p4 }
 0x5f3   : > { %p7919_p10 = pnand %p7918_p8, %p7912_p0 }
 0x5f5   : > { %7922 = shalt.err (!%p7919_p10)
}
 0x5f6   : > { %7761 = dma.vmem_to_hbm [thread:$0]  (%p8112_p12), %s11548_s29, 2048, %s11544_s11, %s7206_s28  }
 0x5f7 PF: > { %s7232_s22 = sand.u32 1, %s7953_s24   ;;  %p12084_p13 = scmp.ne.s32.totalorder %s11767_s8, 0 }
 0x5f8   : > { %p12085_p3 = scmp.ge.s32.totalorder %s7965_s27, 2  ;;  %s7233_s20 = scalar_lea.sflag [#allocation5], %s7232_s22 }
 0x5fa   : > { %p7772_p7 = pnand %p12085_p3, %p12084_p13 }
 0x5fc   : > { %7948 = dma.done.wait (!%p7772_p7), %s7233_s20, 2048  }
 0x5fd   : > { %7950 = vsyncadd (!%p7772_p7), %s7233_s20, 4294965248  ;;  %p21_p9 = scmp.ge.s32.totalorder %s8077_s13, 4   ;;  %s12086_s24 = smov %s7957_s25 }
 0x5fe   : > { %s12087_s25 = smov %s7961_s26  ;;  %s12088_s26 = smov %s8108_s18 }
 0x5ff   : > { %s12089_s27 = smov %s8077_s13  ;;  %23 = sbr.rel (!%p21_p9) target bundleno = 6 (0x6), region = 153 }
 0x606   :  { %7238 = vsyncpa [#allocation4], 1 }
 0x607   :  { %7240 = vsyncpa [#allocation4 + $0x1], 1 }
 0x608   :  { %7241 = vsyncpa [#allocation7], 1 }
 0x609   :  { %7242 = vsyncpa [#allocation5], 1 }
 0x60a   :  { %7244 = vsyncpa [#allocation5 + $0x1], 1 }

</bundles_post_ra>
